<compile_context>
chip_gen: v6e
topology: v6e:2x2x1
jax: 0.10.0
libtpu: 0.0.40
codegen_flags: <defaults>
</compile_context>

<pallas_src>
import functools

import jax
import jax.numpy as jnp
from jax.experimental import pallas as pl
from jax.experimental.pallas import tpu as pltpu

NEG_SLOPE = 0.001      # activation_param of InPlaceABN leaky_relu in conv2d_ABN
BN_EPS = 1e-5
LANE = 128             # pad all channel dims to a multiple of the lane width


# ----------------------------------------------------------------------------
# Fused Pallas kernel (one grid step == one image)
# ----------------------------------------------------------------------------
def _bottleneck_kernel(x_ref, w1_ref, s1_ref, b1_ref,
                       w2_ref, s2_ref, b2_ref, mnf_ref, mnl_ref,
                       sw1_ref, sb1_ref, sw2_ref, sb2_ref,
                       w3_ref, s3_ref, b3_ref,
                       o_ref, halo_ref, *, H, W, neg_slope):
    HW = H * W
    cdt = w1_ref.dtype                     # bf16 compute dtype for MXU operands
    pp = w1_ref.shape[1]                   # padded planes (lane-dense)

    x2d = x_ref[0]                         # (HW, Cp) f32 -- also the residual

    # --- conv1 (1x1) + folded ABN + leaky_relu ------------------------------
    h = jnp.dot(x2d.astype(cdt), w1_ref[...], preferred_element_type=jnp.float32)
    h = h * s1_ref[...] + b1_ref[...]
    h = jnp.where(h >= 0.0, h, neg_slope * h)               # (HW, Pp) f32

    # --- conv2 (3x3, stride 1, pad 1) ---------------------------------------
    # Channel block kw of the bf16 halo slab holds h shifted by dw = kw-1
    # along W (column-wrap masked), stored at interior rows [W, W+HW).
    # Tap (kh, kw) is then slab[kh*W : kh*W+HW, kw*Pp:(kw+1)*Pp]; the 9 taps
    # collapse into 3 contiguous-view matmuls with K = 3*Pp.
    zrow = jnp.zeros((1, pp), jnp.float32)
    h_up = jnp.concatenate([zrow, h[:HW - 1, :]], axis=0)   # h_up[p] = h[p-1]
    h_dn = jnp.concatenate([h[1:, :], zrow], axis=0)        # h_dn[p] = h[p+1]

    # zero only the W-row top/bottom border strips (never written below)
    halo_ref[0:W, :] = jnp.zeros((W, 3 * pp), cdt)
    halo_ref[W + HW:W + HW + W, :] = jnp.zeros((W, 3 * pp), cdt)

    halo_ref[W:W + HW, 0:pp] = (h_up * mnf_ref[...]).astype(cdt)           # dw=-1
    halo_ref[W:W + HW, pp:2 * pp] = h.astype(cdt)                          # dw= 0
    halo_ref[W:W + HW, 2 * pp:3 * pp] = (h_dn * mnl_ref[...]).astype(cdt)  # dw=+1

    acc = jnp.zeros((HW, pp), jnp.float32)
    for kh in range(3):                    # 3 matmuls, K = 3*Pp, contiguous LHS
        acc = acc + jnp.dot(halo_ref[kh * W:kh * W + HW, :], w2_ref[kh],
                            preferred_element_type=jnp.float32)
    h = acc * s2_ref[...] + b2_ref[...]
    h = jnp.where(h >= 0.0, h, neg_slope * h)               # (HW, Pp) f32

    # --- SE: global avg pool over HW + 2 tiny FCs + sigmoid gate ------------
    pooled = jnp.sum(h, axis=0, keepdims=True) * (1.0 / HW)  # (1, Pp)
    z = jnp.dot(pooled.astype(cdt), sw1_ref[...], preferred_element_type=jnp.float32)
    z = jnp.maximum(z + sb1_ref[...], 0.0)
    g = jnp.dot(z.astype(cdt), sw2_ref[...], preferred_element_type=jnp.float32)
    g = jax.nn.sigmoid(g + sb2_ref[...])                     # (1, Pp)
    h = h * g                                                # gate (broadcast)

    # --- conv3 (1x1) + folded ABN(identity) + residual add + ReLU -----------
    y = jnp.dot(h.astype(cdt), w3_ref[...], preferred_element_type=jnp.float32)
    y = y * s3_ref[...] + b3_ref[...] + x2d
    o_ref[0] = jnp.maximum(y, 0.0).astype(o_ref.dtype)


# ----------------------------------------------------------------------------
# Plain-JAX glue: parameter folding, channel padding, layout
# ----------------------------------------------------------------------------
def _round_up(c):
    return ((c + LANE - 1) // LANE) * LANE


def _pad_to(a, shape):
    return jnp.pad(a, [(0, t - s) for s, t in zip(a.shape, shape)])


def fold_bn(gamma, beta, mean, var):
    scale = gamma / jnp.sqrt(var + BN_EPS)
    return scale, beta - mean * scale


def _fold_pad(gamma, beta, mean, var, cp):
    s, b = fold_bn(gamma, beta, mean, var)
    c = s.shape[0]
    return (_pad_to(s.reshape(1, c), (1, cp)).astype(jnp.float32),
            _pad_to(b.reshape(1, c), (1, cp)).astype(jnp.float32))


def bottleneck_forward(x_nchw, p, *, compute_dtype=jnp.bfloat16):
    n, cin, h, w = x_nchw.shape
    planes = p['w1'].shape[0]
    cout = p['w3'].shape[0]
    r = p['se_w1'].shape[0]
    assert cout == cin, "downsample=None: residual add requires inplanes == planes*4"

    cp, pp, rp = _round_up(cin), _round_up(planes), _round_up(r)
    hw = h * w

    # Layout glue: NCHW -> channels-last (N, H*W, Cp), zero-padded lanes.
    # TODO(synk): a full TResNet would stay channels-last (and lane-padded)
    # between blocks so these transposes/pads/slices happen once per network.
    x = jnp.transpose(x_nchw, (0, 2, 3, 1)).astype(jnp.float32).reshape(n, hw, cin)
    x = _pad_to(x, (n, hw, cp))
    # TODO(synk): on bandwidth-poor v5e, ship x (and optionally the output) as
    # bf16 and upcast only for the f32 residual add.

    # conv1 weights + folded ABN
    w1 = _pad_to(p['w1'].reshape(planes, cin).T, (cp, pp)).astype(compute_dtype)
    s1, b1 = _fold_pad(p['g1'], p['b1'], p['m1'], p['v1'], pp)

    # conv2 weights packed per-kh with K = 3*pp: w2[kh][kw*pp + cin, cout]
    w2 = jnp.transpose(p['w2'], (2, 3, 1, 0))                 # (kh, kw, cin, cout)
    w2 = _pad_to(w2, (3, 3, pp, pp)).reshape(3, 3 * pp, pp).astype(compute_dtype)
    s2, b2 = _fold_pad(p['g2'], p['b2'], p['m2'], p['v2'], pp)

    # column-wrap masks for the dw = -1 / +1 channel blocks of the halo slab
    col = jnp.arange(hw, dtype=jnp.int32) % w
    mnf = (col != 0).astype(jnp.float32).reshape(hw, 1)        # "not first col"
    mnl = (col != (w - 1)).astype(jnp.float32).reshape(hw, 1)  # "not last col"

    # SE weights
    sw1 = _pad_to(p['se_w1'].reshape(r, planes).T, (pp, rp)).astype(compute_dtype)
    sb1 = _pad_to(p['se_b1'].reshape(1, r), (1, rp)).astype(jnp.float32)
    sw2 = _pad_to(p['se_w2'].reshape(planes, r).T, (rp, pp)).astype(compute_dtype)
    sb2 = _pad_to(p['se_b2'].reshape(1, planes), (1, pp)).astype(jnp.float32)

    # conv3 weights + folded ABN (identity activation)
    w3 = _pad_to(p['w3'].reshape(cout, planes).T, (pp, cp)).astype(compute_dtype)
    s3, b3 = _fold_pad(p['g3'], p['b3'], p['m3'], p['v3'], cp)

    kernel = functools.partial(_bottleneck_kernel, H=h, W=w, neg_slope=NEG_SLOPE)
    c2 = lambda i: (0, 0)
    c3 = lambda i: (0, 0, 0)

    in_specs = [
        pl.BlockSpec((1, hw, cp), lambda i: (i, 0, 0)),      # x (per-image block)
        pl.BlockSpec((cp, pp), c2), pl.BlockSpec((1, pp), c2), pl.BlockSpec((1, pp), c2),
        pl.BlockSpec((3, 3 * pp, pp), c3), pl.BlockSpec((1, pp), c2), pl.BlockSpec((1, pp), c2),
        pl.BlockSpec((hw, 1), c2), pl.BlockSpec((hw, 1), c2),
        pl.BlockSpec((pp, rp), c2), pl.BlockSpec((1, rp), c2),
        pl.BlockSpec((rp, pp), c2), pl.BlockSpec((1, pp), c2),
        pl.BlockSpec((pp, cp), c2), pl.BlockSpec((1, cp), c2), pl.BlockSpec((1, cp), c2),
    ]

    # VMEM budget: double-buffered x/out blocks + double-buffered weights +
    # bf16 halo slab + headroom for f32 temporaries; capped at 64 MiB (v7x-safe;
    # v5e/v6e could go higher but this cap is sufficient for TResNet stages).
    bytes_x_block = hw * cp * 4
    bytes_w = int((w1.size + w2.size + w3.size + sw1.size + sw2.size) * 2
                  + (s1.size + b1.size + s2.size + b2.size + s3.size + b3.size
                     + sb1.size + sb2.size + mnf.size + mnl.size) * 4)
    bytes_slab = (h + 2) * w * 3 * pp * 2
    bytes_tmp = 8 * hw * pp * 4
    est = 4 * bytes_x_block + 2 * bytes_w + bytes_slab + bytes_tmp
    vmem_limit = int(min(max(2 * est, 32 * 1024 * 1024), 64 * 1024 * 1024))

    cost = pl.CostEstimate(
        flops=int(2 * n * hw * (cp * pp + 9 * pp * pp + pp * cp) + 4 * n * pp * rp),
        transcendentals=int(n * pp),
        bytes_accessed=int(2 * n * hw * cp * 4 + bytes_w))

    out = pl.pallas_call(
        kernel,
        out_shape=jax.ShapeDtypeStruct((n, hw, cp), jnp.float32),
        grid=(n,),
        in_specs=in_specs,
        out_specs=pl.BlockSpec((1, hw, cp), lambda i: (i, 0, 0)),
        scratch_shapes=[pltpu.VMEM(((h + 2) * w, 3 * pp), compute_dtype)],
        input_output_aliases={0: 0},     # residual buffer reused as output buffer
        compiler_params=pltpu.CompilerParams(
            dimension_semantics=("parallel",),
            vmem_limit_bytes=vmem_limit),
        cost_estimate=cost,
    )(x, w1, s1, b1, w2, s2, b2, mnf, mnl, sw1, sb1, sw2, sb2, w3, s3, b3)

    # TODO(synk): with n == 1 on v7x one TensorCore idles; a row-tile grid axis
    # (with a two-pass SE pool) would be needed for batch-1 inference.
    out = out[:, :, :cout].reshape(n, h, w, cout)
    return jnp.transpose(out, (0, 3, 1, 2))                  # back to NCHW


# ----------------------------------------------------------------------------
# Pure-JAX reference (independent check via lax.conv)
# ----------------------------------------------------------------------------
def _leaky(x, a):
    return jnp.where(x >= 0.0, x, a * x)


def ref_forward(x_nchw, p):
    x = jnp.transpose(x_nchw, (0, 2, 3, 1)).astype(jnp.float32)
    dn = ('NHWC', 'HWIO', 'NHWC')

    def conv(z, wt, pad):
        return jax.lax.conv_general_dilated(
            z, jnp.transpose(wt, (2, 3, 1, 0)), (1, 1), pad, dimension_numbers=dn)

    s, sh = fold_bn(p['g1'], p['b1'], p['m1'], p['v1'])
    y = _leaky(conv(x, p['w1'], 'VALID') * s + sh, NEG_SLOPE)
    s, sh = fold_bn(p['g2'], p['b2'], p['m2'], p['v2'])
    y = _leaky(conv(y, p['w2'], ((1, 1), (1, 1))) * s + sh, NEG_SLOPE)

    planes = y.shape[-1]
    r = p['se_w1'].shape[0]
    pooled = jnp.mean(y, axis=(1, 2))
    hmid = jnp.maximum(pooled @ p['se_w1'].reshape(r, planes).T + p['se_b1'], 0.0)
    gate = jax.nn.sigmoid(hmid @ p['se_w2'].reshape(planes, r).T + p['se_b2'])
    y = y * gate[:, None, None, :]

    s, sh = fold_bn(p['g3'], p['b3'], p['m3'], p['v3'])
    y = conv(y, p['w3'], 'VALID') * s + sh + x
    y = jnp.maximum(y, 0.0)
    return jnp.transpose(y, (0, 3, 1, 2))


# ----------------------------------------------------------------------------
if __name__ == "__main__":
    key = jax.random.PRNGKey(0)
    n, h, w = 2, 16, 16
    planes = 4
    inplanes = planes * 4                       # residual add works (downsample=None)
    reduce_ch = max(planes * 4 // 8, 64)        # per Bottleneck.__init__ -> 64

    keys = jax.random.split(key, 20)
    rn = lambda k, shape, s=0.1: s * jax.random.normal(k, shape, jnp.float32)
    p = dict(
        # conv1 (1x1) + ABN params (inference-mode running stats)
        w1=rn(keys[0], (planes, inplanes, 1, 1)),
        g1=1.0 + rn(keys[1], (planes,)), b1=rn(keys[2], (planes,)),
        m1=rn(keys[3], (planes,)),
        v1=jax.random.uniform(keys[4], (planes,), jnp.float32, 0.5, 1.5),
        # conv2 (3x3, stride 1) + ABN params
        w2=rn(keys[5], (planes, planes, 3, 3)),
        g2=1.0 + rn(keys[6], (planes,)), b2=rn(keys[7], (planes,)),
        m2=rn(keys[8], (planes,)),
        v2=jax.random.uniform(keys[9], (planes,), jnp.float32, 0.5, 1.5),
        # conv3 (1x1) + ABN(identity) params
        w3=rn(keys[10], (planes * 4, planes, 1, 1)),
        g3=1.0 + rn(keys[11], (planes * 4,)), b3=rn(keys[12], (planes * 4,)),
        m3=rn(keys[13], (planes * 4,)),
        v3=jax.random.uniform(keys[14], (planes * 4,), jnp.float32, 0.5, 1.5),
        # SE module
        se_w1=rn(keys[15], (reduce_ch, planes, 1, 1)),
        se_b1=rn(keys[16], (reduce_ch,)),
        se_w2=rn(keys[17], (planes, reduce_ch, 1, 1)),
        se_b2=rn(keys[18], (planes,)),
    )
    x = jax.random.normal(keys[19], (n, inplanes, h, w), jnp.float32)  # NCHW like PyTorch

    out = jax.block_until_ready(bottleneck_forward(x, p))
    ref = jax.block_until_ready(ref_forward(x, p))

    assert out.shape == (n, inplanes, h, w) and out.dtype == jnp.float32
    max_err = float(jnp.max(jnp.abs(out - ref)))
    assert jnp.allclose(out, ref, rtol=2e-2, atol=2e-2), max_err
    print("KERNEL_OK")
</pallas_src>

<mosaic_0001>
module attributes {stable_mosaic.version = 11 : i64} {
  func.func @_bottleneck_kernel(%arg0: i32, %arg1: memref<1x256x128xf32, #tpu.memory_space<vmem>>, %arg2: memref<128x128xbf16, #tpu.memory_space<vmem>>, %arg3: memref<1x128xf32, #tpu.memory_space<vmem>>, %arg4: memref<1x128xf32, #tpu.memory_space<vmem>>, %arg5: memref<3x384x128xbf16, #tpu.memory_space<vmem>>, %arg6: memref<1x128xf32, #tpu.memory_space<vmem>>, %arg7: memref<1x128xf32, #tpu.memory_space<vmem>>, %arg8: memref<256x1xf32, #tpu.memory_space<vmem>>, %arg9: memref<256x1xf32, #tpu.memory_space<vmem>>, %arg10: memref<128x128xbf16, #tpu.memory_space<vmem>>, %arg11: memref<1x128xf32, #tpu.memory_space<vmem>>, %arg12: memref<128x128xbf16, #tpu.memory_space<vmem>>, %arg13: memref<1x128xf32, #tpu.memory_space<vmem>>, %arg14: memref<128x128xbf16, #tpu.memory_space<vmem>>, %arg15: memref<1x128xf32, #tpu.memory_space<vmem>>, %arg16: memref<1x128xf32, #tpu.memory_space<vmem>>, %arg17: memref<1x256x128xf32, #tpu.memory_space<vmem>>, %arg18: memref<288x384xbf16, #tpu.memory_space<vmem>>) attributes {dimension_semantics = [#tpu.dimension_semantics<parallel>], iteration_bounds = array<i64: 2>, scalar_prefetch = 0 : i64, scratch_operands = 1 : i64, tpu.core_type = #tpu.core_type<tc>, window_params = [{transform_indices = @transform_0, window_bounds = array<i64: 1, 256, 128>}, {pipeline_mode = #tpu.pipeline_mode<synchronous>, transform_indices = @transform_1, window_bounds = array<i64: 128, 128>}, {pipeline_mode = #tpu.pipeline_mode<synchronous>, transform_indices = @transform_2, window_bounds = array<i64: 1, 128>}, {pipeline_mode = #tpu.pipeline_mode<synchronous>, transform_indices = @transform_3, window_bounds = array<i64: 1, 128>}, {pipeline_mode = #tpu.pipeline_mode<synchronous>, transform_indices = @transform_4, window_bounds = array<i64: 3, 384, 128>}, {pipeline_mode = #tpu.pipeline_mode<synchronous>, transform_indices = @transform_5, window_bounds = array<i64: 1, 128>}, {pipeline_mode = #tpu.pipeline_mode<synchronous>, transform_indices = @transform_6, window_bounds = array<i64: 1, 128>}, {pipeline_mode = #tpu.pipeline_mode<synchronous>, transform_indices = @transform_7, window_bounds = array<i64: 256, 1>}, {pipeline_mode = #tpu.pipeline_mode<synchronous>, transform_indices = @transform_8, window_bounds = array<i64: 256, 1>}, {pipeline_mode = #tpu.pipeline_mode<synchronous>, transform_indices = @transform_9, window_bounds = array<i64: 128, 128>}, {pipeline_mode = #tpu.pipeline_mode<synchronous>, transform_indices = @transform_10, window_bounds = array<i64: 1, 128>}, {pipeline_mode = #tpu.pipeline_mode<synchronous>, transform_indices = @transform_11, window_bounds = array<i64: 128, 128>}, {pipeline_mode = #tpu.pipeline_mode<synchronous>, transform_indices = @transform_12, window_bounds = array<i64: 1, 128>}, {pipeline_mode = #tpu.pipeline_mode<synchronous>, transform_indices = @transform_13, window_bounds = array<i64: 128, 128>}, {pipeline_mode = #tpu.pipeline_mode<synchronous>, transform_indices = @transform_14, window_bounds = array<i64: 1, 128>}, {pipeline_mode = #tpu.pipeline_mode<synchronous>, transform_indices = @transform_15, window_bounds = array<i64: 1, 128>}, {transform_indices = @transform_16, window_bounds = array<i64: 1, 256, 128>}]} {
    %c0 = arith.constant 0 : index
    %c0_0 = arith.constant 0 : index
    %c0_1 = arith.constant 0 : index
    %0 = vector.load %arg1[%c0, %c0_0, %c0_1] : memref<1x256x128xf32, #tpu.memory_space<vmem>>, vector<1x256x128xf32>
    %1 = vector.shape_cast %0 : vector<1x256x128xf32> to vector<256x128xf32>
    %2 = arith.truncf %1 : vector<256x128xf32> to vector<256x128xbf16>
    %c0_2 = arith.constant 0 : index
    %c0_3 = arith.constant 0 : index
    %3 = vector.load %arg2[%c0_2, %c0_3] : memref<128x128xbf16, #tpu.memory_space<vmem>>, vector<128x128xbf16>
    %cst = arith.constant dense<0.000000e+00> : vector<256x128xf32>
    %4 = tpu.matmul %2, %3, %cst {dimension_numbers = #tpu.dot_dimension_numbers<[1], [0], [0], [1], [0, 0, 1, 1], [], []>} : vector<256x128xbf16>, vector<128x128xbf16>, vector<256x128xf32> -> vector<256x128xf32>
    %c0_4 = arith.constant 0 : index
    %c0_5 = arith.constant 0 : index
    %5 = vector.load %arg3[%c0_4, %c0_5] : memref<1x128xf32, #tpu.memory_space<vmem>>, vector<1x128xf32>
    %6 = vector.broadcast %5 : vector<1x128xf32> to vector<256x128xf32>
    %7 = arith.mulf %4, %6 : vector<256x128xf32>
    %c0_6 = arith.constant 0 : index
    %c0_7 = arith.constant 0 : index
    %8 = vector.load %arg4[%c0_6, %c0_7] : memref<1x128xf32, #tpu.memory_space<vmem>>, vector<1x128xf32>
    %9 = vector.broadcast %8 : vector<1x128xf32> to vector<256x128xf32>
    %10 = arith.addf %7, %9 : vector<256x128xf32>
    %cst_8 = arith.constant 0.000000e+00 : f32
    %11 = vector.broadcast %cst_8 : f32 to vector<256x128xf32>
    %12 = arith.cmpf oge, %10, %11 : vector<256x128xf32>
    %cst_9 = arith.constant 1.000000e-03 : f32
    %13 = vector.broadcast %cst_9 : f32 to vector<256x128xf32>
    %14 = arith.mulf %13, %10 : vector<256x128xf32>
    %15 = arith.select %12, %10, %14 : vector<256x128xi1>, vector<256x128xf32>
    %cst_10 = arith.constant 0.000000e+00 : f32
    %16 = vector.broadcast %cst_10 : f32 to vector<1x128xf32>
    %17 = vector.extract_strided_slice %15 {offsets = [0, 0], sizes = [255, 128], strides = [1, 1]} : vector<256x128xf32> to vector<255x128xf32>
    %18 = tpu.concatenate %16, %17 in 0 : vector<1x128xf32>, vector<255x128xf32> -> vector<256x128xf32>
    %19 = vector.extract_strided_slice %15 {offsets = [1, 0], sizes = [255, 128], strides = [1, 1]} : vector<256x128xf32> to vector<255x128xf32>
    %20 = tpu.concatenate %19, %16 in 0 : vector<255x128xf32>, vector<1x128xf32> -> vector<256x128xf32>
    %cst_11 = arith.constant 0.000000e+00 : bf16
    %21 = vector.broadcast %cst_11 : bf16 to vector<16x384xbf16>
    %c0_12 = arith.constant 0 : index
    %c0_13 = arith.constant 0 : index
    %22 = vector.load %arg18[%c0_12, %c0_13] : memref<288x384xbf16, #tpu.memory_space<vmem>>, vector<16x384xbf16>
    tpu.vector_store %arg18[%c0_12, %c0_13], %21 {strides = array<i32>} : memref<288x384xbf16, #tpu.memory_space<vmem>>, vector<16x384xbf16>,
    %cst_14 = arith.constant 0.000000e+00 : bf16
    %23 = vector.broadcast %cst_14 : bf16 to vector<16x384xbf16>
    %c272 = arith.constant 272 : index
    %c0_15 = arith.constant 0 : index
    %24 = vector.load %arg18[%c272, %c0_15] : memref<288x384xbf16, #tpu.memory_space<vmem>>, vector<16x384xbf16>
    tpu.vector_store %arg18[%c272, %c0_15], %23 {strides = array<i32>} : memref<288x384xbf16, #tpu.memory_space<vmem>>, vector<16x384xbf16>,
    %c0_16 = arith.constant 0 : index
    %c0_17 = arith.constant 0 : index
    %25 = vector.load %arg8[%c0_16, %c0_17] : memref<256x1xf32, #tpu.memory_space<vmem>>, vector<256x1xf32>
    %26 = vector.broadcast %25 : vector<256x1xf32> to vector<256x128xf32>
    %27 = arith.mulf %18, %26 : vector<256x128xf32>
    %28 = arith.truncf %27 : vector<256x128xf32> to vector<256x128xbf16>
    %c16 = arith.constant 16 : index
    %c0_18 = arith.constant 0 : index
    %29 = vector.load %arg18[%c16, %c0_18] : memref<288x384xbf16, #tpu.memory_space<vmem>>, vector<256x128xbf16>
    tpu.vector_store %arg18[%c16, %c0_18], %28 {strides = array<i32>} : memref<288x384xbf16, #tpu.memory_space<vmem>>, vector<256x128xbf16>,
    %30 = arith.truncf %15 : vector<256x128xf32> to vector<256x128xbf16>
    %c16_19 = arith.constant 16 : index
    %c128 = arith.constant 128 : index
    %31 = vector.load %arg18[%c16_19, %c128] : memref<288x384xbf16, #tpu.memory_space<vmem>>, vector<256x128xbf16>
    tpu.vector_store %arg18[%c16_19, %c128], %30 {strides = array<i32>} : memref<288x384xbf16, #tpu.memory_space<vmem>>, vector<256x128xbf16>,
    %c0_20 = arith.constant 0 : index
    %c0_21 = arith.constant 0 : index
    %32 = vector.load %arg9[%c0_20, %c0_21] : memref<256x1xf32, #tpu.memory_space<vmem>>, vector<256x1xf32>
    %33 = vector.broadcast %32 : vector<256x1xf32> to vector<256x128xf32>
    %34 = arith.mulf %20, %33 : vector<256x128xf32>
    %35 = arith.truncf %34 : vector<256x128xf32> to vector<256x128xbf16>
    %c16_22 = arith.constant 16 : index
    %c256 = arith.constant 256 : index
    %36 = vector.load %arg18[%c16_22, %c256] : memref<288x384xbf16, #tpu.memory_space<vmem>>, vector<256x128xbf16>
    tpu.vector_store %arg18[%c16_22, %c256], %35 {strides = array<i32>} : memref<288x384xbf16, #tpu.memory_space<vmem>>, vector<256x128xbf16>,
    %cst_23 = arith.constant 0.000000e+00 : f32
    %37 = vector.broadcast %cst_23 : f32 to vector<256x128xf32>
    %c0_24 = arith.constant 0 : index
    %c0_25 = arith.constant 0 : index
    %38 = vector.load %arg18[%c0_24, %c0_25] : memref<288x384xbf16, #tpu.memory_space<vmem>>, vector<256x384xbf16>
    %c0_26 = arith.constant 0 : index
    %c0_27 = arith.constant 0 : index
    %c0_28 = arith.constant 0 : index
    %39 = vector.load %arg5[%c0_26, %c0_27, %c0_28] : memref<3x384x128xbf16, #tpu.memory_space<vmem>>, vector<1x384x128xbf16>
    %40 = vector.shape_cast %39 : vector<1x384x128xbf16> to vector<384x128xbf16>
    %cst_29 = arith.constant dense<0.000000e+00> : vector<256x128xf32>
    %41 = tpu.matmul %38, %40, %cst_29 {dimension_numbers = #tpu.dot_dimension_numbers<[1], [0], [0], [1], [0, 0, 1, 1], [], []>} : vector<256x384xbf16>, vector<384x128xbf16>, vector<256x128xf32> -> vector<256x128xf32>
    %42 = arith.addf %37, %41 : vector<256x128xf32>
    %c16_30 = arith.constant 16 : index
    %c0_31 = arith.constant 0 : index
    %43 = vector.load %arg18[%c16_30, %c0_31] : memref<288x384xbf16, #tpu.memory_space<vmem>>, vector<256x384xbf16>
    %c1 = arith.constant 1 : index
    %c0_32 = arith.constant 0 : index
    %c0_33 = arith.constant 0 : index
    %44 = vector.load %arg5[%c1, %c0_32, %c0_33] : memref<3x384x128xbf16, #tpu.memory_space<vmem>>, vector<1x384x128xbf16>
    %45 = vector.shape_cast %44 : vector<1x384x128xbf16> to vector<384x128xbf16>
    %cst_34 = arith.constant dense<0.000000e+00> : vector<256x128xf32>
    %46 = tpu.matmul %43, %45, %cst_34 {dimension_numbers = #tpu.dot_dimension_numbers<[1], [0], [0], [1], [0, 0, 1, 1], [], []>} : vector<256x384xbf16>, vector<384x128xbf16>, vector<256x128xf32> -> vector<256x128xf32>
    %47 = arith.addf %42, %46 : vector<256x128xf32>
    %c32 = arith.constant 32 : index
    %c0_35 = arith.constant 0 : index
    %48 = vector.load %arg18[%c32, %c0_35] : memref<288x384xbf16, #tpu.memory_space<vmem>>, vector<256x384xbf16>
    %c2 = arith.constant 2 : index
    %c0_36 = arith.constant 0 : index
    %c0_37 = arith.constant 0 : index
    %49 = vector.load %arg5[%c2, %c0_36, %c0_37] : memref<3x384x128xbf16, #tpu.memory_space<vmem>>, vector<1x384x128xbf16>
    %50 = vector.shape_cast %49 : vector<1x384x128xbf16> to vector<384x128xbf16>
    %cst_38 = arith.constant dense<0.000000e+00> : vector<256x128xf32>
    %51 = tpu.matmul %48, %50, %cst_38 {dimension_numbers = #tpu.dot_dimension_numbers<[1], [0], [0], [1], [0, 0, 1, 1], [], []>} : vector<256x384xbf16>, vector<384x128xbf16>, vector<256x128xf32> -> vector<256x128xf32>
    %52 = arith.addf %47, %51 : vector<256x128xf32>
    %c0_39 = arith.constant 0 : index
    %c0_40 = arith.constant 0 : index
    %53 = vector.load %arg6[%c0_39, %c0_40] : memref<1x128xf32, #tpu.memory_space<vmem>>, vector<1x128xf32>
    %54 = vector.broadcast %53 : vector<1x128xf32> to vector<256x128xf32>
    %55 = arith.mulf %52, %54 : vector<256x128xf32>
    %c0_41 = arith.constant 0 : index
    %c0_42 = arith.constant 0 : index
    %56 = vector.load %arg7[%c0_41, %c0_42] : memref<1x128xf32, #tpu.memory_space<vmem>>, vector<1x128xf32>
    %57 = vector.broadcast %56 : vector<1x128xf32> to vector<256x128xf32>
    %58 = arith.addf %55, %57 : vector<256x128xf32>
    %cst_43 = arith.constant 0.000000e+00 : f32
    %59 = vector.broadcast %cst_43 : f32 to vector<256x128xf32>
    %60 = arith.cmpf oge, %58, %59 : vector<256x128xf32>
    %cst_44 = arith.constant 1.000000e-03 : f32
    %61 = vector.broadcast %cst_44 : f32 to vector<256x128xf32>
    %62 = arith.mulf %61, %58 : vector<256x128xf32>
    %63 = arith.select %60, %58, %62 : vector<256x128xi1>, vector<256x128xf32>
    %cst_45 = arith.constant dense<0.000000e+00> : vector<128xf32>
    %64 = vector.multi_reduction <add>, %63, %cst_45 [0] : vector<256x128xf32> to vector<128xf32>
    %65 = vector.shape_cast %64 : vector<128xf32> to vector<1x128xf32>
    %cst_46 = arith.constant 3.906250e-03 : f32
    %66 = vector.broadcast %cst_46 : f32 to vector<1x128xf32>
    %67 = arith.mulf %65, %66 : vector<1x128xf32>
    %68 = arith.truncf %67 : vector<1x128xf32> to vector<1x128xbf16>
    %c0_47 = arith.constant 0 : index
    %c0_48 = arith.constant 0 : index
    %69 = vector.load %arg10[%c0_47, %c0_48] : memref<128x128xbf16, #tpu.memory_space<vmem>>, vector<128x128xbf16>
    %cst_49 = arith.constant dense<0.000000e+00> : vector<1x128xf32>
    %70 = tpu.matmul %68, %69, %cst_49 {dimension_numbers = #tpu.dot_dimension_numbers<[1], [0], [0], [1], [0, 0, 1, 1], [], []>} : vector<1x128xbf16>, vector<128x128xbf16>, vector<1x128xf32> -> vector<1x128xf32>
    %c0_50 = arith.constant 0 : index
    %c0_51 = arith.constant 0 : index
    %71 = vector.load %arg11[%c0_50, %c0_51] : memref<1x128xf32, #tpu.memory_space<vmem>>, vector<1x128xf32>
    %72 = arith.addf %70, %71 : vector<1x128xf32>
    %cst_52 = arith.constant 0.000000e+00 : f32
    %73 = vector.broadcast %cst_52 : f32 to vector<1x128xf32>
    %74 = arith.maximumf %72, %73 : vector<1x128xf32>
    %75 = arith.truncf %74 : vector<1x128xf32> to vector<1x128xbf16>
    %c0_53 = arith.constant 0 : index
    %c0_54 = arith.constant 0 : index
    %76 = vector.load %arg12[%c0_53, %c0_54] : memref<128x128xbf16, #tpu.memory_space<vmem>>, vector<128x128xbf16>
    %cst_55 = arith.constant dense<0.000000e+00> : vector<1x128xf32>
    %77 = tpu.matmul %75, %76, %cst_55 {dimension_numbers = #tpu.dot_dimension_numbers<[1], [0], [0], [1], [0, 0, 1, 1], [], []>} : vector<1x128xbf16>, vector<128x128xbf16>, vector<1x128xf32> -> vector<1x128xf32>
    %c0_56 = arith.constant 0 : index
    %c0_57 = arith.constant 0 : index
    %78 = vector.load %arg13[%c0_56, %c0_57] : memref<1x128xf32, #tpu.memory_space<vmem>>, vector<1x128xf32>
    %79 = arith.addf %77, %78 : vector<1x128xf32>
    %80 = arith.negf %79 : vector<1x128xf32>
    %81 = math.exp %80 : vector<1x128xf32>
    %cst_58 = arith.constant 1.000000e+00 : f32
    %82 = vector.broadcast %cst_58 : f32 to vector<1x128xf32>
    %83 = arith.addf %82, %81 : vector<1x128xf32>
    %84 = arith.divf %82, %83 : vector<1x128xf32>
    %85 = vector.broadcast %84 : vector<1x128xf32> to vector<256x128xf32>
    %86 = arith.mulf %63, %85 : vector<256x128xf32>
    %87 = arith.truncf %86 : vector<256x128xf32> to vector<256x128xbf16>
    %c0_59 = arith.constant 0 : index
    %c0_60 = arith.constant 0 : index
    %88 = vector.load %arg14[%c0_59, %c0_60] : memref<128x128xbf16, #tpu.memory_space<vmem>>, vector<128x128xbf16>
    %cst_61 = arith.constant dense<0.000000e+00> : vector<256x128xf32>
    %89 = tpu.matmul %87, %88, %cst_61 {dimension_numbers = #tpu.dot_dimension_numbers<[1], [0], [0], [1], [0, 0, 1, 1], [], []>} : vector<256x128xbf16>, vector<128x128xbf16>, vector<256x128xf32> -> vector<256x128xf32>
    %c0_62 = arith.constant 0 : index
    %c0_63 = arith.constant 0 : index
    %90 = vector.load %arg15[%c0_62, %c0_63] : memref<1x128xf32, #tpu.memory_space<vmem>>, vector<1x128xf32>
    %91 = vector.broadcast %90 : vector<1x128xf32> to vector<256x128xf32>
    %92 = arith.mulf %89, %91 : vector<256x128xf32>
    %c0_64 = arith.constant 0 : index
    %c0_65 = arith.constant 0 : index
    %93 = vector.load %arg16[%c0_64, %c0_65] : memref<1x128xf32, #tpu.memory_space<vmem>>, vector<1x128xf32>
    %94 = vector.broadcast %93 : vector<1x128xf32> to vector<256x128xf32>
    %95 = arith.addf %92, %94 : vector<256x128xf32>
    %96 = arith.addf %95, %1 : vector<256x128xf32>
    %cst_66 = arith.constant 0.000000e+00 : f32
    %97 = vector.broadcast %cst_66 : f32 to vector<256x128xf32>
    %98 = arith.maximumf %96, %97 : vector<256x128xf32>
    %c0_67 = arith.constant 0 : index
    %c0_68 = arith.constant 0 : index
    %c0_69 = arith.constant 0 : index
    %99 = vector.load %arg17[%c0_67, %c0_68, %c0_69] : memref<1x256x128xf32, #tpu.memory_space<vmem>>, vector<1x256x128xf32>
    %100 = vector.shape_cast %99 : vector<1x256x128xf32> to vector<256x128xf32>
    %101 = vector.shape_cast %98 : vector<256x128xf32> to vector<1x256x128xf32>
    tpu.vector_store %arg17[%c0_67, %c0_68, %c0_69], %101 {strides = array<i32>} : memref<1x256x128xf32, #tpu.memory_space<vmem>>, vector<1x256x128xf32>,
    return
  }
  func.func @transform_0(%arg0: i32) -> (i32, i32, i32) {
    %c0_i32 = arith.constant 0 : i32
    %c0_i32_0 = arith.constant 0 : i32
    %c0_i32_1 = arith.constant 0 : i32
    return %arg0, %c0_i32, %c0_i32_0 : i32, i32, i32
  }
  func.func @transform_1(%arg0: i32) -> (i32, i32) {
    %c0_i32 = arith.constant 0 : i32
    %c0_i32_0 = arith.constant 0 : i32
    %c0_i32_1 = arith.constant 0 : i32
    return %c0_i32, %c0_i32_0 : i32, i32
  }
  func.func @transform_2(%arg0: i32) -> (i32, i32) {
    %c0_i32 = arith.constant 0 : i32
    %c0_i32_0 = arith.constant 0 : i32
    %c0_i32_1 = arith.constant 0 : i32
    return %c0_i32, %c0_i32_0 : i32, i32
  }
  func.func @transform_3(%arg0: i32) -> (i32, i32) {
    %c0_i32 = arith.constant 0 : i32
    %c0_i32_0 = arith.constant 0 : i32
    %c0_i32_1 = arith.constant 0 : i32
    return %c0_i32, %c0_i32_0 : i32, i32
  }
  func.func @transform_4(%arg0: i32) -> (i32, i32, i32) {
    %c0_i32 = arith.constant 0 : i32
    %c0_i32_0 = arith.constant 0 : i32
    %c0_i32_1 = arith.constant 0 : i32
    %c0_i32_2 = arith.constant 0 : i32
    return %c0_i32, %c0_i32_0, %c0_i32_1 : i32, i32, i32
  }
  func.func @transform_5(%arg0: i32) -> (i32, i32) {
    %c0_i32 = arith.constant 0 : i32
    %c0_i32_0 = arith.constant 0 : i32
    %c0_i32_1 = arith.constant 0 : i32
    return %c0_i32, %c0_i32_0 : i32, i32
  }
  func.func @transform_6(%arg0: i32) -> (i32, i32) {
    %c0_i32 = arith.constant 0 : i32
    %c0_i32_0 = arith.constant 0 : i32
    %c0_i32_1 = arith.constant 0 : i32
    return %c0_i32, %c0_i32_0 : i32, i32
  }
  func.func @transform_7(%arg0: i32) -> (i32, i32) {
    %c0_i32 = arith.constant 0 : i32
    %c0_i32_0 = arith.constant 0 : i32
    %c0_i32_1 = arith.constant 0 : i32
    return %c0_i32, %c0_i32_0 : i32, i32
  }
  func.func @transform_8(%arg0: i32) -> (i32, i32) {
    %c0_i32 = arith.constant 0 : i32
    %c0_i32_0 = arith.constant 0 : i32
    %c0_i32_1 = arith.constant 0 : i32
    return %c0_i32, %c0_i32_0 : i32, i32
  }
  func.func @transform_9(%arg0: i32) -> (i32, i32) {
    %c0_i32 = arith.constant 0 : i32
    %c0_i32_0 = arith.constant 0 : i32
    %c0_i32_1 = arith.constant 0 : i32
    return %c0_i32, %c0_i32_0 : i32, i32
  }
  func.func @transform_10(%arg0: i32) -> (i32, i32) {
    %c0_i32 = arith.constant 0 : i32
    %c0_i32_0 = arith.constant 0 : i32
    %c0_i32_1 = arith.constant 0 : i32
    return %c0_i32, %c0_i32_0 : i32, i32
  }
  func.func @transform_11(%arg0: i32) -> (i32, i32) {
    %c0_i32 = arith.constant 0 : i32
    %c0_i32_0 = arith.constant 0 : i32
    %c0_i32_1 = arith.constant 0 : i32
    return %c0_i32, %c0_i32_0 : i32, i32
  }
  func.func @transform_12(%arg0: i32) -> (i32, i32) {
    %c0_i32 = arith.constant 0 : i32
    %c0_i32_0 = arith.constant 0 : i32
    %c0_i32_1 = arith.constant 0 : i32
    return %c0_i32, %c0_i32_0 : i32, i32
  }
  func.func @transform_13(%arg0: i32) -> (i32, i32) {
    %c0_i32 = arith.constant 0 : i32
    %c0_i32_0 = arith.constant 0 : i32
    %c0_i32_1 = arith.constant 0 : i32
    return %c0_i32, %c0_i32_0 : i32, i32
  }
  func.func @transform_14(%arg0: i32) -> (i32, i32) {
    %c0_i32 = arith.constant 0 : i32
    %c0_i32_0 = arith.constant 0 : i32
    %c0_i32_1 = arith.constant 0 : i32
    return %c0_i32, %c0_i32_0 : i32, i32
  }
  func.func @transform_15(%arg0: i32) -> (i32, i32) {
    %c0_i32 = arith.constant 0 : i32
    %c0_i32_0 = arith.constant 0 : i32
    %c0_i32_1 = arith.constant 0 : i32
    return %c0_i32, %c0_i32_0 : i32, i32
  }
  func.func @transform_16(%arg0: i32) -> (i32, i32, i32) {
    %c0_i32 = arith.constant 0 : i32
    %c0_i32_0 = arith.constant 0 : i32
    %c0_i32_1 = arith.constant 0 : i32
    return %arg0, %c0_i32, %c0_i32_0 : i32, i32, i32
  }
}

</mosaic_0001>

<bundles_post_ra>
// kernel: tpu_custom_call.1
= control target key start
LH: loop header
LB: loop body
LE: loop exit
PB: predicated region body
PF: predicated region fallthrough
CT: control target
= control target key end

     0   :  { %s9388_s0 = inlined_call_operand.hbm [shape: f32[2,256,128], index: 0, kind: input, shape index: {}, may-alias: {0,16}]   ;;  %s9389_s1 = inlined_call_operand.vmem [shape: bf16[128,128], index: 1, kind: input, shape index: {}]   ;;  %s9390_s2 = inlined_call_operand.vmem [shape: f32[1,128], index: 2, kind: input, shape index: {}]   ;;  %s9391_s3 = inlined_call_operand.vmem [shape: f32[1,128], index: 3, kind: input, shape index: {}]   ;;  %s9392_s4 = inlined_call_operand.vmem [shape: bf16[3,384,128], index: 4, kind: input, shape index: {}]   ;;  %s9393_s5 = inlined_call_operand.vmem [shape: f32[1,128], index: 5, kind: input, shape index: {}]   ;;  %s9394_s6 = inlined_call_operand.vmem [shape: f32[1,128], index: 6, kind: input, shape index: {}]   ;;  %s9395_s7 = inlined_call_operand.vmem [shape: f32[256,1], index: 7, kind: input, shape index: {}]   ;;  %s9396_s8 = inlined_call_operand.vmem [shape: f32[256,1], index: 8, kind: input, shape index: {}]   ;;  %s9397_s9 = inlined_call_operand.vmem [shape: bf16[128,128], index: 9, kind: input, shape index: {}]   ;;  %s9398_s10 = inlined_call_operand.vmem [shape: f32[1,128], index: 10, kind: input, shape index: {}]   ;;  %s9399_s11 = inlined_call_operand.vmem [shape: bf16[128,128], index: 11, kind: input, shape index: {}]   ;;  %s9400_s12 = inlined_call_operand.vmem [shape: f32[1,128], index: 12, kind: input, shape index: {}]   ;;  %s9401_s13 = inlined_call_operand.vmem [shape: bf16[128,128], index: 13, kind: input, shape index: {}]   ;;  %s9402_s14 = inlined_call_operand.vmem [shape: f32[1,128], index: 14, kind: input, shape index: {}]   ;;  %s9403_s15 = inlined_call_operand.vmem [shape: f32[1,128], index: 15, kind: input, shape index: {}]   ;;  %s9404_s16 = inlined_call_operand.hbm [shape: f32[2,256,128], index: 16, kind: output, shape index: {}, may-alias: {0,16}]  }
   0x1   :  { %9419 = sst [smem:[#allocation29_spill]] %s9388_s0 }
   0x2   :  { %9420 = sst [smem:[#allocation30_spill]] %s9389_s1 }
   0x3   :  { %9421 = sst [smem:[#allocation31_spill]] %s9403_s15 }
   0x4   :  { %9422 = sst [smem:[#allocation32_spill]] %s9404_s16 }
   0x5   :  { %21 = vsyncpa [#allocation4], 0 }
   0x6   :  { %23 = vsyncpa [#allocation4 + $0x1], 0 }
   0x7   :  { %24 = vsyncpa [#allocation5], 0 }
   0x8   :  { %26 = vsyncpa [#allocation5 + $0x1], 0  ;;  %s7163_s21 = smov 0   ;;  %s7165_s22 = smov 0  }
   0x9   :  { %s7167_s23 = smov 0   ;;  %s7169_s24 = smov 0  }
   0xa LB: > { %9423 = sst [smem:[#allocation9_spill]] %s7055_s21  ;;  %s7184_s25 = sadd.s32 4294967295, %s7067_s24   ;;  %s7067_s24 = sphi %s7169_s24, %s9477_s24   ;;  %s7063_s23 = sphi %s7167_s23, %s9479_s23   ;;  %s7059_s22 = sphi %s7165_s22, %s9481_s22   ;;  %s7055_s21 = sphi %s7163_s21, %s9480_s21  }
   0xb   : > { %9424 = sst [smem:[#allocation10_spill]] %s7063_s23  ;;  %s5355_s26 = sadd.s32 4294967294, %s7067_s24  }
   0xc   : > { %9425 = sst [smem:[#allocation11_spill]] %s7184_s25  ;;  %s7188_s27 = sadd.s32 1, %s7067_s24  }
   0xd   : > { %9426 = sst [smem:[#allocation12_spill]] %s7188_s27  ;;  %s39_s28 = sadd.s32 1, %s7063_s23 }
   0xe   : > { %s36_s29 = ssub.s32 %s7067_s24, %s7188_s27  ;;  %p46_p0 = scmp.ne.s32.totalorder %s7063_s23, %s7059_s22 }
   0xf   : > { %p37_p1 = scmp.eq.s32.totalorder %s36_s29, 0  ;;  %p47_p2 = scmp.eq.s32.totalorder %s7067_s24, 0 }
  0x10   : > { %p52_p3 = scmp.ne.s32.totalorder %s7059_s22, %s7055_s21  ;;  %p53_p4 = scmp.eq.s32.totalorder %s7184_s25, 0 }
  0x11   : > { %s7200_s30 = scalar_select %p37_p1, %s7063_s23, %s39_s28  }
  0x12   : > { %p7202_p5 = por %p47_p2, %p46_p0  ;;  %p7206_p6 = por %p53_p4, %p52_p3 }
  0x13   : > { %9427 = sst [smem:[#allocation13_spill]] %s7200_s30  ;;  %p391_p7 = scmp.eq.s32.totalorder %s7184_s25, 1 }
  0x14   : > { %s9429_s17 = scalar_select %p7206_p6, 1, 0 }
  0x15   : > { %p397_p8 = scmp.eq.s32.totalorder %s5355_s26, 1  ;;  %p6651_p10 = scmp.lt.s32.totalorder %s7067_s24, 2 }
  0x16   : > { %p7213_p11 = por %p391_p7, %p46_p0  ;;  %s462_s20 = sand.u32 1, %s7063_s23  }
  0x17   : > { %p7217_p12 = por %p397_p8, %p52_p3  ;;  %s5771_s28 = sshll.u32 %s7067_s24, 12 }
  0x18   : > { %s9430_s18 = scalar_select %p7213_p11, 1, 0 }
  0x19   : > { %s9432_s19 = scalar_select %p7217_p12, 1, 0 }
  0x1a   : > { %9431 = sst [smem:[#allocation14_spill]] %s9430_s18  ;;  %s5358_s29 = sshll.u32 %s462_s20, 8 }
  0x1b   : > { %9433 = sst [smem:[#allocation15_spill]] %s9432_s19  ;;  %s466_s26 = scalar_lea.vmem [#allocation3], %s5358_s29 }
  0x1c   : > { %s9434_s21 = sld [smem:[#allocation29_spill]]  ;;  %s473_s25 = sshll.u32 %s466_s26, 4  ;;  %s7234_s25 = int_to_ptr.vmem [resolvable:$true] %s473_s25 }
  0x1d   : > { %p7230_p13 = pnand %p6651_p10, %p7202_p5  ;;  %s7236_s23 = scalar_lea.sflag [#allocation4], %s462_s20 }
  0x1f   : > { %p6977_p1 = pneg %p7230_p13 }
  0x22   : > { %s9435_s16 = smov %s9434_s21  ;;  %s7226_s15 = scalar_lea.hbm %s9434_s21, %s5771_s28 }
  0x23   : > { %s6975_s19 = scalar_lea.hbm %s7226_s15, 4096  ;;  %s6980_s30 = scalar_lea.hbm %s9435_s16, 8192 }
  0x24   : > { %p6976_p0 = scmp.ne.s32.totalorder %s7226_s15, %s6975_s19  ;;  %p6981_p4 = scmp.lt.s32.totalorder %s7226_s15, %s9435_s16 }
  0x25   : > { %p6982_p5 = scmp.lt.s32.totalorder %s6980_s30, %s6975_s19 }
  0x26   : > { %p6978_p2 = pnand %p6977_p1, %p6976_p0 }
  0x27   : > { %p6983_p7 = por %p6982_p5, %p6981_p4 }
  0x28   : > { %p6979_p3 = pneg %p6978_p2 }
  0x2a   : > { %p6984_p8 = pnand %p6983_p7, %p6979_p3 }
  0x2c   : > { %6987 = shalt.err (!%p6984_p8)
}
  0x2d   : > { %s6988_s20 = scalar_lea.vmem %s7234_s25, 4096  ;;  %s7069_s29 = smov [#allocation3]  }
  0x2e   : > { %p6989_p10 = scmp.ne.s32.totalorder %s7234_s25, %s6988_s20  ;;  %s6993_s26 = sshll.u32 %s7069_s29, 4  ;;  %s6994_s26 = int_to_ptr.vmem [resolvable:$false] %s6993_s26 }
  0x2f   : > { %s6995_s21 = scalar_lea.vmem %s6994_s26, 8192  ;;  %p6996_p2 = scmp.lt.s32.totalorder %s7234_s25, %s6994_s26 }
  0x30   : > { %p6991_p9 = pnand %p6989_p10, %p6977_p1  ;;  %p6997_p12 = scmp.lt.s32.totalorder %s6995_s21, %s6988_s20 }
  0x32   : > { %p6992_p0 = pneg %p6991_p9  ;;  %p6998_p11 = por %p6997_p12, %p6996_p2 }
  0x34   : > { %p6999_p6 = pnand %p6998_p11, %p6992_p0 }
  0x36   : > { %7002 = shalt.err (!%p6999_p6)
}
  0x37   : > { %s7070_s19 = smov 128   ;;  %s7071_s27 = smov 8  }
  0x38   : > { %6646 = dma.hbm_to_vmem [thread:$0]  (!%p7230_p13), %s7226_s15, 4096, %s7234_s25, %s7236_s23, %s7070_s19, %s7070_s19, %s7071_s27  }
  0x39   : > { %p5361_p9 = scmp.ge.s32.totalorder %s7067_s24, 1  ;;  %p481_p1 = scmp.lt.s32.totalorder %s7067_s24, 3 }
  0x3b   : > { %p482_p3 = pnand %p5361_p9, %p481_p1 }
  0x3d   : > { %485 = sbr.rel (%p482_p3) target bundleno = 1632 (0x660), region = 84 }
  0x42   : > { %s7260_s30 = sand.u32 1, %s7059_s22   ;;  %p9437_p6 = scmp.ne.s32.totalorder %s9429_s17, 0 }
  0x43   : > { %s5362_s0 = sshll.u32 %s7260_s30, 8  ;;  %s488_s28 = scalar_lea.sflag [#allocation4], %s7260_s30 }
  0x44   : > { %s7266_s20 = scalar_lea.vmem [#allocation3], %s5362_s0 }
  0x45   : > { %7046 = dma.done.wait (%p9437_p6), %s488_s28, 4096  }
  0x46   : > { %7048 = vsyncadd (%p9437_p6), %s488_s28, 4294963200  ;;  %v7072_v0 = vmov 0   ;;  %v1224_v1 = vld [vmem:[%s9395_s7 + $0x10] sm:$0xff]  ;;  %v1222_v2 = vld [vmem:[%s9395_s7] sm:$0xff]  ;;  %s9438_s1 = sld [smem:[#allocation30_spill]]  ;;  %vm1020_vm1 = vcmask 1040384  }
  0x47   : > { %6693 = vset.pattern.permute.xlu1 %v7072_v0  ;;  %1214 = vst [vmem:[#allocation2] sm:$0xff] %v7072_v0  ;;  %1215 = vst [vmem:[#allocation2 + $0x8] sm:$0xf] %v7072_v0  ;;  %6692 = vset.pattern.permute.xlu0 %v7072_v0  ;;  %v1225_v4 = vld [vmem:[%s9395_s7 + $0x18] sm:$0xff]  ;;  %v1223_v5 = vld [vmem:[%s9395_s7 + $0x8] sm:$0xff]  ;;  %vm1117_vm3 = vcmask 1046528  }
  0x48   : > { %1217 = vst [vmem:[#allocation2 + $0x14] sm:$0xf] %v7072_v0  ;;  %1219 = vst [vmem:[#allocation2 + $0x1a0] sm:$0xf] %v7072_v0  ;;  %1266 = vperm.xlu1 %6693, %v1224_v1   ;;  %1256 = vperm.xlu0 %6692, %v1222_v2   ;;  %v1227_v7 = vld [vmem:[%s9395_s7 + $0x28] sm:$0xff]  ;;  %v1226_v8 = vld [vmem:[%s9395_s7 + $0x20] sm:$0xff] }
  0x49   : > { %1221 = vst [vmem:[#allocation2 + $0x1ac] sm:$0xf] %v7072_v0  ;;  %v1229_v10 = vld [vmem:[%s9395_s7 + $0x38] sm:$0xff]  ;;  %v1228_v11 = vld [vmem:[%s9395_s7 + $0x30] sm:$0xff]  ;;  %v1231_v13 = vld [vmem:[%s9395_s7 + $0x48] sm:$0xff]  ;;  %s9467_s17 = sld [smem:[#allocation31_spill]] }
  0x4a   : > { %v1230_v14 = vld [vmem:[%s9395_s7 + $0x40] sm:$0xff]  ;;  %v541_v16 = vld [vmem:[%s7266_s20] sm:$0xff]  ;;  %v542_v17 = vld [vmem:[%s7266_s20 + $0x8] sm:$0xff]  ;;  %s9217_s29 = scalar_lea.vmem [#allocation6], %s5362_s0  ;;  %s9468_s0 = sld [smem:[#allocation11_spill]] }
  0x4b   : > { %v573_v18 = vpack.c.bf16 %v542_v17, %v541_v16  ;;  %v1233_v19 = vld [vmem:[%s9395_s7 + $0x58] sm:$0xff]  ;;  %v1232_v20 = vld [vmem:[%s9395_s7 + $0x50] sm:$0xff]  ;;  %v1235_v22 = vld [vmem:[%s9395_s7 + $0x68] sm:$0xff]  ;;  %s9469_s26 = sld [smem:[#allocation14_spill]]  ;;  %s5282_s19 = sshll.u32 %s9217_s29, 4  ;;  %s9343_s19 = int_to_ptr.vmem [resolvable:$true] %s5282_s19 }
  0x4c   : > { %v6694_v3 = vld [vmem:[%s9438_s1 + $0x38] sm:$0xff]   ;;  %v6695_v6 = vld [vmem:[%s9438_s1 + $0x30] sm:$0xff]   ;;  %1271 = vperm.xlu1 %6693, %v1225_v4   ;;  %1261 = vperm.xlu0 %6692, %v1223_v5   ;;  %v6696_v9 = vld [vmem:[%s9438_s1 + $0x28] sm:$0xff]   ;;  %s9470_s15 = sld [smem:[#allocation32_spill]]  ;;  %s7003_s18 = scalar_lea.vmem %s9343_s19, 4096 }
  0x4d   : > { %6343 = vmatprep.subr.bf16.mxu0 %v6694_v3  ;;  %v6697_v12 = vld [vmem:[%s9438_s1 + $0x20] sm:$0xff]   ;;  %v6698_v15 = vld [vmem:[%s9438_s1 + $0x18] sm:$0xff]   ;;  %v6699_v21 = vld [vmem:[%s9438_s1 + $0x10] sm:$0xff]   ;;  %6359 = vmatprep.mubr.bf16.mxu0 %v573_v18  ;;  %p7004_p11 = scmp.ne.s32.totalorder %s9343_s19, %s7003_s18 }
  0x4e   : > { %6344 = vmatpush3.bf16.msra.mxu0 %v6694_v3  ;;  %v1234_v23 = vld [vmem:[%s9395_s7 + $0x60] sm:$0xff]  ;;  %v6700_v24 = vld [vmem:[%s9438_s1 + $0x8] sm:$0xff]   ;;  %v1237_v25 = vld [vmem:[%s9395_s7 + $0x78] sm:$0xff] }
  0x4f   : > { %6345 = vmatprep.subr.bf16.mxu0 %v6695_v6  ;;  %v1236_v26 = vld [vmem:[%s9395_s7 + $0x70] sm:$0xff]  ;;  %v6701_v27 = vld [vmem:[%s9438_s1] sm:$0xff]   ;;  %v544_v29 = vld [vmem:[%s7266_s20 + $0x18] sm:$0xff] }
  0x50   : > { %1281 = vperm.xlu1 %6693, %v1227_v7   ;;  %1276 = vperm.xlu0 %6692, %v1226_v8   ;;  %v543_v28 = vld [vmem:[%s7266_s20 + $0x10] sm:$0xff]  ;;  %v545_v30 = vld [vmem:[%s7266_s20 + $0x20] sm:$0xff]  ;;  %v546_v31 = vld [vmem:[%s7266_s20 + $0x28] sm:$0xff]  ;;  %s5868_s21 = sshll.u32 %s9468_s0, 12 }
  0x51   : > { %v1239_v32 = vld [vmem:[%s9395_s7 + $0x88] sm:$0xff]  ;;  %v1238_v33 = vld [vmem:[%s9395_s7 + $0x80] sm:$0xff]  ;;  %v574_v34 = vpack.c.bf16 %v544_v29, %v543_v28  ;;  %v575_v35 = vpack.c.bf16 %v546_v31, %v545_v30  ;;  %v1241_v36 = vld [vmem:[%s9395_s7 + $0x98] sm:$0xff]  ;;  %p9471_p12 = scmp.ne.s32.totalorder %s9469_s26, 0 }
  0x52   : > { %6346 = vmatpush3.bf16.msra.mxu0 %v6695_v6  ;;  %v1240_v37 = vld [vmem:[%s9395_s7 + $0x90] sm:$0xff]  ;;  %v547_v38 = vld [vmem:[%s7266_s20 + $0x30] sm:$0xff]  ;;  %v548_v39 = vld [vmem:[%s7266_s20 + $0x38] sm:$0xff]  ;;  %s9341_s23 = scalar_lea.hbm %s9470_s15, %s5868_s21 }
  0x53   : > { %6347 = vmatprep.subr.bf16.mxu0 %v6696_v9  ;;  %v549_v40 = vld [vmem:[%s7266_s20 + $0x40] sm:$0xff]  ;;  %v550_v41 = vld [vmem:[%s7266_s20 + $0x48] sm:$0xff]  ;;  %v1243_v42 = vld [vmem:[%s9395_s7 + $0xa8] sm:$0xff]  ;;  %v576_v44 = vpack.c.bf16 %v548_v39, %v547_v38  ;;  %p7005_p13 = pnand %p7004_p11, %p9471_p12 }
  0x54   : > { %1291 = vperm.xlu1 %6693, %v1229_v10   ;;  %1286 = vperm.xlu0 %6692, %v1228_v11   ;;  %v1242_v43 = vld [vmem:[%s9395_s7 + $0xa0] sm:$0xff]  ;;  %v1245_v45 = vld [vmem:[%s9395_s7 + $0xb8] sm:$0xff]  ;;  %v1244_v46 = vld [vmem:[%s9395_s7 + $0xb0] sm:$0xff]  ;;  %v577_v47 = vpack.c.bf16 %v550_v41, %v549_v40 }
  0x55   : > { %v551_v48 = vld [vmem:[%s7266_s20 + $0x50] sm:$0xff]  ;;  %v552_v49 = vld [vmem:[%s7266_s20 + $0x58] sm:$0xff]  ;;  %v553_v50 = vld [vmem:[%s7266_s20 + $0x60] sm:$0xff]  ;;  %p7006_p4 = pneg %p7005_p13 }
  0x56   : > { %6348 = vmatpush3.bf16.msra.mxu0 %v6696_v9  ;;  %v554_v51 = vld [vmem:[%s7266_s20 + $0x68] sm:$0xff]  ;;  %v1247_v52 = vld [vmem:[%s9395_s7 + $0xc8] sm:$0xff]  ;;  %v1246_v53 = vld [vmem:[%s9395_s7 + $0xc0] sm:$0xff]  ;;  %v578_v54 = vpack.c.bf16 %v552_v49, %v551_v48 }
  0x57   : > { %6349 = vmatprep.subr.bf16.mxu0 %v6697_v12  ;;  %v1249_v55 = vld [vmem:[%s9395_s7 + $0xd8] sm:$0xff]  ;;  %v1248_v56 = vld [vmem:[%s9395_s7 + $0xd0] sm:$0xff]  ;;  %v579_v57 = vpack.c.bf16 %v554_v51, %v553_v50  ;;  %v555_v58 = vld [vmem:[%s7266_s20 + $0x70] sm:$0xff] }
  0x58   : > { %1301 = vperm.xlu1 %6693, %v1231_v13   ;;  %1296 = vperm.xlu0 %6692, %v1230_v14   ;;  %v556_v59 = vld [vmem:[%s7266_s20 + $0x78] sm:$0xff]  ;;  %v557_v60 = vld [vmem:[%s7266_s20 + $0x80] sm:$0xff]  ;;  %v558_v61 = vld [vmem:[%s7266_s20 + $0x88] sm:$0xff] }
  0x59   : > { %v1251_v62 = vld [vmem:[%s9395_s7 + $0xe8] sm:$0xff]  ;;  %v1250_v63 = vld [vmem:[%s9395_s7 + $0xe0] sm:$0xff]  ;;  %v580_v0 = vpack.c.bf16 %v556_v59, %v555_v58  ;;  %v1253_v1 = vld [vmem:[%s9395_s7 + $0xf8] sm:$0xff]  ;;  %v581_v3 = vpack.c.bf16 %v558_v61, %v557_v60 }
  0x5a   : > { %6350 = vmatpush3.bf16.msra.mxu0 %v6697_v12  ;;  %v1252_v2 = vld [vmem:[%s9395_s7 + $0xf0] sm:$0xff]  ;;  %v559_v4 = vld [vmem:[%s7266_s20 + $0x90] sm:$0xff]  ;;  %v560_v5 = vld [vmem:[%s7266_s20 + $0x98] sm:$0xff] }
  0x5b   : > { %6351 = vmatprep.subr.bf16.mxu0 %v6698_v15  ;;  %v561_v6 = vld [vmem:[%s7266_s20 + $0xa0] sm:$0xff]  ;;  %v562_v7 = vld [vmem:[%s7266_s20 + $0xa8] sm:$0xff]  ;;  %v1767_v8 = vld [vmem:[%s9396_s8 + $0x8] sm:$0xff]  ;;  %v582_v10 = vpack.c.bf16 %v560_v5, %v559_v4 }
  0x5c   : > { %1311 = vperm.xlu1 %6693, %v1233_v19   ;;  %1306 = vperm.xlu0 %6692, %v1232_v20   ;;  %v1766_v9 = vld [vmem:[%s9396_s8] sm:$0xff]  ;;  %v1769_v11 = vld [vmem:[%s9396_s8 + $0x18] sm:$0xff]  ;;  %v1768_v12 = vld [vmem:[%s9396_s8 + $0x10] sm:$0xff]  ;;  %v583_v13 = vpack.c.bf16 %v562_v7, %v561_v6 }
  0x5d   : > { %v563_v14 = vld [vmem:[%s7266_s20 + $0xb0] sm:$0xff]  ;;  %v565_v16 = vld [vmem:[%s7266_s20 + $0xc0] sm:$0xff]  ;;  %v566_v17 = vld [vmem:[%s7266_s20 + $0xc8] sm:$0xff] }
  0x5e   : > { %6352 = vmatpush3.bf16.msra.mxu0 %v6698_v15  ;;  %v564_v15 = vld [vmem:[%s7266_s20 + $0xb8] sm:$0xff]  ;;  %v1770_v19 = vld [vmem:[%s9396_s8 + $0x20] sm:$0xff]  ;;  %v1777_v31 = vld [vmem:[%s9396_s8 + $0x58] sm:$0xff] }
  0x5f   : > { %6353 = vmatprep.subr.bf16.mxu0 %v6699_v21  ;;  %v1771_v18 = vld [vmem:[%s9396_s8 + $0x28] sm:$0xff]  ;;  %v584_v20 = vpack.c.bf16 %v564_v15, %v563_v14  ;;  %v1774_v29 = vld [vmem:[%s9396_s8 + $0x40] sm:$0xff]  ;;  %v1781_v39 = vld [vmem:[%s9396_s8 + $0x78] sm:$0xff] }
  0x60   : > { %1321 = vperm.xlu1 %6693, %v1235_v22   ;;  %1316 = vperm.xlu0 %6692, %v1234_v23   ;;  %v1772_v22 = vld [vmem:[%s9396_s8 + $0x30] sm:$0xff]  ;;  %v585_v23 = vpack.c.bf16 %v566_v17, %v565_v16  ;;  %v1775_v28 = vld [vmem:[%s9396_s8 + $0x48] sm:$0xff]  ;;  %v1786_v49 = vld [vmem:[%s9396_s8 + $0xa0] sm:$0xff] }
  0x61   : > { %v1780_v40 = vld [vmem:[%s9396_s8 + $0x70] sm:$0xff]  ;;  %v1783_v41 = vld [vmem:[%s9396_s8 + $0x88] sm:$0xff]  ;;  %v1790_v58 = vld [vmem:[%s9396_s8 + $0xc0] sm:$0xff] }
  0x62   : > { %6354 = vmatpush3.bf16.msra.mxu0 %v6699_v21  ;;  %v1773_v21 = vld [vmem:[%s9396_s8 + $0x38] sm:$0xff]  ;;  %v1787_v48 = vld [vmem:[%s9396_s8 + $0xa8] sm:$0xff]  ;;  %v6704_v50 = vld [vmem:[%s9392_s4 + $0x130] sm:$0xff]  }
  0x63   : > { %6355 = vmatprep.subr.bf16.mxu0 %v6700_v24  ;;  %v6706_v51 = vld [vmem:[%s9392_s4 + $0xf0] sm:$0xff]   ;;  %v6711_v59 = vld [vmem:[%s9392_s4 + $0x168] sm:$0xff]   ;;  %v6710_v60 = vld [vmem:[%s9392_s4 + $0x120] sm:$0xff]  }
  0x64   : > { %1331 = vperm.xlu1 %6693, %v1237_v25   ;;  %1326 = vperm.xlu0 %6692, %v1236_v26   ;;  %v568_v25 = vld [vmem:[%s7266_s20 + $0xd8] sm:$0xff]  ;;  %v569_v26 = vld [vmem:[%s7266_s20 + $0xe0] sm:$0xff]  ;;  %v1793_v61 = vld [vmem:[%s9396_s8 + $0xd8] sm:$0xff] }
  0x65   : > { %v1797_v4 = vld [vmem:[%s9396_s8 + $0xf8] sm:$0xff]  ;;  %v1796_v5 = vld [vmem:[%s9396_s8 + $0xf0] sm:$0xff]  ;;  %v6723_v14 = vld [vmem:[%s9392_s4 + $0x148] sm:$0xff]  }
  0x66   : > { %6356 = vmatpush3.bf16.msra.mxu0 %v6700_v24  ;;  %v567_v24 = vld [vmem:[%s7266_s20 + $0xd0] sm:$0xff]  ;;  %v6715_v6 = vld [vmem:[%s9392_s4 + $0xd8] sm:$0xff]  }
  0x67   : > { %6357 = vmatprep.subr.bf16.mxu0 %v6701_v27  ;;  %v586_v30 = vpack.c.bf16 %v568_v25, %v567_v24  ;;  %v6717_v7 = vld [vmem:[%s9392_s4 + $0x158] sm:$0xff]   ;;  %v6722_v15 = vld [vmem:[%s9392_s4 + $0x100] sm:$0xff]  }
  0x68   : > { %1341 = vperm.xlu1 %6693, %v1239_v32   ;;  %1336 = vperm.xlu0 %6692, %v1238_v33   ;;  %v1776_v32 = vld [vmem:[%s9396_s8 + $0x50] sm:$0xff]  ;;  %v6724_v16 = vld [vmem:[%s9392_s4 + $0xc0] sm:$0xff]   ;;  %v6730_v25 = vld [vmem:[%s9392_s4 + $0x78] sm:$0xff]  }
  0x6a   : > { %6358 = vmatpush3.bf16.msra.mxu0 %v6701_v27  ;;  %v570_v27 = vld [vmem:[%s7266_s20 + $0xe8] sm:$0xff] }
  0x6b   : > { %v587_v33 = vpack.c.bf16 %v570_v27, %v569_v26 }
  0x6c   : > { %1351 = vperm.xlu1 %6693, %v1241_v36   ;;  %1346 = vperm.xlu0 %6692, %v1240_v37   ;;  %v1779_v36 = vld [vmem:[%s9396_s8 + $0x68] sm:$0xff]  ;;  %v1778_v37 = vld [vmem:[%s9396_s8 + $0x60] sm:$0xff] }
  0x6d   : > { %6360 = vmatmul.mubr.bf16.vlgmr.msra.gmra.mxu0 %v574_v34  ;;  %v571_v34 = vld [vmem:[%s7266_s20 + $0xf0] sm:$0xff] }
  0x6e   : > { %6363 = vmatprep.mubr.bf16.mxu0 %v575_v35  ;;  %v572_v35 = vld [vmem:[%s7266_s20 + $0xf8] sm:$0xff] }
  0x6f   : > { %v588_v38 = vpack.c.bf16 %v572_v35, %v571_v34 }
  0x70   : > { %1361 = vperm.xlu1 %6693, %v1243_v42   ;;  %1356 = vperm.xlu0 %6692, %v1242_v43   ;;  %v1782_v42 = vld [vmem:[%s9396_s8 + $0x80] sm:$0xff]  ;;  %v1785_v43 = vld [vmem:[%s9396_s8 + $0x98] sm:$0xff] }
  0x74   : > { %1371 = vperm.xlu1 %6693, %v1245_v45   ;;  %1366 = vperm.xlu0 %6692, %v1244_v46   ;;  %v6702_v45 = vld [vmem:[%s9392_s4 + $0x138] sm:$0xff]  }
  0x75   : > { %6364 = vmatmul.mubr.bf16.gmra.mxu0 %v576_v44  ;;  %v1784_v44 = vld [vmem:[%s9396_s8 + $0x90] sm:$0xff]  ;;  %v6703_v46 = vld [vmem:[%s9392_s4 + $0xf8] sm:$0xff]   ;;  %5893 = vmatprep.subr.bf16.mxu1 %v6702_v45 }
  0x76   : > { %6367 = vmatprep.mubr.bf16.mxu0 %v577_v47  ;;  %5894 = vmatpush3.bf16.msra.mxu1 %v6703_v46  ;;  %v6705_v47 = vld [vmem:[%s9392_s4 + $0x178] sm:$0xff]   ;;  %v7654_v46 = vld [vmem:[%s9390_s2] ss:$0 sm:$0xff] }
  0x77   : > { %5895 = vmatprep.subr.bf16.mxu1 %v6704_v50  ;;  %6391 = vmatprep.subr.bf16.mxu0 %v6705_v47 }
  0x78   : > { %1381 = vperm.xlu1 %6693, %v1247_v52   ;;  %1376 = vperm.xlu0 %6692, %v1246_v53   ;;  %v1789_v52 = vld [vmem:[%s9396_s8 + $0xb8] sm:$0xff]  ;;  %v1788_v53 = vld [vmem:[%s9396_s8 + $0xb0] sm:$0xff] }
  0x79   : > { %6392 = vmatpush3.bf16.msra.mxu0 %v6705_v47 }
  0x7a   : > { %5896 = vmatpush3.bf16.msra.mxu1 %v6706_v51 }
  0x7c   : > { %1391 = vperm.xlu1 %6693, %v1249_v55   ;;  %1386 = vperm.xlu0 %6692, %v1248_v56   ;;  %v6707_v55 = vld [vmem:[%s9392_s4 + $0x128] sm:$0xff]  }
  0x7d   : > { %6368 = vmatmul.mubr.bf16.gmra.mxu0 %v578_v54  ;;  %v6708_v54 = vld [vmem:[%s9392_s4 + $0x170] sm:$0xff]   ;;  %v6709_v56 = vld [vmem:[%s9392_s4 + $0xe8] sm:$0xff]   ;;  %5897 = vmatprep.subr.bf16.mxu1 %v6707_v55 }
  0x7e   : > { %6371 = vmatprep.mubr.bf16.mxu0 %v579_v57  ;;  %6393 = vmatprep.subr.bf16.mxu0 %v6708_v54  ;;  %v1791_v57 = vld [vmem:[%s9396_s8 + $0xc8] sm:$0xff] }
  0x7f   : > { %6394 = vmatpush3.bf16.msra.mxu0 %v6708_v54  ;;  %5898 = vmatpush3.bf16.msra.mxu1 %v6709_v56 }
  0x80   : > { %1401 = vperm.xlu1 %6693, %v1251_v62   ;;  %1396 = vperm.xlu0 %6692, %v1250_v63   ;;  %v1792_v62 = vld [vmem:[%s9396_s8 + $0xd0] sm:$0xff]  ;;  %v6712_v63 = vld [vmem:[%s9392_s4 + $0xe0] sm:$0xff]  }
  0x81   : > { %6395 = vmatprep.subr.bf16.mxu0 %v6711_v59  ;;  %5899 = vmatprep.subr.bf16.mxu1 %v6710_v60 }
  0x83   : > { %6396 = vmatpush3.bf16.msra.mxu0 %v6711_v59  ;;  %5900 = vmatpush3.bf16.msra.mxu1 %v6712_v63 }
  0x84   : > { %1411 = vperm.xlu1 %6693, %v1253_v1   ;;  %1406 = vperm.xlu0 %6692, %v1252_v2   ;;  %v1794_v1 = vld [vmem:[%s9396_s8 + $0xe0] sm:$0xff] }
  0x85   : > { %6372 = vmatmul.mubr.bf16.gmra.mxu0 %v580_v0  ;;  %v1795_v0 = vld [vmem:[%s9396_s8 + $0xe8] sm:$0xff]  ;;  %v6714_v2 = vld [vmem:[%s9392_s4 + $0x160] sm:$0xff]  }
  0x86   : > { %6375 = vmatprep.mubr.bf16.mxu0 %v581_v3  ;;  %v6713_v3 = vld [vmem:[%s9392_s4 + $0x118] sm:$0xff]   ;;  %6397 = vmatprep.subr.bf16.mxu0 %v6714_v2 }
  0x87   : > { %5901 = vmatprep.subr.bf16.mxu1 %v6713_v3  ;;  %6398 = vmatpush3.bf16.msra.mxu0 %v6714_v2 }
  0x88   : > { %1805 = vperm.xlu1 %6693, %v1767_v8   ;;  %1800 = vperm.xlu0 %6692, %v1766_v9   ;;  %v6716_v8 = vld [vmem:[%s9392_s4 + $0x110] sm:$0xff]  }
  0x89   : > { %5902 = vmatpush3.bf16.msra.mxu1 %v6715_v6  ;;  %6399 = vmatprep.subr.bf16.mxu0 %v6717_v7  ;;  %v6718_v9 = vld [vmem:[%s9392_s4 + $0xd0] sm:$0xff]  }
  0x8a   : > { %5903 = vmatprep.subr.bf16.mxu1 %v6716_v8 }
  0x8b   : > { %6400 = vmatpush3.bf16.msra.mxu0 %v6717_v7 }
  0x8c   : > { %1815 = vperm.xlu1 %6693, %v1769_v11   ;;  %1810 = vperm.xlu0 %6692, %v1768_v12   ;;  %v6719_v11 = vld [vmem:[%s9392_s4 + $0x108] sm:$0xff]  }
  0x8d   : > { %6376 = vmatmul.mubr.bf16.gmra.mxu0 %v582_v10  ;;  %5904 = vmatpush3.bf16.msra.mxu1 %v6718_v9  ;;  %v6720_v10 = vld [vmem:[%s9392_s4 + $0x150] sm:$0xff]   ;;  %v6721_v12 = vld [vmem:[%s9392_s4 + $0xc8] sm:$0xff]  }
  0x8e   : > { %6379 = vmatprep.mubr.bf16.mxu0 %v583_v13  ;;  %6401 = vmatprep.subr.bf16.mxu0 %v6720_v10 }
  0x8f   : > { %5905 = vmatprep.subr.bf16.mxu1 %v6719_v11  ;;  %6402 = vmatpush3.bf16.msra.mxu0 %v6720_v10 }
  0x90   : > { %1825 = vperm.xlu1 %6693, %v1771_v18   ;;  %1820 = vperm.xlu0 %6692, %v1770_v19   ;;  %v6728_v18 = vld [vmem:[%s9392_s4 + $0x140] sm:$0xff]  }
  0x91   : > { %5906 = vmatpush3.bf16.msra.mxu1 %v6721_v12  ;;  %6403 = vmatprep.subr.bf16.mxu0 %v6723_v14 }
  0x92   : > { %5907 = vmatprep.subr.bf16.mxu1 %v6722_v15 }
  0x93   : > { %6404 = vmatpush3.bf16.msra.mxu0 %v6723_v14 }
  0x94   : > { %1835 = vperm.xlu1 %6693, %v1773_v21   ;;  %1830 = vperm.xlu0 %6692, %v1772_v22  }
  0x95   : > { %6380 = vmatmul.mubr.bf16.gmra.mxu0 %v584_v20  ;;  %5908 = vmatpush3.bf16.msra.mxu1 %v6724_v16 }
  0x96   : > { %6383 = vmatprep.mubr.bf16.mxu0 %v585_v23  ;;  %6405 = vmatprep.subr.bf16.mxu0 %v6728_v18 }
  0x97   : > { %6406 = vmatpush3.bf16.msra.mxu0 %v6728_v18  ;;  %6623 = vmatprep.subr.bf16.mxu1 %v6730_v25 }
  0x98   : > { %1845 = vperm.xlu1 %6693, %v1775_v28   ;;  %1840 = vperm.xlu0 %6692, %v1774_v29  }
  0x99   : > { %6029 = vmatprep.subr.bf16.mxu0 %v6730_v25 }
  0x9c   : > { %1855 = vperm.xlu1 %6693, %v1777_v31   ;;  %1850 = vperm.xlu0 %6692, %v1776_v32  }
  0x9d   : > { %6384 = vmatmul.mubr.bf16.gmra.mxu0 %v586_v30 }
  0x9e   : > { %6387 = vmatprep.mubr.bf16.mxu0 %v587_v33 }
  0xa0   : > { %1865 = vperm.xlu1 %6693, %v1779_v36   ;;  %1860 = vperm.xlu0 %6692, %v1778_v37  }
  0xa4   : > { %1875 = vperm.xlu1 %6693, %v1781_v39   ;;  %1870 = vperm.xlu0 %6692, %v1780_v40  }
  0xa5   : > { %6388 = vmatmul.mubr.bf16.gmra.mxu0 %v588_v38 }
  0xa8   : > { %1885 = vperm.xlu1 %6693, %v1783_v41   ;;  %1880 = vperm.xlu0 %6692, %v1782_v42  }
  0xac   : > { %1895 = vperm.xlu1 %6693, %v1785_v43   ;;  %1890 = vperm.xlu0 %6692, %v1784_v44  }
  0xb0   : > { %1905 = vperm.xlu1 %6693, %v1787_v48   ;;  %1900 = vperm.xlu0 %6692, %v1786_v49   ;;  %v7661_v49 = vld [vmem:[%s9391_s3] ss:$0 sm:$0xff] }
  0xb4   : > { %1915 = vperm.xlu1 %6693, %v1789_v52   ;;  %1910 = vperm.xlu0 %6692, %v1788_v53  }
  0xb8   : > { %1925 = vperm.xlu1 %6693, %v1791_v57   ;;  %1920 = vperm.xlu0 %6692, %v1790_v58  }
  0xbc   : > { %1935 = vperm.xlu1 %6693, %v1793_v61   ;;  %1930 = vperm.xlu0 %6692, %v1792_v62  }
  0xc0   : > { %1945 = vperm.xlu1 %6693, %v1795_v0   ;;  %1940 = vperm.xlu0 %6692, %v1794_v1  }
  0xc3   : > { %v7580_v13 = vpop.permute.xlu0 %1256  ;;  %v7596_v19 = vpop.permute.xlu1 %1266 }
  0xc4   : > { %1955 = vperm.xlu1 %6693, %v1797_v4   ;;  %1950 = vperm.xlu0 %6692, %v1796_v5  }
  0xc7   : > { %v7591_v17 = vpop.permute.xlu0 %1261  ;;  %v7600_v21 = vpop.permute.xlu1 %1271 }
  0xcb   : > { %v7598_v20 = vpop.permute.xlu0 %1276  ;;  %v7604_v23 = vpop.permute.xlu1 %1281 }
  0xcf   : > { %v7602_v22 = vpop.permute.xlu0 %1286  ;;  %v7611_v26 = vpop.permute.xlu1 %1291 }
  0xd3   : > { %v7606_v24 = vpop.permute.xlu0 %1296  ;;  %v7615_v28 = vpop.permute.xlu1 %1301 }
  0xd7   : > { %v7613_v27 = vpop.permute.xlu0 %1306  ;;  %v7619_v30 = vpop.permute.xlu1 %1311 }
  0xdb   : > { %v7617_v29 = vpop.permute.xlu0 %1316  ;;  %v7623_v32 = vpop.permute.xlu1 %1321 }
  0xdf   : > { %v7621_v31 = vpop.permute.xlu0 %1326  ;;  %v7627_v34 = vpop.permute.xlu1 %1331 }
  0xe3   : > { %v7625_v33 = vpop.permute.xlu0 %1336  ;;  %v7631_v36 = vpop.permute.xlu1 %1341 }
  0xe7   : > { %v7629_v35 = vpop.permute.xlu0 %1346  ;;  %v7635_v38 = vpop.permute.xlu1 %1351 }
  0xeb   : > { %v7633_v37 = vpop.permute.xlu0 %1356  ;;  %v7639_v40 = vpop.permute.xlu1 %1361 }
  0xef   : > { %v7637_v39 = vpop.permute.xlu0 %1366  ;;  %v7643_v42 = vpop.permute.xlu1 %1371 }
  0xf3   : > { %v7641_v41 = vpop.permute.xlu0 %1376  ;;  %v7647_v44 = vpop.permute.xlu1 %1381 }
  0xf7   : > { %v7645_v43 = vpop.permute.xlu0 %1386  ;;  %v7656_v47 = vpop.permute.xlu1 %1391 }
  0xfb   : > { %v7649_v45 = vpop.permute.xlu0 %1396  ;;  %v7670_v59 = vpop.permute.xlu1 %1401 }
  0xff   : > { %v7664_v51 = vpop.permute.xlu0 %1406  ;;  %v7682_v25 = vpop.permute.xlu1 %1411 }
 0x103   : > { %v7673_v0 = vpop.permute.xlu0 %1800 }
 0x12d   : > { %v6361_v48 = vpop.f32.mrf.mxu0 }
 0x12e   : > { %v823_v50 = vmul.f32 %v6361_v48, %v7654_v46 }
 0x12f   : > { %v687_v52 = vpop.f32.mrf.mxu0 }
 0x130   : > { %v862_v53 = vadd.f32 %v7661_v49, %v823_v50  ;;  %v821_v54 = vmul.f32 %v7654_v46, %v687_v52 }
 0x131   : > { %v6362_v55 = vpop.f32.mrf.mxu0 }
 0x132   : > { %vm894_vm0 = vcmp.ge.f32.partialorder %v862_v53, 0.0  ;;  %v926_v56 = vmul.f32 0.001, %v862_v53  ;;  %v860_v57 = vadd.f32 %v7661_v49, %v821_v54  ;;  %v824_v58 = vmul.f32 %v6362_v55, %v7654_v46 }
 0x133   : > { %v690_v60 = vpop.f32.mrf.mxu0 }
 0x134   : > { %v958_v61 = vsel %vm894_vm0, %v862_v53, %v926_v56  ;;  %vm892_vm2 = vcmp.ge.f32.partialorder %v860_v57, 0.0  ;;  %v924_v62 = vmul.f32 0.001, %v860_v57  ;;  %v863_v63 = vadd.f32 %v7661_v49, %v824_v58 }
 0x135   : > { %v1024_v1 = vrot.slane %v958_v61, 7  ;;  %v5806_v2 = vpack.c.bf16 %v958_v61, %v958_v61  ;;  %v822_v3 = vmul.f32 %v7654_v46, %v690_v60  ;;  %v6365_v4 = vpop.f32.mrf.mxu0  ;;  %v1121_v8 = vrot.slane %v958_v61, 1 }
 0x136   : > { %v956_v5 = vsel %vm892_vm2, %v860_v57, %v924_v62  ;;  %vm895_vm4 = vcmp.ge.f32.partialorder %v863_v63, 0.0  ;;  %v927_v6 = vmul.f32 0.001, %v863_v63  ;;  %v827_v7 = vmul.f32 %v6365_v4, %v7654_v46  ;;  %v1811_v57 = vpop.permute.xlu0 %1810 }
 0x137   : > { %1736 = vst [vmem:[#allocation2 + $0x34] sm:$0xf] %v5806_v2  ;;  %v1021_v9 = vrot.slane %v956_v5, 7  ;;  %v5804_v10 = vpack.c.bf16 %v956_v5, %v956_v5  ;;  %v861_v11 = vadd.f32 %v7661_v49, %v822_v3  ;;  %v703_v12 = vpop.f32.mrf.mxu0  ;;  %v1118_v14 = vrot.slane %v956_v5, 1 }
 0x138   : > { %v7678_v15 = vsel %vm895_vm4, %v863_v63, %v927_v6  ;;  %v866_v16 = vadd.f32 %v7661_v49, %v827_v7  ;;  %v825_v18 = vmul.f32 %v7654_v46, %v703_v12 }
 0x139   : > { %v1116_v48 = vsel %vm1020_vm1, 0.0, %v1021_v9  ;;  %1734 = vst [vmem:[#allocation2 + $0x1c] sm:$0xf] %v5804_v10  ;;  %v9417_v50 = vrot.slane %v7678_v15, 7  ;;  %v9418_v52 = vrot.slane %v7678_v15, 1  ;;  %v5807_v53 = vpack.c.bf16 %v7678_v15, %v7678_v15  ;;  %v6366_v54 = vpop.f32.mrf.mxu0 }
 0x13a   : > { %v1414_v55 = vmul.f32 %v7580_v13, %v1116_v48  ;;  %vm893_vm5 = vcmp.ge.f32.partialorder %v861_v11, 0.0  ;;  %v925_v56 = vmul.f32 0.001, %v861_v11  ;;  %vm898_vm6 = vcmp.ge.f32.partialorder %v866_v16, 0.0 }
 0x13b   : > { %v1027_v58 = vsel %vm1020_vm1, %v1024_v1, %v9417_v50  ;;  %v1124_v60 = vsel %vm1117_vm3, %v1121_v8, %v9418_v52  ;;  %1737 = vst [vmem:[#allocation2 + $0x40] sm:$0xf] %v5807_v53  ;;  %v930_v61 = vmul.f32 0.001, %v866_v16  ;;  %v864_v62 = vadd.f32 %v7661_v49, %v825_v18  ;;  %v706_v63 = vpop.f32.mrf.mxu0  ;;  %v1806_v18 = vpop.permute.xlu1 %1805 }
 0x13c   : > { %v5772_v2 = vpack.c.bf16 %v1414_v55, %v1414_v55  ;;  %v1417_v13 = vmul.f32 %v7600_v21, %v1027_v58  ;;  %v1960_v3 = vmul.f32 %v1811_v57, %v1124_v60  ;;  %v957_v4 = vsel %vm893_vm5, %v861_v11, %v925_v56 }
 0x13d   : > { %v1022_v5 = vrot.slane %v957_v4, 7  ;;  %v1119_v6 = vrot.slane %v957_v4, 1  ;;  %v5805_v7 = vpack.c.bf16 %v957_v4, %v957_v4  ;;  %v7698_v10 = vsel %vm898_vm6, %v866_v16, %v930_v61  ;;  %v6369_v12 = vpop.f32.mrf.mxu0 }
 0x13e   : > { %1574 = vst [vmem:[#allocation2 + $0x18] sm:$0xf] %v5772_v2  ;;  %v5775_v48 = vpack.c.bf16 %v1417_v13, %v1417_v13  ;;  %v5838_v50 = vpack.c.bf16 %v1960_v3, %v1960_v3  ;;  %v1032_v53 = vrot.slane %v7698_v10, 7  ;;  %v1129_v52 = vrot.slane %v7698_v10, 1 }
 0x13f   : > { %v1023_v55 = vsel %vm1020_vm1, %v1021_v9, %v1022_v5  ;;  %v1025_v21 = vsel %vm1020_vm1, %v1022_v5, %v1024_v1  ;;  %v1120_v11 = vsel %vm1117_vm3, %v1118_v14, %v1119_v6  ;;  %v1122_v56 = vsel %vm1117_vm3, %v1119_v6, %v1121_v8  ;;  %1735 = vst [vmem:[#allocation2 + $0x28] sm:$0xf] %v5805_v7  ;;  %v719_v16 = vpop.f32.mrf.mxu0  ;;  %v7719_v6 = vpop.permute.xlu0 %1820 }
 0x140   : > { %1577 = vst [vmem:[#allocation2 + $0x3c] sm:$0xf] %v5775_v48  ;;  %2120 = vst [vmem:[#allocation2 + $0x38] sm:$0xf] %v5838_v50  ;;  %v1415_v57 = vmul.f32 %v7591_v17, %v1023_v55  ;;  %v1416_v58 = vmul.f32 %v7596_v19, %v1025_v21  ;;  %v1958_v60 = vmul.f32 %v7673_v0, %v1120_v11  ;;  %vm896_vm7 = vcmp.ge.f32.partialorder %v864_v62, 0.0  ;;  %v1816_v21 = vpop.permute.xlu1 %1815 }
 0x141   : > { %v1959_v61 = vmul.f32 %v1806_v18, %v1122_v56  ;;  %v5810_v9 = vpack.c.bf16 %v7698_v10, %v7698_v10  ;;  %v928_v1 = vmul.f32 0.001, %v864_v62  ;;  %v828_v14 = vmul.f32 %v6366_v54, %v7654_v46  ;;  %v6370_v2 = vpop.f32.mrf.mxu0 }
 0x142   : > { %v5773_v8 = vpack.c.bf16 %v1415_v57, %v1415_v57  ;;  %v5774_v13 = vpack.c.bf16 %v1416_v58, %v1416_v58  ;;  %v5836_v3 = vpack.c.bf16 %v1958_v60, %v1958_v60  ;;  %v826_v19 = vmul.f32 %v7654_v46, %v706_v63 }
 0x143   : > { %v5837_v4 = vpack.c.bf16 %v1959_v61, %v1959_v61  ;;  %1740 = vst [vmem:[#allocation2 + $0x64] sm:$0xf] %v5810_v9  ;;  %v7712_v50 = vsel %vm896_vm7, %v864_v62, %v928_v1  ;;  %v867_v17 = vadd.f32 %v7661_v49, %v828_v14  ;;  %v831_v0 = vmul.f32 %v6369_v12, %v7654_v46  ;;  %v7717_v5 = vpop.f32.mrf.mxu0 }
 0x144   : > { %1575 = vst [vmem:[#allocation2 + $0x24] sm:$0xf] %v5773_v8  ;;  %1576 = vst [vmem:[#allocation2 + $0x30] sm:$0xf] %v5774_v13  ;;  %v1028_v54 = vrot.slane %v7712_v50, 7  ;;  %v1125_v7 = vrot.slane %v7712_v50, 1  ;;  %v5808_v62 = vpack.c.bf16 %v7712_v50, %v7712_v50  ;;  %v829_v48 = vmul.f32 %v7654_v46, %v719_v16 }
 0x145   : > { %2118 = vst [vmem:[#allocation2 + $0x20] sm:$0xf] %v5836_v3  ;;  %2119 = vst [vmem:[#allocation2 + $0x2c] sm:$0xf] %v5837_v4  ;;  %vm899_vm8 = vcmp.ge.f32.partialorder %v867_v17, 0.0  ;;  %v865_v12 = vadd.f32 %v7661_v49, %v826_v19  ;;  %v870_v18 = vadd.f32 %v7661_v49, %v831_v0  ;;  %v7728_v55 = vpop.f32.mrf.mxu0  ;;  %v9439_v11 = vrot.slane %v7678_v15, 7  ;;  %v1831_v19 = vpop.permute.xlu0 %1830 }
 0x146   : > { %v931_v63 = vmul.f32 0.001, %v867_v17  ;;  %v9440_v57 = vrot.slane %v7678_v15, 1  ;;  %1738 = vst [vmem:[#allocation2 + $0x4c] sm:$0xf] %v5808_v62  ;;  %v868_v16 = vadd.f32 %v7661_v49, %v829_v48  ;;  %v832_v60 = vmul.f32 %v6370_v2, %v7654_v46 }
 0x147   : > { %v1029_v56 = vsel %vm1020_vm1, %v9439_v11, %v1028_v54  ;;  %vm897_vm9 = vcmp.ge.f32.partialorder %v865_v12, 0.0  ;;  %v7741_v14 = vpop.f32.mrf.mxu0  ;;  %v929_v3 = vmul.f32 0.001, %v865_v12  ;;  %vm902_vm10 = vcmp.ge.f32.partialorder %v870_v18, 0.0 }
 0x148   : > { %v1126_v58 = vsel %vm1117_vm3, %v9440_v57, %v1125_v7  ;;  %v1418_v61 = vmul.f32 %v7598_v20, %v1029_v56  ;;  %v7739_v1 = vsel %vm899_vm8, %v867_v17, %v931_v63  ;;  %v934_v2 = vmul.f32 0.001, %v870_v18 }
 0x149   : > { %v1961_v9 = vmul.f32 %v1816_v21, %v1126_v58  ;;  %v1034_v8 = vrot.slane %v7739_v1, 7  ;;  %v1131_v13 = vrot.slane %v7739_v1, 1  ;;  %v5811_v15 = vpack.c.bf16 %v7739_v1, %v7739_v1  ;;  %v7758_v11 = vpop.f32.mrf.mxu0 }
 0x14a   : > { %v5776_v4 = vpack.c.bf16 %v1418_v61, %v1418_v61  ;;  %v961_v0 = vsel %vm897_vm9, %v865_v12, %v929_v3  ;;  %vm900_vm11 = vcmp.ge.f32.partialorder %v868_v16, 0.0  ;;  %v7761_v58 = vsel %vm902_vm10, %v870_v18, %v934_v2  ;;  %v1826_v12 = vpop.permute.xlu1 %1825 }
 0x14b   : > { %v5839_v50 = vpack.c.bf16 %v1961_v9, %v1961_v9  ;;  %v1035_v20 = vsel %vm1020_vm1, %v1032_v53, %v1034_v8  ;;  %v1132_v17 = vsel %vm1117_vm3, %v1129_v52, %v1131_v13  ;;  %1741 = vst [vmem:[#allocation2 + $0x70] sm:$0xf] %v5811_v15  ;;  %v1030_v63 = vrot.slane %v961_v0, 7  ;;  %v6725_v56 = vld [vmem:[#allocation2 + $0x18] ss:$12 sps:$4 sm:$0xff]  }
 0x14c   : > { %1578 = vst [vmem:[#allocation2 + $0x48] sm:$0xf] %v5776_v4  ;;  %v1421_v62 = vmul.f32 %v7611_v26, %v1035_v20  ;;  %v1964_v48 = vmul.f32 %v1831_v19, %v1132_v17  ;;  %v1127_v21 = vrot.slane %v961_v0, 1  ;;  %v5809_v57 = vpack.c.bf16 %v961_v0, %v961_v0  ;;  %v6727_v15 = vld [vmem:[#allocation2 + $0x1c] ss:$12 sps:$4 sm:$0xff]  }
 0x14d   : > { %2121 = vst [vmem:[#allocation2 + $0x44] sm:$0xf] %v5839_v50  ;;  %v932_v61 = vmul.f32 0.001, %v868_v16  ;;  %v871_v9 = vadd.f32 %v7661_v49, %v832_v60  ;;  %v1031_v50 = vsel %vm1020_vm1, %v1028_v54, %v1030_v63  ;;  %v1033_v26 = vsel %vm1020_vm1, %v1030_v63, %v1032_v53  ;;  %v6729_v19 = vld [vmem:[#allocation2 + $0x20] ss:$12 sps:$4 sm:$0xff]   ;;  %2747 = vmatprep.mubr.bf16.mxu1 %v6727_v15  ;;  %v7790_v63 = vpop.permute.xlu0 %1840 }
 0x14e   : > { %v5779_v3 = vpack.c.bf16 %v1421_v62, %v1421_v62  ;;  %v5842_v4 = vpack.c.bf16 %v1964_v48, %v1964_v48  ;;  %v1128_v20 = vsel %vm1117_vm3, %v1125_v7, %v1127_v21  ;;  %v1130_v18 = vsel %vm1117_vm3, %v1127_v21, %v1129_v52  ;;  %1739 = vst [vmem:[#allocation2 + $0x58] sm:$0xf] %v5809_v57  ;;  %v6731_v54 = vld [vmem:[%s9392_s4 + $0x38] sm:$0xff]   ;;  %v7780_v52 = vpop.f32.mrf.mxu0 }
 0x14f   : > { %v1419_v2 = vmul.f32 %v7604_v23, %v1031_v50  ;;  %v1420_v60 = vmul.f32 %v7602_v22, %v1033_v26  ;;  %v1962_v53 = vmul.f32 %v7719_v6, %v1128_v20  ;;  %v1963_v17 = vmul.f32 %v1826_v12, %v1130_v18  ;;  %6407 = vmatprep.mubr.bf16.mxu0 %v6729_v19  ;;  %v6732_v22 = vld [vmem:[#allocation2 + $0x34] ss:$12 sps:$4 sm:$0xff]  }
 0x150   : > { %1581 = vst [vmem:[#allocation2 + $0x6c] sm:$0xf] %v5779_v3  ;;  %2124 = vst [vmem:[#allocation2 + $0x68] sm:$0xf] %v5842_v4  ;;  %v1040_v7 = vrot.slane %v7761_v58, 7  ;;  %v1137_v10 = vrot.slane %v7761_v58, 1  ;;  %2748 = vmatmul.mubr.bf16.vlgmr.msra.gmra.mxu1 %v6725_v56  ;;  %v5814_v48 = vpack.c.bf16 %v7761_v58, %v7761_v58  ;;  %v7788_v6 = vsel %vm900_vm11, %v868_v16, %v932_v61  ;;  %v1836_v4 = vpop.permute.xlu1 %1835  ;;  %v7817_v20 = vpop.f32.mrf.mxu0 }
 0x151   : > { %v6741_v23 = vld [vmem:[%s9392_s4 + $0x70] sm:$0xff]   ;;  %v5777_v0 = vpack.c.bf16 %v1419_v2, %v1419_v2  ;;  %v5778_v62 = vpack.c.bf16 %v1420_v60, %v1420_v60  ;;  %6631 = vmatpush3.bf16.msra.mxu1 %v6731_v54  ;;  %v5840_v21 = vpack.c.bf16 %v1962_v53, %v1962_v53  ;;  %v5841_v57 = vpack.c.bf16 %v1963_v17, %v1963_v17  ;;  %v7822_v2 = vld [vmem:[%s9392_s4 + $0x68] sm:$0xff]  }
 0x152   : > { %v1036_v56 = vrot.slane %v7788_v6, 7  ;;  %v1133_v15 = vrot.slane %v7788_v6, 1  ;;  %2755 = vmatprep.mubr.bf16.mxu1 %v6732_v22  ;;  %6624 = vmatprep.subr.bf16.mxu1 %v6741_v23  ;;  %v7797_v12 = vld [vmem:[%s9392_s4 + $0x30] sm:$0xff]   ;;  %1744 = vst [vmem:[#allocation2 + $0x94] sm:$0xf] %v5814_v48  ;;  %v5812_v16 = vpack.c.bf16 %v7788_v6, %v7788_v6  ;;  %vm903_vm12 = vcmp.ge.f32.partialorder %v871_v9, 0.0 }
 0x153   : > { %1579 = vst [vmem:[#allocation2 + $0x54] sm:$0xf] %v5777_v0  ;;  %1580 = vst [vmem:[#allocation2 + $0x60] sm:$0xf] %v5778_v62  ;;  %v935_v61 = vmul.f32 0.001, %v871_v9  ;;  %v830_v3 = vmul.f32 %v7654_v46, %v7717_v5  ;;  %v835_v19 = vmul.f32 %v7728_v55, %v7654_v46  ;;  %v833_v5 = vmul.f32 %v7654_v46, %v7741_v14 }
 0x154   : > { %2122 = vst [vmem:[#allocation2 + $0x50] sm:$0xf] %v5840_v21  ;;  %2123 = vst [vmem:[#allocation2 + $0x5c] sm:$0xf] %v5841_v57  ;;  %v1037_v50 = vsel %vm1020_vm1, %v1034_v8, %v1036_v56  ;;  %v1134_v26 = vsel %vm1117_vm3, %v1131_v13, %v1133_v15  ;;  %v6734_v18 = vld [vmem:[#allocation2 + $0x38] ss:$12 sps:$4 sm:$0xff]   ;;  %v1851_v21 = vpop.permute.xlu0 %1850 }
 0x155   : > { %v1422_v8 = vmul.f32 %v7606_v24, %v1037_v50  ;;  %1742 = vst [vmem:[#allocation2 + $0x7c] sm:$0xf] %v5812_v16  ;;  %v1965_v1 = vmul.f32 %v1836_v4, %v1134_v26  ;;  %v7826_v13 = vsel %vm903_vm12, %v871_v9, %v935_v61  ;;  %v869_v55 = vadd.f32 %v7661_v49, %v830_v3  ;;  %v6736_v24 = vld [vmem:[#allocation2 + $0x30] ss:$12 sps:$4 sm:$0xff]   ;;  %v6755_v9 = vld [vmem:[%s9392_s4 + $0x28] sm:$0xff]   ;;  %v7842_v22 = vld [vmem:[%s9392_s4 + $0x60] sm:$0xff]   ;;  %v7854_v3 = vpop.f32.mrf.mxu0 }
 0x156   : > { %6632 = vmatpush3.bf16.msra.mxu1 %v7797_v12  ;;  %v1042_v14 = vrot.slane %v7826_v13, 7  ;;  %v1139_v60 = vrot.slane %v7826_v13, 1  ;;  %v5815_v53 = vpack.c.bf16 %v7826_v13, %v7826_v13  ;;  %v874_v17 = vadd.f32 %v7661_v49, %v835_v19  ;;  %6408 = vmatmul.mubr.bf16.vlgmr.msra.gmra.mxu0 %v6734_v18 }
 0x157   : > { %6625 = vmatprep.subr.bf16.mxu1 %v7822_v2  ;;  %v5780_v0 = vpack.c.bf16 %v1422_v8, %v1422_v8  ;;  %v5843_v62 = vpack.c.bf16 %v1965_v1, %v1965_v1  ;;  %vm901_vm13 = vcmp.ge.f32.partialorder %v869_v55, 0.0  ;;  %v933_v48 = vmul.f32 0.001, %v869_v55  ;;  %6030 = vmatpush3.bf16.msra.mxu0 %v6731_v54 }
 0x158   : > { %v1043_v57 = vsel %vm1020_vm1, %v1040_v7, %v1042_v14  ;;  %v1140_v16 = vsel %vm1117_vm3, %v1137_v10, %v1139_v60  ;;  %1745 = vst [vmem:[#allocation2 + $0xa0] sm:$0xf] %v5815_v53  ;;  %vm906_vm14 = vcmp.ge.f32.partialorder %v874_v17, 0.0  ;;  %v938_v61 = vmul.f32 0.001, %v874_v17  ;;  %2756 = vmatmul.mubr.bf16.gmra.mxu1 %v6736_v24  ;;  %6031 = vmatprep.subr.bf16.mxu0 %v6741_v23 }
 0x159   : > { %1582 = vst [vmem:[#allocation2 + $0x78] sm:$0xf] %v5780_v0  ;;  %2125 = vst [vmem:[#allocation2 + $0x74] sm:$0xf] %v5843_v62  ;;  %v1425_v54 = vmul.f32 %v7619_v30, %v1043_v57  ;;  %v1968_v4 = vmul.f32 %v1851_v21, %v1140_v16  ;;  %v965_v50 = vsel %vm901_vm13, %v869_v55, %v933_v48  ;;  %v6737_v53 = vld [vmem:[#allocation2 + $0x4c] ss:$12 sps:$4 sm:$0xff]   ;;  %v1846_v55 = vpop.permute.xlu1 %1845  ;;  %v6378_v21 = vpop.f32.mrf.mxu0 }
 0x15a   : > { %v872_v26 = vadd.f32 %v7661_v49, %v833_v5  ;;  %6633 = vmatpush3.bf16.msra.mxu1 %v6755_v9  ;;  %v1038_v19 = vrot.slane %v965_v50, 7  ;;  %v1135_v18 = vrot.slane %v965_v50, 1  ;;  %v5813_v8 = vpack.c.bf16 %v965_v50, %v965_v50  ;;  %2763 = vmatprep.mubr.bf16.mxu1 %v6737_v53  ;;  %v6744_v50 = vld [vmem:[#allocation2 + $0x64] ss:$12 sps:$4 sm:$0xff]  }
 0x15b   : > { %v7859_v1 = vsel %vm906_vm14, %v874_v17, %v938_v61  ;;  %6626 = vmatprep.subr.bf16.mxu1 %v7842_v22  ;;  %v5783_v24 = vpack.c.bf16 %v1425_v54, %v1425_v54  ;;  %v5846_v23 = vpack.c.bf16 %v1968_v4, %v1968_v4  ;;  %6032 = vmatpush3.bf16.msra.mxu0 %v7797_v12  ;;  %v6735_v12 = vld [vmem:[#allocation2 + $0x50] ss:$12 sps:$4 sm:$0xff]   ;;  %v6742_v61 = vld [vmem:[#allocation2 + $0x48] ss:$12 sps:$4 sm:$0xff]  }
 0x15c   : > { %v1048_v0 = vrot.slane %v7859_v1, 7  ;;  %v1145_v30 = vrot.slane %v7859_v1, 1  ;;  %v1039_v5 = vsel %vm1020_vm1, %v1036_v56, %v1038_v19  ;;  %v1041_v17 = vsel %vm1020_vm1, %v1038_v19, %v1040_v7  ;;  %1743 = vst [vmem:[#allocation2 + $0x88] sm:$0xf] %v5813_v8  ;;  %v6767_v56 = vld [vmem:[%s9392_s4 + $0x20] sm:$0xff]   ;;  %6033 = vmatprep.subr.bf16.mxu0 %v7822_v2  ;;  %6411 = vmatprep.mubr.bf16.mxu0 %v6735_v12  ;;  %v7898_v8 = vpop.f32.mrf.mxu0 }
 0x15d   : > { %v1136_v62 = vsel %vm1117_vm3, %v1133_v15, %v1135_v18  ;;  %v1138_v48 = vsel %vm1117_vm3, %v1135_v18, %v1137_v10  ;;  %1585 = vst [vmem:[#allocation2 + $0x9c] sm:$0xf] %v5783_v24  ;;  %2128 = vst [vmem:[#allocation2 + $0x98] sm:$0xf] %v5846_v23  ;;  %v1423_v7 = vmul.f32 %v7615_v28, %v1039_v5  ;;  %vm904_vm15 = vcmp.ge.f32.partialorder %v872_v26, 0.0 }
 0x15e   : > { %v1424_v6 = vmul.f32 %v7613_v27, %v1041_v17  ;;  %v1966_v15 = vmul.f32 %v7790_v63, %v1136_v62  ;;  %v1967_v57 = vmul.f32 %v1846_v55, %v1138_v48  ;;  %v5818_v58 = vpack.c.bf16 %v7859_v1, %v7859_v1  ;;  %6634 = vmatpush3.bf16.msra.mxu1 %v6767_v56  ;;  %v6771_v63 = vld [vmem:[%s9392_s4 + $0x58] sm:$0xff]   ;;  %v1856_v62 = vpop.permute.xlu1 %1855  ;;  %v7935_v13 = vpop.f32.mrf.mxu0 }
 0x15f   : > { %v936_v10 = vmul.f32 0.001, %v872_v26  ;;  %v836_v16 = vmul.f32 %v7758_v11, %v7654_v46  ;;  %v5781_v54 = vpack.c.bf16 %v1423_v7, %v1423_v7  ;;  %6034 = vmatpush3.bf16.msra.mxu0 %v6755_v9  ;;  %v834_v11 = vmul.f32 %v7654_v46, %v7780_v52  ;;  %v7900_v9 = vpop.permute.xlu0 %1860  ;;  %v6772_v17 = vld [vmem:[%s9392_s4 + $0x18] sm:$0xff]   ;;  %6627 = vmatprep.subr.bf16.mxu1 %v6771_v63  ;;  %v6774_v7 = vld [vmem:[%s9392_s4 + $0x50] sm:$0xff]  }
 0x160   : > { %v5782_v28 = vpack.c.bf16 %v1424_v6, %v1424_v6  ;;  %v5844_v4 = vpack.c.bf16 %v1966_v15, %v1966_v15  ;;  %v5845_v27 = vpack.c.bf16 %v1967_v57, %v1967_v57  ;;  %1748 = vst [vmem:[#allocation2 + $0xc4] sm:$0xf] %v5818_v58  ;;  %v839_v18 = vmul.f32 %v7817_v20, %v7654_v46  ;;  %v6739_v53 = vld [vmem:[#allocation2 + $0x68] ss:$12 sps:$4 sm:$0xff]  }
 0x161   : > { %v7891_v2 = vsel %vm904_vm15, %v872_v26, %v936_v10  ;;  %v875_v19 = vadd.f32 %v7661_v49, %v836_v16  ;;  %2764 = vmatmul.mubr.bf16.gmra.mxu1 %v6742_v61  ;;  %1583 = vst [vmem:[#allocation2 + $0x84] sm:$0xf] %v5781_v54  ;;  %v837_v20 = vmul.f32 %v7654_v46, %v7854_v3  ;;  %v6748_v16 = vld [vmem:[#allocation2 + $0x60] ss:$12 sps:$4 sm:$0xff]  }
 0x162   : > { %1584 = vst [vmem:[#allocation2 + $0x90] sm:$0xf] %v5782_v28  ;;  %2126 = vst [vmem:[#allocation2 + $0x80] sm:$0xf] %v5844_v4  ;;  %v1044_v26 = vrot.slane %v7891_v2, 7  ;;  %v1141_v24 = vrot.slane %v7891_v2, 1  ;;  %v5816_v52 = vpack.c.bf16 %v7891_v2, %v7891_v2  ;;  %2771 = vmatprep.mubr.bf16.mxu1 %v6744_v50  ;;  %6035 = vmatprep.subr.bf16.mxu0 %v7842_v22 }
 0x163   : > { %2127 = vst [vmem:[#allocation2 + $0x8c] sm:$0xf] %v5845_v27  ;;  %vm907_vm0 = vcmp.ge.f32.partialorder %v875_v19, 0.0  ;;  %v939_v23 = vmul.f32 0.001, %v875_v19  ;;  %v873_v55 = vadd.f32 %v7661_v49, %v834_v11  ;;  %v878_v5 = vadd.f32 %v7661_v49, %v839_v18  ;;  %6412 = vmatmul.mubr.bf16.gmra.mxu0 %v6739_v53  ;;  %6635 = vmatpush3.bf16.msra.mxu1 %v6772_v17  ;;  %v1871_v61 = vpop.permute.xlu0 %1870  ;;  %v6776_v27 = vld [vmem:[%s9392_s4 + $0x10] sm:$0xff]   ;;  %v767_v53 = vpop.f32.mrf.mxu0 }
 0x164   : > { %v1045_v3 = vsel %vm1020_vm1, %v1042_v14, %v1044_v26  ;;  %v1142_v22 = vsel %vm1117_vm3, %v1139_v60, %v1141_v24  ;;  %1746 = vst [vmem:[#allocation2 + $0xac] sm:$0xf] %v5816_v52  ;;  %v7925_v48 = vadd.f32 %v7661_v49, %v837_v20  ;;  %v840_v12 = vmul.f32 %v6378_v21, %v7654_v46  ;;  %v6780_v50 = vld [vmem:[%s9392_s4 + $0x48] sm:$0xff]   ;;  %v1866_v52 = vpop.permute.xlu1 %1865 }
 0x165   : > { %6036 = vmatpush3.bf16.msra.mxu0 %v6767_v56  ;;  %v1426_v6 = vmul.f32 %v7617_v29, %v1045_v3  ;;  %v1969_v14 = vmul.f32 %v1856_v62, %v1142_v22  ;;  %v7933_v15 = vsel %vm907_vm0, %v875_v19, %v939_v23  ;;  %vm905_vm2 = vcmp.ge.f32.partialorder %v873_v55, 0.0  ;;  %6628 = vmatprep.subr.bf16.mxu1 %v6774_v7 }
 0x166   : > { %6037 = vmatprep.subr.bf16.mxu0 %v6771_v63  ;;  %v1050_v60 = vrot.slane %v7933_v15, 7  ;;  %v1147_v21 = vrot.slane %v7933_v15, 1  ;;  %v5819_v56 = vpack.c.bf16 %v7933_v15, %v7933_v15  ;;  %v937_v57 = vmul.f32 0.001, %v873_v55 }
 0x167   : > { %v5784_v58 = vpack.c.bf16 %v1426_v6, %v1426_v6  ;;  %v5847_v29 = vpack.c.bf16 %v1969_v14, %v1969_v14  ;;  %vm910_vm4 = vcmp.ge.f32.partialorder %v878_v5, 0.0  ;;  %v942_v10 = vmul.f32 0.001, %v878_v5  ;;  %6636 = vmatpush3.bf16.msra.mxu1 %v6776_v27  ;;  %v6749_v6 = vld [vmem:[#allocation2 + $0x7c] ss:$12 sps:$4 sm:$0xff]  }
 0x168   : > { %v1051_v54 = vsel %vm1020_vm1, %v1048_v0, %v1050_v60  ;;  %v1148_v28 = vsel %vm1117_vm3, %v1145_v30, %v1147_v21  ;;  %1749 = vst [vmem:[#allocation2 + $0xd0] sm:$0xf] %v5819_v56  ;;  %v969_v4 = vsel %vm905_vm2, %v873_v55, %v937_v57  ;;  %vm908_vm5 = vcmp.ge.f32.partialorder %v7925_v48, 0.0  ;;  %6629 = vmatprep.subr.bf16.mxu1 %v6780_v50 }
 0x169   : > { %6038 = vmatpush3.bf16.msra.mxu0 %v6772_v17  ;;  %1586 = vst [vmem:[#allocation2 + $0xa8] sm:$0xf] %v5784_v58  ;;  %2129 = vst [vmem:[#allocation2 + $0xa4] sm:$0xf] %v5847_v29  ;;  %v1429_v63 = vmul.f32 %v7627_v34, %v1051_v54  ;;  %v1972_v19 = vmul.f32 %v1871_v61, %v1148_v28  ;;  %v1046_v11 = vrot.slane %v969_v4, 7  ;;  %v1143_v18 = vrot.slane %v969_v4, 1  ;;  %v7997_v29 = vpop.permute.xlu0 %1880 }
 0x16a   : > { %2772 = vmatmul.mubr.bf16.gmra.mxu1 %v6748_v16  ;;  %6039 = vmatprep.subr.bf16.mxu0 %v6774_v7  ;;  %v5817_v20 = vpack.c.bf16 %v969_v4, %v969_v4  ;;  %v7961_v23 = vsel %vm910_vm4, %v878_v5, %v942_v10  ;;  %v940_v55 = vmul.f32 0.001, %v7925_v48  ;;  %v879_v17 = vadd.f32 %v7661_v49, %v840_v12  ;;  %v6740_v62 = vld [vmem:[#allocation2 + $0x80] ss:$12 sps:$4 sm:$0xff]   ;;  %v8001_v28 = vld [vmem:[#allocation2 + $0x78] ss:$12 sps:$4 sm:$0xff]  }
 0x16b   : > { %v5787_v3 = vpack.c.bf16 %v1429_v63, %v1429_v63  ;;  %v5850_v22 = vpack.c.bf16 %v1972_v19, %v1972_v19  ;;  %v1047_v34 = vsel %vm1020_vm1, %v1044_v26, %v1046_v11  ;;  %v1049_v7 = vsel %vm1020_vm1, %v1046_v11, %v1048_v0  ;;  %6415 = vmatprep.mubr.bf16.mxu0 %v6740_v62  ;;  %v6782_v58 = vld [vmem:[%s9392_s4 + $0x40] sm:$0xff]  }
 0x16c   : > { %v1144_v5 = vsel %vm1117_vm3, %v1141_v24, %v1143_v18  ;;  %v1146_v12 = vsel %vm1117_vm3, %v1143_v18, %v1145_v30  ;;  %v1427_v14 = vmul.f32 %v7623_v32, %v1047_v34  ;;  %v1428_v56 = vmul.f32 %v7621_v31, %v1049_v7  ;;  %1747 = vst [vmem:[#allocation2 + $0xb8] sm:$0xf] %v5817_v20  ;;  %v7982_v24 = vpop.f32.mrf.mxu0  ;;  %v6781_v32 = vld [vmem:[%s9392_s4 + $0x8] sm:$0xff]   ;;  %v8003_v4 = vld [vmem:[#allocation2 + $0x94] ss:$12 sps:$4 sm:$0xff]  }
 0x16d   : > { %1589 = vst [vmem:[#allocation2 + $0xcc] sm:$0xf] %v5787_v3  ;;  %2132 = vst [vmem:[#allocation2 + $0xc8] sm:$0xf] %v5850_v22  ;;  %v1970_v0 = vmul.f32 %v7900_v9, %v1144_v5  ;;  %v1971_v26 = vmul.f32 %v1866_v52, %v1146_v12  ;;  %v1056_v57 = vrot.slane %v7961_v23, 7  ;;  %v1153_v2 = vrot.slane %v7961_v23, 1  ;;  %2779 = vmatprep.mubr.bf16.mxu1 %v6749_v6  ;;  %v1891_v34 = vpop.permute.xlu0 %1890 }
 0x16e   : > { %6040 = vmatpush3.bf16.msra.mxu0 %v6776_v27  ;;  %v5785_v31 = vpack.c.bf16 %v1427_v14, %v1427_v14  ;;  %v5786_v1 = vpack.c.bf16 %v1428_v56, %v1428_v56  ;;  %v5822_v30 = vpack.c.bf16 %v7961_v23, %v7961_v23  ;;  %v7992_v9 = vsel %vm908_vm5, %v7925_v48, %v940_v55  ;;  %v1876_v48 = vpop.permute.xlu1 %1875  ;;  %v8022_v52 = vpop.f32.mrf.mxu0  ;;  %v8052_v14 = vld [vmem:[%s9392_s4 + $0xb8] sm:$0xff]  }
 0x16f   : > { %6041 = vmatprep.subr.bf16.mxu0 %v6780_v50  ;;  %v5848_v10 = vpack.c.bf16 %v1970_v0, %v1970_v0  ;;  %v5849_v16 = vpack.c.bf16 %v1971_v26, %v1971_v26  ;;  %v1052_v61 = vrot.slane %v7992_v9, 7  ;;  %v1149_v54 = vrot.slane %v7992_v9, 1  ;;  %6637 = vmatpush3.bf16.msra.mxu1 %v6781_v32 }
 0x170   : > { %1587 = vst [vmem:[#allocation2 + $0xb4] sm:$0xf] %v5785_v31  ;;  %1588 = vst [vmem:[#allocation2 + $0xc0] sm:$0xf] %v5786_v1  ;;  %v5820_v27 = vpack.c.bf16 %v7992_v9, %v7992_v9  ;;  %vm911_vm6 = vcmp.ge.f32.partialorder %v879_v17, 0.0  ;;  %v838_v63 = vmul.f32 %v7654_v46, %v7898_v8  ;;  %6630 = vmatprep.subr.bf16.mxu1 %v6782_v58  ;;  %v6385_v12 = vpop.f32.mrf.mxu0 }
 0x171   : > { %1752 = vst [vmem:[#allocation2 + $0xf4] sm:$0xf] %v5822_v30  ;;  %v943_v50 = vmul.f32 0.001, %v879_v17  ;;  %2130 = vst [vmem:[#allocation2 + $0xb0] sm:$0xf] %v5848_v10  ;;  %v1053_v19 = vsel %vm1020_vm1, %v1050_v60, %v1052_v61  ;;  %v1150_v11 = vsel %vm1117_vm3, %v1147_v21, %v1149_v54  ;;  %v843_v18 = vmul.f32 %v7935_v13, %v7654_v46 }
 0x172   : > { %2131 = vst [vmem:[#allocation2 + $0xbc] sm:$0xf] %v5849_v16  ;;  %v841_v8 = vmul.f32 %v7654_v46, %v767_v53  ;;  %v6746_v20 = vld [vmem:[#allocation2 + $0x98] ss:$12 sps:$4 sm:$0xff]   ;;  %2780 = vmatmul.mubr.bf16.gmra.mxu1 %v8001_v28  ;;  %v1430_v55 = vmul.f32 %v7625_v33, %v1053_v19  ;;  %1750 = vst [vmem:[#allocation2 + $0xdc] sm:$0xf] %v5820_v27  ;;  %v1973_v15 = vmul.f32 %v1876_v48, %v1150_v11  ;;  %v1886_v56 = vpop.permute.xlu1 %1885 }
 0x173   : > { %v6784_v60 = vld [vmem:[%s9392_s4] sm:$0xff]   ;;  %v8030_v21 = vsel %vm911_vm6, %v879_v17, %v943_v50  ;;  %v877_v13 = vadd.f32 %v7661_v49, %v838_v63  ;;  %2787 = vmatprep.mubr.bf16.mxu1 %v8003_v4  ;;  %v882_v3 = vadd.f32 %v7661_v49, %v843_v18  ;;  %6416 = vmatmul.mubr.bf16.gmra.mxu0 %v6746_v20  ;;  %v8057_v1 = vld [vmem:[#allocation2 + $0x90] ss:$12 sps:$4 sm:$0xff]   ;;  %v8067_v27 = vld [vmem:[#allocation2 + $0xac] ss:$12 sps:$4 sm:$0xff]   ;;  %v783_v20 = vpop.f32.mrf.mxu0 }
 0x174   : > { %v1058_v46 = vrot.slane %v8030_v21, 7  ;;  %v1155_v53 = vrot.slane %v8030_v21, 1  ;;  %v5823_v62 = vpack.c.bf16 %v8030_v21, %v8030_v21  ;;  %6638 = vmatpush3.bf16.msra.mxu1 %v6784_v60  ;;  %v5788_v33 = vpack.c.bf16 %v1430_v55, %v1430_v55  ;;  %6042 = vmatpush3.bf16.msra.mxu0 %v6781_v32  ;;  %v8062_v30 = vld [vmem:[%s9392_s4 + $0x238] sm:$0xff]  }
 0x175   : > { %v5851_v22 = vpack.c.bf16 %v1973_v15, %v1973_v15  ;;  %vm909_vm7 = vcmp.ge.f32.partialorder %v877_v13, 0.0  ;;  %v941_v17 = vmul.f32 0.001, %v877_v13  ;;  %vm914_vm8 = vcmp.ge.f32.partialorder %v882_v3, 0.0  ;;  %6043 = vmatprep.subr.bf16.mxu0 %v6782_v58  ;;  %6439 = vmatprep.subr.bf16.mxu1 %v8052_v14 }
 0x176   : > { %v1059_v7 = vsel %vm1020_vm1, %v1056_v57, %v1058_v46  ;;  %v1156_v6 = vsel %vm1117_vm3, %v1153_v2, %v1155_v53  ;;  %1753 = vst [vmem:[#allocation2 + $0x100] sm:$0xf] %v5823_v62  ;;  %v946_v5 = vmul.f32 0.001, %v882_v3  ;;  %1590 = vst [vmem:[#allocation2 + $0xd8] sm:$0xf] %v5788_v33  ;;  %v880_v31 = vadd.f32 %v7661_v49, %v841_v8 }
 0x177   : > { %2133 = vst [vmem:[#allocation2 + $0xd4] sm:$0xf] %v5851_v22  ;;  %v1433_v0 = vmul.f32 %v7635_v38, %v1059_v7  ;;  %v1976_v26 = vmul.f32 %v1891_v34, %v1156_v6  ;;  %v973_v32 = vsel %vm909_vm7, %v877_v13, %v941_v17  ;;  %v8107_v33 = vld [vmem:[%s9391_s3] ss:$0 sm:$0xff]  ;;  %v6386_v34 = vpop.f32.mrf.mxu0  ;;  %v8115_v6 = vpop.permute.xlu0 %1900 }
 0x178   : > { %v1054_v58 = vrot.slane %v973_v32, 7  ;;  %v1151_v10 = vrot.slane %v973_v32, 1  ;;  %v5821_v16 = vpack.c.bf16 %v973_v32, %v973_v32  ;;  %v8065_v48 = vsel %vm914_vm8, %v882_v3, %v946_v5  ;;  %6044 = vmatpush3.bf16.msra.mxu0 %v6784_v60 }
 0x179   : > { %v5791_v38 = vpack.c.bf16 %v1433_v0, %v1433_v0  ;;  %v5854_v50 = vpack.c.bf16 %v1976_v26, %v1976_v26  ;;  %v1064_v49 = vrot.slane %v8065_v48, 7  ;;  %v1161_v63 = vrot.slane %v8065_v48, 1  ;;  %v8084_v55 = vld [vmem:[#allocation2 + $0xb0] ss:$12 sps:$4 sm:$0xff]   ;;  %6487 = vmatprep.subr.bf16.mxu0 %v8062_v30 }
 0x17a   : > { %v1055_v19 = vsel %vm1020_vm1, %v1052_v61, %v1054_v58  ;;  %v1057_v11 = vsel %vm1020_vm1, %v1054_v58, %v1056_v57  ;;  %v1152_v18 = vsel %vm1117_vm3, %v1149_v54, %v1151_v10  ;;  %v1154_v8 = vsel %vm1117_vm3, %v1151_v10, %v1153_v2  ;;  %1751 = vst [vmem:[#allocation2 + $0xe8] sm:$0xf] %v5821_v16  ;;  %v8096_v54 = vld [vmem:[%s9390_s2] ss:$0 sm:$0xff] }
 0x17b   : > { %2788 = vmatmul.mubr.bf16.gmra.mxu1 %v8057_v1  ;;  %1593 = vst [vmem:[#allocation2 + $0xfc] sm:$0xf] %v5791_v38  ;;  %2136 = vst [vmem:[#allocation2 + $0xf8] sm:$0xf] %v5854_v50  ;;  %v1431_v61 = vmul.f32 %v7631_v36, %v1055_v19  ;;  %v1432_v57 = vmul.f32 %v7629_v35, %v1057_v11  ;;  %v1974_v9 = vmul.f32 %v7997_v29, %v1152_v18  ;;  %v1896_v35 = vpop.permute.xlu1 %1895  ;;  %v8135_v50 = vld [vmem:[#allocation2 + $0xc4] ss:$12 sps:$4 sm:$0xff]  }
 0x17c   : > { %v1975_v60 = vmul.f32 %v1886_v56, %v1154_v8  ;;  %2795 = vmatprep.mubr.bf16.mxu1 %v8067_v27  ;;  %v5826_v23 = vpack.c.bf16 %v8065_v48, %v8065_v48  ;;  %vm912_vm9 = vcmp.ge.f32.partialorder %v880_v31, 0.0  ;;  %v944_v2 = vmul.f32 0.001, %v880_v31  ;;  %6419 = vmatprep.mubr.bf16.mxu0 %v8084_v55 }
 0x17d   : > { %v844_v36 = vmul.f32 %v8096_v54, %v7982_v24  ;;  %v5789_v29 = vpack.c.bf16 %v1431_v61, %v1431_v61  ;;  %v5790_v15 = vpack.c.bf16 %v1432_v57, %v1432_v57  ;;  %v5852_v13 = vpack.c.bf16 %v1974_v9, %v1974_v9  ;;  %v786_v61 = vpop.f32.mrf.mxu0 }
 0x17e   : > { %v5853_v62 = vpack.c.bf16 %v1975_v60, %v1975_v60  ;;  %1756 = vst [vmem:[#allocation2 + $0x124] sm:$0xf] %v5826_v23  ;;  %v8102_v3 = vsel %vm912_vm9, %v880_v31, %v944_v2  ;;  %v842_v24 = vmul.f32 %v8096_v54, %v8022_v52  ;;  %v847_v17 = vmul.f32 %v8096_v54, %v6385_v12  ;;  %v8113_v7 = vld [vmem:[#allocation2 + $0xc8] ss:$12 sps:$4 sm:$0xff]   ;;  %v1911_v60 = vpop.permute.xlu0 %1910 }
 0x17f   : > { %v883_v22 = vadd.f32 %v8107_v33, %v844_v36  ;;  %1591 = vst [vmem:[#allocation2 + $0xe4] sm:$0xf] %v5789_v29  ;;  %1592 = vst [vmem:[#allocation2 + $0xf0] sm:$0xf] %v5790_v15  ;;  %v1060_v5 = vrot.slane %v8102_v3, 7  ;;  %v1157_v56 = vrot.slane %v8102_v3, 1  ;;  %v5824_v0 = vpack.c.bf16 %v8102_v3, %v8102_v3  ;;  %6420 = vmatmul.mubr.bf16.gmra.mxu0 %v8113_v7 }
 0x180   : > { %2134 = vst [vmem:[#allocation2 + $0xe0] sm:$0xf] %v5852_v13  ;;  %2135 = vst [vmem:[#allocation2 + $0xec] sm:$0xf] %v5853_v62  ;;  %v845_v52 = vmul.f32 %v8096_v54, %v783_v20  ;;  %v881_v26 = vadd.f32 %v8107_v33, %v842_v24  ;;  %v886_v32 = vadd.f32 %v8107_v33, %v847_v17  ;;  %v8125_v31 = vld [vmem:[#allocation2 + $0xa8] ss:$12 sps:$4 sm:$0xff]   ;;  %v6389_v17 = vpop.f32.mrf.mxu0 }
 0x181   : > { %vm915_vm10 = vcmp.ge.f32.partialorder %v883_v22, 0.0  ;;  %v947_v12 = vmul.f32 0.001, %v883_v22  ;;  %v1061_v58 = vsel %vm1020_vm1, %v1058_v46, %v1060_v5  ;;  %v1158_v10 = vsel %vm1117_vm3, %v1155_v53, %v1157_v56  ;;  %1754 = vst [vmem:[#allocation2 + $0x10c] sm:$0xf] %v5824_v0  ;;  %v1906_v46 = vpop.permute.xlu1 %1905 }
 0x182   : > { %v884_v16 = vadd.f32 %v8107_v33, %v845_v52  ;;  %v848_v38 = vmul.f32 %v8096_v54, %v6386_v34  ;;  %v1434_v19 = vmul.f32 %v7633_v37, %v1061_v58  ;;  %v1977_v11 = vmul.f32 %v1896_v35, %v1158_v10 }
 0x183   : > { %v8138_v18 = vsel %vm915_vm10, %v883_v22, %v947_v12  ;;  %vm913_vm11 = vcmp.ge.f32.partialorder %v881_v26, 0.0  ;;  %2796 = vmatmul.mubr.bf16.gmra.mxu1 %v8125_v31  ;;  %v945_v20 = vmul.f32 0.001, %v881_v26  ;;  %vm918_vm12 = vcmp.ge.f32.partialorder %v886_v32, 0.0 }
 0x184   : > { %v1066_v21 = vrot.slane %v8138_v18, 7  ;;  %v1163_v53 = vrot.slane %v8138_v18, 1  ;;  %v5827_v8 = vpack.c.bf16 %v8138_v18, %v8138_v18  ;;  %2803 = vmatprep.mubr.bf16.mxu1 %v8135_v50  ;;  %v5792_v57 = vpack.c.bf16 %v1434_v19, %v1434_v19 }
 0x185   : > { %v5855_v37 = vpack.c.bf16 %v1977_v11, %v1977_v11  ;;  %v950_v9 = vmul.f32 0.001, %v886_v32  ;;  %v977_v36 = vsel %vm913_vm11, %v881_v26, %v945_v20  ;;  %vm916_vm13 = vcmp.ge.f32.partialorder %v884_v16, 0.0  ;;  %v8167_v26 = vld [vmem:[#allocation2 + $0xc0] ss:$12 sps:$4 sm:$0xff]   ;;  %v1916_v58 = vpop.permute.xlu1 %1915  ;;  %v799_v20 = vpop.f32.mrf.mxu0 }
 0x186   : > { %v1067_v23 = vsel %vm1020_vm1, %v1064_v49, %v1066_v21  ;;  %v1164_v2 = vsel %vm1117_vm3, %v1161_v63, %v1163_v53  ;;  %1757 = vst [vmem:[#allocation2 + $0x130] sm:$0xf] %v5827_v8  ;;  %1594 = vst [vmem:[#allocation2 + $0x108] sm:$0xf] %v5792_v57  ;;  %v1062_v15 = vrot.slane %v977_v36, 7  ;;  %v1159_v13 = vrot.slane %v977_v36, 1  ;;  %v8188_v57 = vpop.permute.xlu0 %1920 }
 0x187   : > { %2137 = vst [vmem:[#allocation2 + $0x104] sm:$0xf] %v5855_v37  ;;  %v1437_v35 = vmul.f32 %v7643_v42, %v1067_v23  ;;  %v1980_v29 = vmul.f32 %v1911_v60, %v1164_v2  ;;  %v5825_v62 = vpack.c.bf16 %v977_v36, %v977_v36  ;;  %v8158_v3 = vsel %vm918_vm12, %v886_v32, %v950_v9  ;;  %v8161_v34 = vld [vmem:[#allocation2 + $0xe0] ss:$12 sps:$4 sm:$0xff]  }
 0x188   : > { %v948_v22 = vmul.f32 0.001, %v884_v16  ;;  %v887_v24 = vadd.f32 %v8107_v33, %v848_v38  ;;  %v1063_v12 = vsel %vm1020_vm1, %v1060_v5, %v1062_v15  ;;  %v1065_v42 = vsel %vm1020_vm1, %v1062_v15, %v1064_v49  ;;  %6423 = vmatprep.mubr.bf16.mxu0 %v8161_v34  ;;  %v8176_v5 = vld [vmem:[#allocation2 + $0xdc] ss:$12 sps:$4 sm:$0xff]  }
 0x189   : > { %v5795_v0 = vpack.c.bf16 %v1437_v35, %v1437_v35  ;;  %v5858_v52 = vpack.c.bf16 %v1980_v29, %v1980_v29  ;;  %v1160_v32 = vsel %vm1117_vm3, %v1157_v56, %v1159_v13  ;;  %v1162_v10 = vsel %vm1117_vm3, %v1159_v13, %v1161_v63  ;;  %1755 = vst [vmem:[#allocation2 + $0x118] sm:$0xf] %v5825_v62  ;;  %v1926_v13 = vpop.permute.xlu1 %1925 }
 0x18a   : > { %v1435_v38 = vmul.f32 %v7639_v40, %v1063_v12  ;;  %v1436_v19 = vmul.f32 %v7637_v39, %v1065_v42  ;;  %v1978_v49 = vmul.f32 %v8115_v6, %v1160_v32  ;;  %v1979_v11 = vmul.f32 %v1906_v46, %v1162_v10 }
 0x18b   : > { %1597 = vst [vmem:[#allocation2 + $0x12c] sm:$0xf] %v5795_v0  ;;  %2140 = vst [vmem:[#allocation2 + $0x128] sm:$0xf] %v5858_v52  ;;  %v1072_v56 = vrot.slane %v8158_v3, 7  ;;  %v1169_v48 = vrot.slane %v8158_v3, 1  ;;  %2804 = vmatmul.mubr.bf16.gmra.mxu1 %v8167_v26  ;;  %v5830_v39 = vpack.c.bf16 %v8158_v3, %v8158_v3  ;;  %v8185_v8 = vsel %vm916_vm13, %v884_v16, %v948_v22 }
 0x18c   : > { %v5793_v63 = vpack.c.bf16 %v1435_v38, %v1435_v38  ;;  %v5794_v40 = vpack.c.bf16 %v1436_v19, %v1436_v19  ;;  %2811 = vmatprep.mubr.bf16.mxu1 %v8176_v5  ;;  %v5856_v6 = vpack.c.bf16 %v1978_v49, %v1978_v49  ;;  %v5857_v46 = vpack.c.bf16 %v1979_v11, %v1979_v11  ;;  %v8215_v52 = vld [vmem:[#allocation2 + $0xd8] ss:$12 sps:$4 sm:$0xff]  }
 0x18d   : > { %v1068_v37 = vrot.slane %v8185_v8, 7  ;;  %v1165_v9 = vrot.slane %v8185_v8, 1  ;;  %1760 = vst [vmem:[#allocation2 + $0x154] sm:$0xf] %v5830_v39  ;;  %v5828_v60 = vpack.c.bf16 %v8185_v8, %v8185_v8  ;;  %vm919_vm14 = vcmp.ge.f32.partialorder %v887_v24, 0.0 }
 0x18e   : > { %1595 = vst [vmem:[#allocation2 + $0x114] sm:$0xf] %v5793_v63  ;;  %1596 = vst [vmem:[#allocation2 + $0x120] sm:$0xf] %v5794_v40  ;;  %v951_v16 = vmul.f32 0.001, %v887_v24  ;;  %v846_v23 = vmul.f32 %v8096_v54, %v786_v61  ;;  %v851_v35 = vmul.f32 %v8096_v54, %v6389_v17  ;;  %v849_v29 = vmul.f32 %v8096_v54, %v799_v20  ;;  %v6390_v63 = vpop.f32.mrf.mxu0 }
 0x18f   : > { %2138 = vst [vmem:[#allocation2 + $0x110] sm:$0xf] %v5856_v6  ;;  %2139 = vst [vmem:[#allocation2 + $0x11c] sm:$0xf] %v5857_v46  ;;  %v1069_v2 = vsel %vm1020_vm1, %v1066_v21, %v1068_v37  ;;  %v1166_v36 = vsel %vm1117_vm3, %v1163_v53, %v1165_v9  ;;  %v8203_v15 = vld [vmem:[#allocation2 + $0xf8] ss:$12 sps:$4 sm:$0xff]   ;;  %v1936_v6 = vpop.permute.xlu1 %1935 }
 0x190   : > { %v1438_v62 = vmul.f32 %v7641_v41, %v1069_v2  ;;  %1758 = vst [vmem:[#allocation2 + $0x13c] sm:$0xf] %v5828_v60  ;;  %v1981_v61 = vmul.f32 %v1916_v58, %v1166_v36  ;;  %v8206_v22 = vsel %vm919_vm14, %v887_v24, %v951_v16  ;;  %v885_v0 = vadd.f32 %v8107_v33, %v846_v23  ;;  %v8217_v41 = vld [vmem:[#allocation2 + $0xf4] ss:$12 sps:$4 sm:$0xff]   ;;  %v1931_v58 = vpop.permute.xlu0 %1930 }
 0x191   : > { %v1074_v21 = vrot.slane %v8206_v22, 7  ;;  %v1171_v18 = vrot.slane %v8206_v22, 1  ;;  %v5831_v53 = vpack.c.bf16 %v8206_v22, %v8206_v22  ;;  %v890_v17 = vadd.f32 %v8107_v33, %v851_v35  ;;  %6424 = vmatmul.mubr.bf16.gmra.mxu0 %v8203_v15 }
 0x192   : > { %v5796_v12 = vpack.c.bf16 %v1438_v62, %v1438_v62  ;;  %v5859_v24 = vpack.c.bf16 %v1981_v61, %v1981_v61  ;;  %vm917_vm15 = vcmp.ge.f32.partialorder %v885_v0, 0.0  ;;  %v949_v42 = vmul.f32 0.001, %v885_v0 }
 0x193   : > { %v1075_v32 = vsel %vm1020_vm1, %v1072_v56, %v1074_v21  ;;  %v1172_v10 = vsel %vm1117_vm3, %v1169_v48, %v1171_v18  ;;  %1761 = vst [vmem:[#allocation2 + $0x160] sm:$0xf] %v5831_v53  ;;  %vm922_vm0 = vcmp.ge.f32.partialorder %v890_v17, 0.0  ;;  %v954_v38 = vmul.f32 0.001, %v890_v17  ;;  %2812 = vmatmul.mubr.bf16.gmra.mxu1 %v8215_v52 }
 0x194   : > { %1598 = vst [vmem:[#allocation2 + $0x138] sm:$0xf] %v5796_v12  ;;  %2141 = vst [vmem:[#allocation2 + $0x134] sm:$0xf] %v5859_v24  ;;  %v1441_v19 = vmul.f32 %v7656_v47, %v1075_v32  ;;  %v1984_v49 = vmul.f32 %v1931_v58, %v1172_v10  ;;  %v981_v11 = vsel %vm917_vm15, %v885_v0, %v949_v42  ;;  %2819 = vmatprep.mubr.bf16.mxu1 %v8217_v41  ;;  %v802_v0 = vpop.f32.mrf.mxu0  ;;  %v8262_v58 = vpop.permute.xlu1 %1945 }
 0x195   : > { %v1070_v40 = vrot.slane %v981_v11, 7  ;;  %v1167_v39 = vrot.slane %v981_v11, 1  ;;  %v5829_v8 = vpack.c.bf16 %v981_v11, %v981_v11  ;;  %v888_v20 = vadd.f32 %v8107_v33, %v849_v29  ;;  %v1941_v32 = vpop.permute.xlu0 %1940 }
 0x196   : > { %v5799_v46 = vpack.c.bf16 %v1441_v19, %v1441_v19  ;;  %v5862_v60 = vpack.c.bf16 %v1984_v49, %v1984_v49  ;;  %v8234_v16 = vsel %vm922_vm0, %v890_v17, %v954_v38  ;;  %v8244_v35 = vld [vmem:[#allocation2 + $0x110] ss:$12 sps:$4 sm:$0xff]   ;;  %v850_v24 = vmul.f32 %v8096_v54, %v802_v0 }
 0x197   : > { %v1071_v23 = vsel %vm1020_vm1, %v1068_v37, %v1070_v40  ;;  %v1073_v47 = vsel %vm1020_vm1, %v1070_v40, %v1072_v56  ;;  %v1168_v2 = vsel %vm1117_vm3, %v1165_v9, %v1167_v39  ;;  %v1170_v36 = vsel %vm1117_vm3, %v1167_v39, %v1169_v48  ;;  %1759 = vst [vmem:[#allocation2 + $0x148] sm:$0xf] %v5829_v8  ;;  %v8249_v56 = vld [vmem:[#allocation2 + $0xf0] ss:$12 sps:$4 sm:$0xff]  }
 0x198   : > { %1601 = vst [vmem:[#allocation2 + $0x15c] sm:$0xf] %v5799_v46  ;;  %2144 = vst [vmem:[#allocation2 + $0x158] sm:$0xf] %v5862_v60  ;;  %v1439_v29 = vmul.f32 %v7647_v44, %v1071_v23  ;;  %v1440_v62 = vmul.f32 %v7645_v43, %v1073_v47  ;;  %v1982_v37 = vmul.f32 %v8188_v57, %v1168_v2  ;;  %vm920_vm2 = vcmp.ge.f32.partialorder %v888_v20, 0.0 }
 0x199   : > { %v1983_v61 = vmul.f32 %v1926_v13, %v1170_v36  ;;  %v5834_v3 = vpack.c.bf16 %v8234_v16, %v8234_v16  ;;  %v952_v48 = vmul.f32 0.001, %v888_v20  ;;  %v852_v9 = vmul.f32 %v8096_v54, %v6390_v63  ;;  %6427 = vmatprep.mubr.bf16.mxu0 %v8244_v35  ;;  %v8255_v43 = vld [vmem:[#allocation2 + $0x10c] ss:$12 sps:$4 sm:$0xff]   ;;  %v8276_v36 = vld [vmem:[#allocation2 + $0x108] ss:$12 sps:$4 sm:$0xff]  }
 0x19a   : > { %v5797_v53 = vpack.c.bf16 %v1439_v29, %v1439_v29  ;;  %v5798_v17 = vpack.c.bf16 %v1440_v62, %v1440_v62  ;;  %v5860_v44 = vpack.c.bf16 %v1982_v37, %v1982_v37  ;;  %v889_v54 = vadd.f32 %v8107_v33, %v850_v24  ;;  %v1956_v29 = vpop.permute.xlu1 %1955 }
 0x19b   : > { %v5861_v12 = vpack.c.bf16 %v1983_v61, %v1983_v61  ;;  %1764 = vst [vmem:[#allocation2 + $0x184] sm:$0xf] %v5834_v3  ;;  %v984_v57 = vsel %vm920_vm2, %v888_v20, %v952_v48  ;;  %v891_v13 = vadd.f32 %v8107_v33, %v852_v9  ;;  %v8259_v42 = vld [vmem:[#allocation2 + $0x128] ss:$12 sps:$4 sm:$0xff]   ;;  %2820 = vmatmul.mubr.bf16.gmra.mxu1 %v8249_v56  ;;  %v1080_v11 = vrot.slane %v8234_v16, 7 }
 0x19c   : > { %1599 = vst [vmem:[#allocation2 + $0x144] sm:$0xf] %v5797_v53  ;;  %1600 = vst [vmem:[#allocation2 + $0x150] sm:$0xf] %v5798_v17  ;;  %v1076_v10 = vrot.slane %v984_v57, 7  ;;  %v1173_v38 = vrot.slane %v984_v57, 1  ;;  %v5832_v19 = vpack.c.bf16 %v984_v57, %v984_v57  ;;  %2827 = vmatprep.mubr.bf16.mxu1 %v8255_v43  ;;  %6428 = vmatmul.mubr.bf16.gmra.mxu0 %v8259_v42 }
 0x19d   : > { %2142 = vst [vmem:[#allocation2 + $0x140] sm:$0xf] %v5860_v44  ;;  %2143 = vst [vmem:[#allocation2 + $0x14c] sm:$0xf] %v5861_v12  ;;  %vm923_vm4 = vcmp.ge.f32.partialorder %v891_v13, 0.0  ;;  %v1177_v63 = vrot.slane %v8234_v16, 1 }
 0x19e   : > { %v955_v49 = vmul.f32 0.001, %v891_v13  ;;  %v1077_v40 = vsel %vm1020_vm1, %v1074_v21, %v1076_v10  ;;  %v1174_v39 = vsel %vm1117_vm3, %v1171_v18, %v1173_v38  ;;  %1762 = vst [vmem:[#allocation2 + $0x16c] sm:$0xf] %v5832_v19  ;;  %vm921_vm5 = vcmp.ge.f32.partialorder %v889_v54, 0.0  ;;  %v1951_v21 = vpop.permute.xlu0 %1950 }
 0x19f   : > { %v1442_v8 = vmul.f32 %v7649_v45, %v1077_v40  ;;  %v1985_v20 = vmul.f32 %v1936_v6, %v1174_v39  ;;  %v953_v47 = vmul.f32 0.001, %v889_v54  ;;  %v8281_v6 = vld [vmem:[#allocation2 + $0x124] ss:$12 sps:$4 sm:$0xff]  }
 0x1a0   : > { %v987_v46 = vsel %vm923_vm4, %v891_v13, %v955_v49 }
 0x1a1   : > { %v1082_v33 = vrot.slane %v987_v46, 7  ;;  %v1179_v60 = vrot.slane %v987_v46, 1  ;;  %v5835_v23 = vpack.c.bf16 %v987_v46, %v987_v46  ;;  %v5800_v2 = vpack.c.bf16 %v1442_v8, %v1442_v8 }
 0x1a2   : > { %v5863_v16 = vpack.c.bf16 %v1985_v20, %v1985_v20  ;;  %v985_v45 = vsel %vm921_vm5, %v889_v54, %v953_v47  ;;  %v6927_v20 = vld [vmem:[#allocation2] sm:$0xff] }
 0x1a3   : > { %v1083_v22 = vsel %vm1020_vm1, %v1080_v11, %v1082_v33  ;;  %v1180_v18 = vsel %vm1117_vm3, %v1177_v63, %v1179_v60  ;;  %v1213_v62 = vsel %vm1117_vm3, %v1179_v60, 0.0  ;;  %1765 = vst [vmem:[#allocation2 + $0x190] sm:$0xf] %v5835_v23  ;;  %1602 = vst [vmem:[#allocation2 + $0x168] sm:$0xf] %v5800_v2  ;;  %v1078_v3 = vrot.slane %v985_v45, 7  ;;  %2828 = vmatmul.mubr.bf16.gmra.mxu1 %v8276_v36 }
 0x1a4   : > { %2145 = vst [vmem:[#allocation2 + $0x164] sm:$0xf] %v5863_v16  ;;  %v1445_v37 = vmul.f32 %v7682_v25, %v1083_v22  ;;  %v1988_v61 = vmul.f32 %v1951_v21, %v1180_v18  ;;  %v1989_v0 = vmul.f32 %v1956_v29, %v1213_v62  ;;  %v1175_v48 = vrot.slane %v985_v45, 1  ;;  %v8285_v53 = vld [vmem:[#allocation2 + $0x140] ss:$12 sps:$4 sm:$0xff]   ;;  %2835 = vmatprep.mubr.bf16.mxu1 %v8281_v6  ;;  %v6808_v2 = vld [vmem:[%s9392_s4 + $0x230] sm:$0xff]  }
 0x1a5   : > { %v5833_v9 = vpack.c.bf16 %v985_v45, %v985_v45  ;;  %v1079_v57 = vsel %vm1020_vm1, %v1076_v10, %v1078_v3  ;;  %v1081_v13 = vsel %vm1020_vm1, %v1078_v3, %v1080_v11  ;;  %6431 = vmatprep.mubr.bf16.mxu0 %v8285_v53  ;;  %v8311_v46 = vcombine.high %v6927_v20, %v6927_v20  ;;  %v8319_v23 = vld [vmem:[#allocation2 + $0x150] ss:$12 sps:$4 sm:$0xff]   ;;  %v6809_v29 = vld [vmem:[%s9392_s4 + $0x228] sm:$0xff]   ;;  %v6811_v18 = vld [vmem:[%s9392_s4 + $0x220] sm:$0xff]  }
 0x1a6   : > { %v5803_v17 = vpack.c.bf16 %v1445_v37, %v1445_v37  ;;  %v5866_v44 = vpack.c.bf16 %v1988_v61, %v1988_v61  ;;  %v5867_v12 = vpack.c.bf16 %v1989_v0, %v1989_v0  ;;  %v1176_v25 = vsel %vm1117_vm3, %v1173_v38, %v1175_v48  ;;  %v8296_v38 = vld [vmem:[#allocation2 + $0x120] ss:$12 sps:$4 sm:$0xff]   ;;  %v6928_v16 = vld [vmem:[#allocation2 + $0x1c] ss:$12 sps:$4 sm:$0xff]   ;;  %v6929_v62 = vld [vmem:[#allocation2 + $0x18] ss:$12 sps:$4 sm:$0xff]  }
 0x1a7   : > { %v1178_v24 = vsel %vm1117_vm3, %v1175_v48, %v1177_v63  ;;  %v1443_v19 = vmul.f32 %v7670_v59, %v1079_v57  ;;  %1763 = vst [vmem:[#allocation2 + $0x178] sm:$0xf] %v5833_v9  ;;  %v1444_v49 = vmul.f32 %v7664_v51, %v1081_v13  ;;  %v1986_v54 = vmul.f32 %v1941_v32, %v1176_v25  ;;  %v8298_v63 = vld [vmem:[#allocation2 + $0x13c] ss:$12 sps:$4 sm:$0xff]   ;;  %v8305_v51 = vld [vmem:[#allocation2 + $0x138] ss:$12 sps:$4 sm:$0xff]  }
 0x1a8   : > { %1605 = vst [vmem:[#allocation2 + $0x18c] sm:$0xf] %v5803_v17  ;;  %2148 = vst [vmem:[#allocation2 + $0x188] sm:$0xf] %v5866_v44  ;;  %v1987_v40 = vmul.f32 %v8262_v58, %v1178_v24  ;;  %v8307_v58 = vld [vmem:[#allocation2 + $0x154] ss:$12 sps:$4 sm:$0xff]   ;;  %v8317_v60 = vcombine.low %v6927_v20, %v6927_v20 }
 0x1a9   : > { %2149 = vst [vmem:[#allocation2 + $0x194] sm:$0xf] %v5867_v12  ;;  %v5801_v10 = vpack.c.bf16 %v1443_v19, %v1443_v19  ;;  %v5802_v39 = vpack.c.bf16 %v1444_v49, %v1444_v49  ;;  %v5864_v11 = vpack.c.bf16 %v1986_v54, %v1986_v54  ;;  %v6813_v45 = vld [vmem:[%s9392_s4 + $0x218] sm:$0xff]   ;;  %v6815_v61 = vld [vmem:[%s9392_s4 + $0x210] sm:$0xff]   ;;  %v6817_v48 = vld [vmem:[%s9392_s4 + $0x208] sm:$0xff]   ;;  %vm7074_vm1 = vmmov 0  }
 0x1aa   : > { %v5865_v8 = vpack.c.bf16 %v1987_v40, %v1987_v40  ;;  %v6803_v22 = vld [vmem:[#allocation2 + $0x184] ss:$12 sps:$4 sm:$0xff]   ;;  %v6932_v3 = vld [vmem:[#allocation2 + $0x4c] ss:$12 sps:$4 sm:$0xff]   ;;  %v6933_v17 = vld [vmem:[#allocation2 + $0x48] ss:$12 sps:$4 sm:$0xff]  }
 0x1ab   : > { %1603 = vst [vmem:[#allocation2 + $0x174] sm:$0xf] %v5801_v10  ;;  %v8300_v59 = vld [vmem:[#allocation2 + $0x158] ss:$12 sps:$4 sm:$0xff]   ;;  %1604 = vst [vmem:[#allocation2 + $0x180] sm:$0xf] %v5802_v39  ;;  %2836 = vmatmul.mubr.bf16.gmra.mxu1 %v8296_v38 }
 0x1ac   : > { %2146 = vst [vmem:[#allocation2 + $0x170] sm:$0xf] %v5864_v11  ;;  %2147 = vst [vmem:[#allocation2 + $0x17c] sm:$0xf] %v5865_v8  ;;  %6432 = vmatmul.mubr.bf16.gmra.mxu0 %v8300_v59  ;;  %2843 = vmatprep.mubr.bf16.mxu1 %v8298_v63  ;;  %v6931_v0 = vld [vmem:[#allocation2 + $0x30] ss:$12 sps:$4 sm:$0xff]  }
 0x1ad   : > { %v6810_v9 = vld [vmem:[%s9392_s4 + $0xb0] sm:$0xff]   ;;  %v6812_v44 = vld [vmem:[%s9392_s4 + $0xa8] sm:$0xff]   ;;  %v6824_v24 = vld [vmem:[%s9392_s4 + $0x80] sm:$0xff]  }
 0x1ae   : > { %v8321_v47 = vld [vmem:[#allocation2 + $0x16c] ss:$12 sps:$4 sm:$0xff]   ;;  %v6934_v12 = vld [vmem:[#allocation2 + $0x64] ss:$12 sps:$4 sm:$0xff]   ;;  %v6936_v57 = vld [vmem:[#allocation2 + $0x7c] ss:$12 sps:$4 sm:$0xff]  }
 0x1af   : > { %v6820_v13 = vld [vmem:[%s9392_s4 + $0x90] sm:$0xff]   ;;  %v6823_v25 = vld [vmem:[%s9392_s4 + $0x88] sm:$0xff]   ;;  %v6840_v40 = vld [vmem:[%s9392_s4 + $0x1e0] sm:$0xff]  }
 0x1b0   : > { %v6779_v33 = vld [vmem:[#allocation2 + $0x188] ss:$12 sps:$4 sm:$0xff]   ;;  %v6937_v49 = vld [vmem:[#allocation2 + $0x20] ss:$12 sps:$4 sm:$0xff]   ;;  %v6939_v10 = vld [vmem:[#allocation2 + $0x50] ss:$12 sps:$4 sm:$0xff]  }
 0x1b1   : > { %v6832_v19 = vld [vmem:[%s9392_s4 + $0x1f0] sm:$0xff]   ;;  %v6841_v39 = vld [vmem:[%s9392_s4 + $0x1a0] sm:$0xff]   ;;  %v6845_v11 = vld [vmem:[%s9392_s4 + $0x198] sm:$0xff]  }
 0x1b2   : > { %v8333_v21 = vld [vmem:[#allocation2 + $0x168] ss:$12 sps:$4 sm:$0xff]   ;;  %v6805_v37 = vld [vmem:[#allocation2 + $0x180] ss:$12 sps:$4 sm:$0xff]  }
 0x1b3   : > { %v8309_v32 = vld [vmem:[#allocation2 + $0x170] ss:$12 sps:$4 sm:$0xff]   ;;  %2844 = vmatmul.mubr.bf16.gmra.mxu1 %v8305_v51  ;;  %v6851_v20 = vld [vmem:[%s9392_s4 + $0x188] sm:$0xff]  }
 0x1b4   : > { %6435 = vmatprep.mubr.bf16.mxu0 %v8309_v32  ;;  %2851 = vmatprep.mubr.bf16.mxu1 %v8307_v58  ;;  %v6833_v54 = vld [vmem:[%s9392_s4 + $0x1b0] sm:$0xff]  }
 0x1b5   : > { %6436 = vmatmul.mubr.bf16.gmra.mxu0 %v6779_v33  ;;  %v6848_v8 = vld [vmem:[%s9392_s4 + $0x1d0] sm:$0xff]   ;;  %v6852_v33 = vld [vmem:[%s9392_s4 + $0x1c0] sm:$0xff]  }
 0x1b6   : > { %3229 = vmatprep.mubr.bf16.mxu0 %v8311_v46 }
 0x1bb   : > { %2852 = vmatmul.mubr.bf16.gmra.mxu1 %v8319_v23 }
 0x1bc   : > { %2859 = vmatprep.mubr.bf16.mxu1 %v8321_v47 }
 0x1bd   : > { %3230 = vmatmul.mubr.bf16.vlgmr.msra.gmra.mxu0 %v8317_v60 }
 0x1be   : > { %3237 = vmatprep.mubr.bf16.mxu0 %v6928_v16  ;;  %6488 = vmatpush3.bf16.msra.mxu0 %v8062_v30  ;;  %v6930_v30 = vld [vmem:[#allocation2 + $0x34] ss:$12 sps:$4 sm:$0xff]  }
 0x1bf   : > { %6489 = vmatprep.subr.bf16.mxu0 %v6808_v2  ;;  %v6853_v16 = vld [vmem:[%s9392_s4 + $0x180] sm:$0xff]  }
 0x1c2   : > { %6490 = vmatpush3.bf16.msra.mxu0 %v6808_v2  ;;  %v6822_v2 = vld [vmem:[#allocation2 + $0x68] ss:$12 sps:$4 sm:$0xff]  }
 0x1c3   : > { %2860 = vmatmul.mubr.bf16.gmra.mxu1 %v8333_v21  ;;  %6491 = vmatprep.subr.bf16.mxu0 %v6809_v29 }
 0x1c4   : > { %2867 = vmatprep.mubr.bf16.mxu1 %v6803_v22 }
 0x1c5   : > { %3238 = vmatmul.mubr.bf16.gmra.mxu0 %v6929_v62 }
 0x1c6   : > { %3245 = vmatprep.mubr.bf16.mxu0 %v6930_v30  ;;  %6492 = vmatpush3.bf16.msra.mxu0 %v6809_v29 }
 0x1c7   : > { %6493 = vmatprep.subr.bf16.mxu0 %v6811_v18 }
 0x1ca   : > { %6494 = vmatpush3.bf16.msra.mxu0 %v6811_v18 }
 0x1cb   : > { %2868 = vmatmul.mubr.bf16.gmra.mxu1 %v6805_v37  ;;  %6495 = vmatprep.subr.bf16.mxu0 %v6813_v45 }
 0x1cc   : > { %3317 = vmatprep.mubr.bf16.mxu1 %v8255_v43  ;;  %v6819_v43 = vld [vmem:[%s9392_s4 + $0x200] sm:$0xff]  }
 0x1cd   : > { %3246 = vmatmul.mubr.bf16.gmra.mxu0 %v6931_v0 }
 0x1ce   : > { %3253 = vmatprep.mubr.bf16.mxu0 %v6932_v3  ;;  %6496 = vmatpush3.bf16.msra.mxu0 %v6813_v45 }
 0x1cf   : > { %6497 = vmatprep.subr.bf16.mxu0 %v6815_v61 }
 0x1d2   : > { %6498 = vmatpush3.bf16.msra.mxu0 %v6815_v61 }
 0x1d3   : > { %3318 = vmatmul.mubr.bf16.vlgmr.msra.gmra.mxu1 %v8276_v36  ;;  %6499 = vmatprep.subr.bf16.mxu0 %v6817_v48  ;;  %v6814_v36 = vld [vmem:[%s9392_s4 + $0xa0] sm:$0xff]  }
 0x1d4   : > { %6440 = vmatpush3.bf16.msra.mxu1 %v8052_v14  ;;  %3325 = vmatprep.mubr.bf16.mxu1 %v8281_v6  ;;  %v6935_v14 = vld [vmem:[#allocation2 + $0x60] ss:$12 sps:$4 sm:$0xff]   ;;  %v6816_v6 = vld [vmem:[%s9392_s4 + $0x98] sm:$0xff]  }
 0x1d5   : > { %3254 = vmatmul.mubr.bf16.gmra.mxu0 %v6933_v17  ;;  %6441 = vmatprep.subr.bf16.mxu1 %v6810_v9 }
 0x1d6   : > { %3261 = vmatprep.mubr.bf16.mxu0 %v6934_v12  ;;  %6500 = vmatpush3.bf16.msra.mxu0 %v6817_v48 }
 0x1d7   : > { %6501 = vmatprep.subr.bf16.mxu0 %v6819_v43 }
 0x1d8   : > { %6442 = vmatpush3.bf16.msra.mxu1 %v6810_v9 }
 0x1d9   : > { %6443 = vmatprep.subr.bf16.mxu1 %v6812_v44 }
 0x1da   : > { %6502 = vmatpush3.bf16.msra.mxu0 %v6819_v43 }
 0x1db   : > { %3326 = vmatmul.mubr.bf16.gmra.mxu1 %v8296_v38  ;;  %v6941_v38 = vld [vmem:[#allocation2 + $0x80] ss:$12 sps:$4 sm:$0xff]  }
 0x1dc   : > { %3333 = vmatprep.mubr.bf16.mxu1 %v8298_v63  ;;  %6444 = vmatpush3.bf16.msra.mxu1 %v6812_v44  ;;  %v6942_v63 = vld [vmem:[#allocation2 + $0x98] ss:$12 sps:$4 sm:$0xff]  }
 0x1dd   : > { %3262 = vmatmul.mubr.bf16.gmra.mxu0 %v6935_v14  ;;  %6445 = vmatprep.subr.bf16.mxu1 %v6814_v36 }
 0x1de   : > { %3269 = vmatprep.mubr.bf16.mxu0 %v6936_v57 }
 0x1e0   : > { %6446 = vmatpush3.bf16.msra.mxu1 %v6814_v36  ;;  %v6830_v36 = vld [vmem:[#allocation2 + $0xb0] ss:$12 sps:$4 sm:$0xff]  }
 0x1e1   : > { %6447 = vmatprep.subr.bf16.mxu1 %v6816_v6 }
 0x1e3   : > { %3334 = vmatmul.mubr.bf16.gmra.mxu1 %v8305_v51  ;;  %v6849_v51 = vld [vmem:[%s9392_s4 + $0x190] sm:$0xff]  }
 0x1e4   : > { %3341 = vmatprep.mubr.bf16.mxu1 %v8307_v58  ;;  %6448 = vmatpush3.bf16.msra.mxu1 %v6816_v6  ;;  %v6850_v58 = vld [vmem:[%s9392_s4 + $0x1c8] sm:$0xff]  }
 0x1e5   : > { %3270 = vmatmul.mubr.bf16.gmra.mxu0 %v8001_v28  ;;  %6449 = vmatprep.subr.bf16.mxu1 %v6820_v13  ;;  %v6828_v28 = vld [vmem:[%s9392_s4 + $0x1f8] sm:$0xff]  }
 0x1e6   : > { %3277 = vmatprep.mubr.bf16.mxu0 %v8003_v4  ;;  %v6827_v4 = vld [vmem:[#allocation2 + $0x8] ss:$12 sps:$4 sm:$0xff]  }
 0x1e8   : > { %6450 = vmatpush3.bf16.msra.mxu1 %v6820_v13 }
 0x1e9   : > { %6451 = vmatprep.subr.bf16.mxu1 %v6823_v25 }
 0x1eb   : > { %3342 = vmatmul.mubr.bf16.gmra.mxu1 %v8319_v23  ;;  %v6821_v23 = vld [vmem:[#allocation2 + $0x50] ss:$12 sps:$4 sm:$0xff]  }
 0x1ec   : > { %3349 = vmatprep.mubr.bf16.mxu1 %v8321_v47  ;;  %6452 = vmatpush3.bf16.msra.mxu1 %v6823_v25 }
 0x1ed   : > { %3278 = vmatmul.mubr.bf16.gmra.mxu0 %v8057_v1  ;;  %6453 = vmatprep.subr.bf16.mxu1 %v6824_v24  ;;  %v6829_v1 = vld [vmem:[%s9392_s4 + $0x1b8] sm:$0xff]  }
 0x1ee   : > { %3285 = vmatprep.mubr.bf16.mxu0 %v8067_v27  ;;  %v6938_v27 = vld [vmem:[#allocation2 + $0x38] ss:$12 sps:$4 sm:$0xff]  }
 0x1f0   : > { %6454 = vmatpush3.bf16.msra.mxu1 %v6824_v24 }
 0x1f1   : > { %6165 = vmatprep.subr.bf16.mxu1 %v6828_v28 }
 0x1f3   : > { %3350 = vmatmul.mubr.bf16.gmra.mxu1 %v8333_v21 }
 0x1f4   : > { %6455 = vmatprep.mubr.bf16.mxu1 %v6827_v4 }
 0x1f5   : > { %3286 = vmatmul.mubr.bf16.gmra.mxu0 %v8125_v31  ;;  %v6836_v31 = vld [vmem:[%s9392_s4 + $0x1e8] sm:$0xff]  }
 0x1f6   : > { %3293 = vmatprep.mubr.bf16.mxu0 %v8135_v50  ;;  %v6837_v50 = vld [vmem:[%s9392_s4 + $0x1a8] sm:$0xff]  }
 0x1fb   : > { %6456 = vmatmul.mubr.bf16.vlgmr.msra.gmra.mxu1 %v6937_v49 }
 0x1fc   : > { %6166 = vmatpush3.bf16.msra.mxu1 %v6829_v1  ;;  %6459 = vmatprep.mubr.bf16.mxu1 %v6938_v27 }
 0x1fd   : > { %3294 = vmatmul.mubr.bf16.gmra.mxu0 %v8167_v26  ;;  %6167 = vmatprep.subr.bf16.mxu1 %v6832_v19  ;;  %v6940_v26 = vld [vmem:[#allocation2 + $0x68] ss:$12 sps:$4 sm:$0xff]   ;;  %v6834_v19 = vld [vmem:[#allocation2 + $0xe0] ss:$12 sps:$4 sm:$0xff]  }
 0x1fe   : > { %3301 = vmatprep.mubr.bf16.mxu0 %v8176_v5  ;;  %v6844_v5 = vld [vmem:[%s9392_s4 + $0x1d8] sm:$0xff]  }
 0x200   : > { %6168 = vmatpush3.bf16.msra.mxu1 %v6833_v54 }
 0x201   : > { %6169 = vmatprep.subr.bf16.mxu1 %v6836_v31 }
 0x203   : > { %6460 = vmatmul.mubr.bf16.gmra.mxu1 %v6939_v10 }
 0x204   : > { %6463 = vmatprep.mubr.bf16.mxu1 %v6940_v26  ;;  %6170 = vmatpush3.bf16.msra.mxu1 %v6837_v50 }
 0x205   : > { %3302 = vmatmul.mubr.bf16.gmra.mxu0 %v8215_v52  ;;  %6171 = vmatprep.subr.bf16.mxu1 %v6840_v40  ;;  %v6818_v52 = vld [vmem:[#allocation2 + $0x38] ss:$12 sps:$4 sm:$0xff]  }
 0x206   : > { %3309 = vmatprep.mubr.bf16.mxu0 %v8217_v41 }
 0x208   : > { %6172 = vmatpush3.bf16.msra.mxu1 %v6841_v39  ;;  %v6856_v39 = vld [vmem:[#allocation2 + $0x34] ss:$12 sps:$4 sm:$0xff]  }
 0x209   : > { %6173 = vmatprep.subr.bf16.mxu1 %v6844_v5  ;;  %v6838_v5 = vld [vmem:[#allocation2 + $0x110] ss:$12 sps:$4 sm:$0xff]  }
 0x20b   : > { %6464 = vmatmul.mubr.bf16.gmra.mxu1 %v6941_v38 }
 0x20c   : > { %6467 = vmatprep.mubr.bf16.mxu1 %v6942_v63  ;;  %6174 = vmatpush3.bf16.msra.mxu1 %v6845_v11 }
 0x20d   : > { %3310 = vmatmul.mubr.bf16.gmra.mxu0 %v8249_v56  ;;  %6175 = vmatprep.subr.bf16.mxu1 %v6848_v8 }
 0x20e   : > { %6503 = vmatprep.mubr.bf16.mxu0 %v6818_v52 }
 0x210   : > { %6176 = vmatpush3.bf16.msra.mxu1 %v6849_v51  ;;  %v5909_v47 = vpop.f32.mrf.mxu1 }
 0x211   : > { %6177 = vmatprep.subr.bf16.mxu1 %v6850_v58 }
 0x212   : > { %v5910_v29 = vpop.f32.mrf.mxu1 }
 0x213   : > { %6468 = vmatmul.mubr.bf16.gmra.mxu1 %v8084_v55  ;;  %v5911_v21 = vadd.f32 %v5910_v29, %v5909_v47  ;;  %v6825_v55 = vld [vmem:[#allocation2 + $0x80] ss:$12 sps:$4 sm:$0xff]   ;;  %v6843_v29 = vld [vmem:[#allocation2 + $0x158] ss:$12 sps:$4 sm:$0xff]  }
 0x214   : > { %6471 = vmatprep.mubr.bf16.mxu1 %v8113_v7  ;;  %6178 = vmatpush3.bf16.msra.mxu1 %v6851_v20  ;;  %v5912_v22 = vpop.f32.mrf.mxu1  ;;  %v6826_v7 = vld [vmem:[#allocation2 + $0x98] ss:$12 sps:$4 sm:$0xff]  }
 0x215   : > { %6504 = vmatmul.mubr.bf16.vlgmr.msra.gmra.mxu0 %v6821_v23  ;;  %6179 = vmatprep.subr.bf16.mxu1 %v6852_v33  ;;  %v6854_v33 = vld [vmem:[#allocation2 + $0x30] ss:$12 sps:$4 sm:$0xff]  }
 0x216   : > { %6507 = vmatprep.mubr.bf16.mxu0 %v6822_v2  ;;  %v6409_v18 = vpop.f32.mrf.mxu0  ;;  %v5913_v62 = vpop.f32.mrf.mxu1  ;;  %v6859_v2 = vld [vmem:[#allocation2 + $0x4c] ss:$12 sps:$4 sm:$0xff]  }
 0x217   : > { %v8444_v30 = vadd.f32 %v5913_v62, %v5912_v22 }
 0x218   : > { %6180 = vmatpush3.bf16.msra.mxu1 %v6853_v16  ;;  %v2910_v45 = vpop.f32.mrf.mxu0  ;;  %v5915_v37 = vpop.f32.mrf.mxu1 }
 0x219   : > { %v8447_v61 = vadd.f32 %v5911_v21, %v2910_v45 }
 0x21a   : > { %v6410_v0 = vpop.f32.mrf.mxu0  ;;  %v5916_v3 = vpop.f32.mrf.mxu1 }
 0x21b   : > { %6472 = vmatmul.mubr.bf16.gmra.mxu1 %v8161_v34  ;;  %v5917_v48 = vadd.f32 %v5916_v3, %v5915_v37  ;;  %v6831_v34 = vld [vmem:[#allocation2 + $0xc8] ss:$12 sps:$4 sm:$0xff]   ;;  %v6862_v3 = vld [vmem:[#allocation2 + $0x64] ss:$12 sps:$4 sm:$0xff]  }
 0x21c   : > { %6475 = vmatprep.mubr.bf16.mxu1 %v8203_v15  ;;  %v5918_v9 = vpop.f32.mrf.mxu1  ;;  %v8452_v17 = vpop.f32.mrf.mxu0  ;;  %v6857_v37 = vld [vmem:[#allocation2 + $0x48] ss:$12 sps:$4 sm:$0xff]  }
 0x21d   : > { %6508 = vmatmul.mubr.bf16.gmra.mxu0 %v6825_v55  ;;  %v8450_v43 = vadd.f32 %v6409_v18, %v5917_v48  ;;  %v6846_v48 = vld [vmem:[#allocation2 + $0x170] ss:$12 sps:$4 sm:$0xff]  }
 0x21e   : > { %6511 = vmatprep.mubr.bf16.mxu0 %v6826_v7  ;;  %v5919_v44 = vpop.f32.mrf.mxu1 }
 0x21f   : > { %v5920_v12 = vadd.f32 %v5919_v44, %v5918_v9  ;;  %v6847_v44 = vld [vmem:[#allocation2 + $0x188] ss:$12 sps:$4 sm:$0xff]  }
 0x221   : > { %v5921_v14 = vpop.f32.mrf.mxu1  ;;  %v8455_v6 = vadd.f32 %v6410_v0, %v5920_v12 }
 0x223   : > { %6476 = vmatmul.mubr.bf16.gmra.mxu1 %v8244_v35  ;;  %v6413_v15 = vpop.f32.mrf.mxu0  ;;  %v5922_v57 = vpop.f32.mrf.mxu1  ;;  %v6835_v35 = vld [vmem:[#allocation2 + $0xf8] ss:$12 sps:$4 sm:$0xff]  }
 0x224   : > { %6479 = vmatprep.mubr.bf16.mxu1 %v8259_v42  ;;  %v5923_v13 = vadd.f32 %v5922_v57, %v5921_v14 }
 0x225   : > { %6512 = vmatmul.mubr.bf16.gmra.mxu0 %v6830_v36  ;;  %v2926_v25 = vpop.f32.mrf.mxu0  ;;  %v5924_v24 = vpop.f32.mrf.mxu1 }
 0x226   : > { %6515 = vmatprep.mubr.bf16.mxu0 %v6831_v34  ;;  %v8458_v28 = vadd.f32 %v5923_v13, %v2926_v25  ;;  %v6860_v25 = vld [vmem:[#allocation2 + $0x60] ss:$12 sps:$4 sm:$0xff]  }
 0x227   : > { %v5925_v4 = vpop.f32.mrf.mxu1  ;;  %v6414_v42 = vpop.f32.mrf.mxu0 }
 0x228   : > { %v8460_v1 = vadd.f32 %v5925_v4, %v5924_v24 }
 0x229   : > { %v8466_v40 = vpop.f32.mrf.mxu0 }
 0x22a   : > { %v5927_v49 = vpop.f32.mrf.mxu1 }
 0x22b   : > { %6480 = vmatmul.mubr.bf16.gmra.mxu1 %v8285_v53  ;;  %v6839_v53 = vld [vmem:[#allocation2 + $0x128] ss:$12 sps:$4 sm:$0xff]  }
 0x22c   : > { %6483 = vmatprep.mubr.bf16.mxu1 %v8300_v59  ;;  %v5928_v27 = vpop.f32.mrf.mxu1 }
 0x22d   : > { %6516 = vmatmul.mubr.bf16.gmra.mxu0 %v6834_v19  ;;  %v5929_v54 = vadd.f32 %v5928_v27, %v5927_v49  ;;  %v6865_v19 = vld [vmem:[#allocation2 + $0x7c] ss:$12 sps:$4 sm:$0xff]  }
 0x22e   : > { %6519 = vmatprep.mubr.bf16.mxu0 %v6835_v35  ;;  %v5930_v31 = vpop.f32.mrf.mxu1 }
 0x22f   : > { %v8464_v50 = vadd.f32 %v6413_v15, %v5929_v54 }
 0x230   : > { %v5931_v10 = vpop.f32.mrf.mxu1 }
 0x231   : > { %v5932_v26 = vadd.f32 %v5931_v10, %v5930_v31 }
 0x232   : > { %v5933_v11 = vpop.f32.mrf.mxu1 }
 0x233   : > { %6484 = vmatmul.mubr.bf16.gmra.mxu1 %v8309_v32  ;;  %v8469_v8 = vadd.f32 %v6414_v42, %v5932_v26  ;;  %v6417_v59 = vpop.f32.mrf.mxu0  ;;  %v6842_v32 = vld [vmem:[#allocation2 + $0x140] ss:$12 sps:$4 sm:$0xff]   ;;  %v6863_v26 = vld [vmem:[#allocation2 + $0x78] ss:$12 sps:$4 sm:$0xff]  }
 0x234   : > { %4064 = vmatprep.mubr.bf16.mxu1 %v6856_v39  ;;  %v5934_v38 = vpop.f32.mrf.mxu1 }
 0x235   : > { %6520 = vmatmul.mubr.bf16.gmra.mxu0 %v6838_v5  ;;  %v5935_v52 = vadd.f32 %v5934_v38, %v5933_v11  ;;  %v2942_v63 = vpop.f32.mrf.mxu0  ;;  %v6896_v5 = vld [vmem:[#allocation2 + $0x1a0] ss:$12 sps:$4 sm:$0xff]  }
 0x236   : > { %6523 = vmatprep.mubr.bf16.mxu0 %v6839_v53  ;;  %v5936_v51 = vpop.f32.mrf.mxu1  ;;  %v6868_v53 = vld [vmem:[#allocation2 + $0x94] ss:$12 sps:$4 sm:$0xff]  }
 0x237   : > { %v8471_v58 = vadd.f32 %v5935_v52, %v2942_v63  ;;  %v6418_v20 = vpop.f32.mrf.mxu0 }
 0x238   : > { %v5937_v23 = vpop.f32.mrf.mxu1 }
 0x239   : > { %v8473_v47 = vadd.f32 %v5937_v23, %v5936_v51  ;;  %v8475_v21 = vpop.f32.mrf.mxu0 }
 0x23b   : > { %v5939_v16 = vpop.f32.mrf.mxu1  ;;  %4065 = vmatmul.mubr.bf16.vlgmr.msra.gmra.mxu1 %v6854_v33 }
 0x23c   : > { %4072 = vmatprep.mubr.bf16.mxu1 %v6859_v2 }
 0x23d   : > { %6524 = vmatmul.mubr.bf16.gmra.mxu0 %v6842_v32  ;;  %v5940_v22 = vpop.f32.mrf.mxu1  ;;  %v6866_v32 = vld [vmem:[#allocation2 + $0x90] ss:$12 sps:$4 sm:$0xff]  }
 0x23e   : > { %6527 = vmatprep.mubr.bf16.mxu0 %v6843_v29  ;;  %v5941_v18 = vadd.f32 %v5940_v22, %v5939_v16  ;;  %v6871_v22 = vld [vmem:[#allocation2 + $0xac] ss:$12 sps:$4 sm:$0xff]  }
 0x23f   : > { %v5942_v62 = vpop.f32.mrf.mxu1  ;;  %v6421_v45 = vpop.f32.mrf.mxu0 }
 0x240   : > { %v8477_v55 = vadd.f32 %v6417_v59, %v5941_v18 }
 0x241   : > { %v5943_v7 = vpop.f32.mrf.mxu1  ;;  %v2958_v36 = vpop.f32.mrf.mxu0 }
 0x242   : > { %v5944_v0 = vadd.f32 %v5943_v7, %v5942_v62 }
 0x243   : > { %v5945_v9 = vpop.f32.mrf.mxu1  ;;  %4073 = vmatmul.mubr.bf16.gmra.mxu1 %v6857_v37  ;;  %v6422_v13 = vpop.f32.mrf.mxu0 }
 0x244   : > { %v8479_v12 = vadd.f32 %v6418_v20, %v5944_v0  ;;  %4080 = vmatprep.mubr.bf16.mxu1 %v6862_v3 }
 0x245   : > { %6528 = vmatmul.mubr.bf16.gmra.mxu0 %v6846_v48  ;;  %v5946_v14 = vpop.f32.mrf.mxu1  ;;  %v8485_v35 = vpop.f32.mrf.mxu0  ;;  %v6869_v48 = vld [vmem:[#allocation2 + $0xa8] ss:$12 sps:$4 sm:$0xff]  }
 0x246   : > { %6531 = vmatprep.mubr.bf16.mxu0 %v6847_v44  ;;  %v5947_v34 = vadd.f32 %v5946_v14, %v5945_v9 }
 0x247   : > { %v5948_v15 = vpop.f32.mrf.mxu1 }
 0x248   : > { %v8481_v57 = vadd.f32 %v5947_v34, %v2958_v36  ;;  %v6874_v36 = vld [vmem:[#allocation2 + $0xc4] ss:$12 sps:$4 sm:$0xff]  }
 0x249   : > { %v5949_v24 = vpop.f32.mrf.mxu1 }
 0x24a   : > { %v8483_v4 = vadd.f32 %v5949_v24, %v5948_v15 }
 0x24b   : > { %v5951_v49 = vpop.f32.mrf.mxu1  ;;  %4081 = vmatmul.mubr.bf16.gmra.mxu1 %v6860_v25 }
 0x24c   : > { %4088 = vmatprep.mubr.bf16.mxu1 %v6865_v19 }
 0x24d   : > { %v5952_v42 = vpop.f32.mrf.mxu1  ;;  %6532 = vmatmul.mubr.bf16.gmra.mxu0 %v6896_v5 }
 0x24e   : > { %v5953_v27 = vadd.f32 %v5952_v42, %v5951_v49  ;;  %v6872_v42 = vld [vmem:[#allocation2 + $0xc0] ss:$12 sps:$4 sm:$0xff]  }
 0x24f   : > { %v5954_v54 = vpop.f32.mrf.mxu1 }
 0x250   : > { %v8487_v31 = vadd.f32 %v6421_v45, %v5953_v27 }
 0x251   : > { %v6425_v10 = vpop.f32.mrf.mxu0  ;;  %v5955_v39 = vpop.f32.mrf.mxu1 }
 0x252   : > { %v5956_v11 = vadd.f32 %v5955_v39, %v5954_v54 }
 0x253   : > { %v2974_v59 = vpop.f32.mrf.mxu0  ;;  %v5957_v38 = vpop.f32.mrf.mxu1  ;;  %4089 = vmatmul.mubr.bf16.gmra.mxu1 %v6863_v26 }
 0x254   : > { %v8489_v52 = vadd.f32 %v6422_v13, %v5956_v11  ;;  %4096 = vmatprep.mubr.bf16.mxu1 %v6868_v53 }
 0x255   : > { %v6426_v63 = vpop.f32.mrf.mxu0  ;;  %v5958_v51 = vpop.f32.mrf.mxu1 }
 0x256   : > { %v5959_v20 = vadd.f32 %v5958_v51, %v5957_v38  ;;  %v6875_v51 = vld [vmem:[#allocation2 + $0xd8] ss:$12 sps:$4 sm:$0xff]  }
 0x257   : > { %v5960_v33 = vpop.f32.mrf.mxu1  ;;  %v8493_v2 = vpop.f32.mrf.mxu0 }
 0x258   : > { %v8491_v23 = vadd.f32 %v5959_v20, %v2974_v59 }
 0x259   : > { %v5961_v16 = vpop.f32.mrf.mxu1 }
 0x25a   : > { %v8495_v29 = vadd.f32 %v5961_v16, %v5960_v33 }
 0x25b   : > { %v5963_v18 = vpop.f32.mrf.mxu1  ;;  %4097 = vmatmul.mubr.bf16.gmra.mxu1 %v6866_v32 }
 0x25c   : > { %4104 = vmatprep.mubr.bf16.mxu1 %v6871_v22  ;;  %v6429_v62 = vpop.f32.mrf.mxu0 }
 0x25d   : > { %v5964_v45 = vpop.f32.mrf.mxu1 }
 0x25e   : > { %v5965_v37 = vadd.f32 %v5964_v45, %v5963_v18  ;;  %v2990_v0 = vpop.f32.mrf.mxu0 }
 0x25f   : > { %v5966_v7 = vpop.f32.mrf.mxu1 }
 0x260   : > { %v8497_v3 = vadd.f32 %v6425_v10, %v5965_v37  ;;  %v6430_v34 = vpop.f32.mrf.mxu0  ;;  %v6877_v10 = vld [vmem:[#allocation2 + $0xdc] ss:$12 sps:$4 sm:$0xff]  }
 0x261   : > { %v5967_v9 = vpop.f32.mrf.mxu1 }
 0x262   : > { %v5968_v44 = vadd.f32 %v5967_v9, %v5966_v7  ;;  %v8501_v19 = vpop.f32.mrf.mxu0 }
 0x263   : > { %v5969_v14 = vpop.f32.mrf.mxu1  ;;  %4105 = vmatmul.mubr.bf16.gmra.mxu1 %v6869_v48 }
 0x264   : > { %v8499_v15 = vadd.f32 %v6426_v63, %v5968_v44  ;;  %4112 = vmatprep.mubr.bf16.mxu1 %v6874_v36  ;;  %v6880_v36 = vld [vmem:[#allocation2 + $0x10c] ss:$12 sps:$4 sm:$0xff]  }
 0x265   : > { %v5970_v13 = vpop.f32.mrf.mxu1 }
 0x266   : > { %v5971_v25 = vadd.f32 %v5970_v13, %v5969_v14 }
 0x267   : > { %v5972_v24 = vpop.f32.mrf.mxu1 }
 0x268   : > { %v8503_v49 = vadd.f32 %v5971_v25, %v2990_v0 }
 0x269   : > { %v5973_v27 = vpop.f32.mrf.mxu1 }
 0x26a   : > { %v8505_v54 = vadd.f32 %v5973_v27, %v5972_v24 }
 0x26b   : > { %v5975_v26 = vpop.f32.mrf.mxu1  ;;  %4113 = vmatmul.mubr.bf16.gmra.mxu1 %v6872_v42 }
 0x26c   : > { %v6433_v39 = vpop.f32.mrf.mxu0  ;;  %4120 = vmatprep.mubr.bf16.mxu1 %v6877_v10 }
 0x26d   : > { %v5976_v5 = vpop.f32.mrf.mxu1 }
 0x26e   : > { %v3006_v11 = vpop.f32.mrf.mxu0  ;;  %v5977_v53 = vadd.f32 %v5976_v5, %v5975_v26  ;;  %v6878_v5 = vld [vmem:[#allocation2 + $0x108] ss:$12 sps:$4 sm:$0xff]  }
 0x26f   : > { %v5978_v59 = vpop.f32.mrf.mxu1 }
 0x270   : > { %v6434_v38 = vpop.f32.mrf.mxu0  ;;  %v8507_v63 = vadd.f32 %v6429_v62, %v5977_v53 }
 0x271   : > { %v5979_v20 = vpop.f32.mrf.mxu1 }
 0x272   : > { %v8509_v33 = vpop.f32.mrf.mxu0  ;;  %v5980_v32 = vadd.f32 %v5979_v20, %v5978_v59  ;;  %v6883_v59 = vld [vmem:[#allocation2 + $0x124] ss:$12 sps:$4 sm:$0xff]  }
 0x273   : > { %v5981_v16 = vpop.f32.mrf.mxu1  ;;  %4121 = vmatmul.mubr.bf16.gmra.mxu1 %v6875_v51 }
 0x274   : > { %v8511_v22 = vadd.f32 %v6430_v34, %v5980_v32  ;;  %4128 = vmatprep.mubr.bf16.mxu1 %v8217_v41 }
 0x275   : > { %v6437_v18 = vpop.f32.mrf.mxu0  ;;  %v5982_v45 = vpop.f32.mrf.mxu1 }
 0x276   : > { %v5983_v37 = vadd.f32 %v5982_v45, %v5981_v16 }
 0x277   : > { %v3022_v7 = vpop.f32.mrf.mxu0  ;;  %v5984_v0 = vpop.f32.mrf.mxu1 }
 0x278   : > { %v8514_v48 = vadd.f32 %v5983_v37, %v3006_v11 }
 0x279   : > { %v8516_v62 = vpop.f32.mrf.mxu0  ;;  %v5985_v9 = vpop.f32.mrf.mxu1 }
 0x27a   : > { %v8518_v44 = vadd.f32 %v5985_v9, %v5984_v0 }
 0x27b   : > { %v8520_v14 = vpop.f32.mrf.mxu0  ;;  %v5987_v13 = vpop.f32.mrf.mxu1  ;;  %4129 = vmatmul.mubr.bf16.gmra.mxu1 %v8249_v56  ;;  %v2914_v56 = vadd.f32 %v8444_v30, %v8452_v17  ;;  %v6886_v30 = vld [vmem:[#allocation2 + $0x13c] ss:$12 sps:$4 sm:$0xff]  }
 0x27c   : > { %4136 = vmatprep.mubr.bf16.mxu1 %v6880_v36 }
 0x27d   : > { %v6045_v41 = vpop.f32.mrf.mxu0  ;;  %v5988_v34 = vpop.f32.mrf.mxu1 }
 0x27e   : > { %v5989_v25 = vadd.f32 %v5988_v34, %v5987_v13 }
 0x27f   : > { %v6046_v24 = vpop.f32.mrf.mxu0  ;;  %v5990_v42 = vpop.f32.mrf.mxu1 }
 0x280   : > { %v6047_v27 = vadd.f32 %v6046_v24, %v6045_v41  ;;  %v8523_v10 = vadd.f32 %v6433_v39, %v5989_v25  ;;  %v6881_v25 = vld [vmem:[#allocation2 + $0x120] ss:$12 sps:$4 sm:$0xff]  }
 0x281   : > { %v6048_v26 = vpop.f32.mrf.mxu0  ;;  %v5991_v11 = vpop.f32.mrf.mxu1 }
 0x282   : > { %v5992_v53 = vadd.f32 %v5991_v11, %v5990_v42  ;;  %v8526_v51 = vadd.f32 %v6047_v27, %v8447_v61 }
 0x283   : > { %v6049_v20 = vpop.f32.mrf.mxu0  ;;  %v5993_v32 = vpop.f32.mrf.mxu1  ;;  %4137 = vmatmul.mubr.bf16.gmra.mxu1 %v6878_v5 }
 0x284   : > { %v6050_v16 = vadd.f32 %v6049_v20, %v6048_v26  ;;  %v8530_v45 = vadd.f32 %v6434_v38, %v5992_v53  ;;  %4144 = vmatprep.mubr.bf16.mxu1 %v6883_v59 }
 0x285   : > { %v6051_v39 = vpop.f32.mrf.mxu0  ;;  %v5994_v37 = vpop.f32.mrf.mxu1 }
 0x286   : > { %v5995_v0 = vadd.f32 %v5994_v37, %v5993_v32  ;;  %v8532_v9 = vadd.f32 %v6050_v16, %v2914_v56 }
 0x287   : > { %v6052_v36 = vpop.f32.mrf.mxu0  ;;  %v5996_v13 = vpop.f32.mrf.mxu1 }
 0x288   : > { %v6053_v41 = vadd.f32 %v6052_v36, %v6051_v39  ;;  %v8534_v61 = vadd.f32 %v5995_v0, %v3022_v7  ;;  %v6884_v39 = vld [vmem:[#allocation2 + $0x138] ss:$12 sps:$4 sm:$0xff]   ;;  %v6889_v0 = vld [vmem:[#allocation2 + $0x154] ss:$12 sps:$4 sm:$0xff]  }
 0x289   : > { %v6054_v34 = vpop.f32.mrf.mxu0  ;;  %v5997_v24 = vpop.f32.mrf.mxu1 }
 0x28a   : > { %v8536_v42 = vadd.f32 %v5997_v24, %v5996_v13  ;;  %v8539_v17 = vadd.f32 %v6053_v41, %v8450_v43 }
 0x28b   : > { %v6055_v38 = vpop.f32.mrf.mxu0  ;;  %v5999_v27 = vpop.f32.mrf.mxu1  ;;  %4145 = vmatmul.mubr.bf16.gmra.mxu1 %v6881_v25 }
 0x28c   : > { %v6056_v26 = vadd.f32 %v6055_v38, %v6054_v34  ;;  %4152 = vmatprep.mubr.bf16.mxu1 %v6886_v30 }
 0x28d   : > { %v6057_v5 = vpop.f32.mrf.mxu0  ;;  %v6000_v11 = vpop.f32.mrf.mxu1 }
 0x28e   : > { %v6001_v53 = vadd.f32 %v6000_v11, %v5999_v27  ;;  %v8542_v7 = vadd.f32 %v6056_v26, %v8455_v6  ;;  %v2930_v6 = vadd.f32 %v8460_v1, %v8466_v40  ;;  %v6892_v40 = vld [vmem:[#allocation2 + $0x16c] ss:$12 sps:$4 sm:$0xff]  }
 0x28f   : > { %v6058_v59 = vpop.f32.mrf.mxu0  ;;  %v6002_v20 = vpop.f32.mrf.mxu1 }
 0x290   : > { %v6059_v32 = vadd.f32 %v6058_v59, %v6057_v5  ;;  %v8544_v56 = vadd.f32 %v6437_v18, %v6001_v53  ;;  %v6887_v53 = vld [vmem:[#allocation2 + $0x150] ss:$12 sps:$4 sm:$0xff]  }
 0x291   : > { %v6060_v16 = vpop.f32.mrf.mxu0  ;;  %v6003_v43 = vpop.f32.mrf.mxu1 }
 0x292   : > { %v6004_v37 = vadd.f32 %v6003_v43, %v6002_v20  ;;  %v8547_v36 = vadd.f32 %v6059_v32, %v8458_v28 }
 0x293   : > { %v6061_v13 = vpop.f32.mrf.mxu0  ;;  %v6111_v41 = vpop.f32.mrf.mxu1  ;;  %4153 = vmatmul.mubr.bf16.gmra.mxu1 %v6884_v39 }
 0x294   : > { %v6062_v34 = vadd.f32 %v6061_v13, %v6060_v16  ;;  %v8552_v25 = vadd.f32 %v8516_v62, %v6004_v37  ;;  %4160 = vmatprep.mubr.bf16.mxu1 %v6889_v0 }
 0x295   : > { %v6063_v18 = vpop.f32.mrf.mxu0  ;;  %v6112_v24 = vpop.f32.mrf.mxu1 }
 0x296   : > { %v6113_v30 = vadd.f32 %v6112_v24, %v6111_v41  ;;  %v8554_v38 = vadd.f32 %v6062_v34, %v2930_v6 }
 0x297   : > { %v6064_v27 = vpop.f32.mrf.mxu0  ;;  %v6114_v26 = vpop.f32.mrf.mxu1 }
 0x298   : > { %v6065_v28 = vadd.f32 %v6064_v27, %v6063_v18  ;;  %v8557_v5 = vadd.f32 %v6113_v30, %v8507_v63  ;;  %v6890_v18 = vld [vmem:[#allocation2 + $0x168] ss:$12 sps:$4 sm:$0xff]   ;;  %v3010_v30 = vadd.f32 %v8518_v44, %v8509_v33  ;;  %v6895_v27 = vld [vmem:[#allocation2 + $0x184] ss:$12 sps:$4 sm:$0xff]  }
 0x299   : > { %v6066_v11 = vpop.f32.mrf.mxu0  ;;  %v6115_v59 = vpop.f32.mrf.mxu1 }
 0x29a   : > { %v6116_v1 = vadd.f32 %v6115_v59, %v6114_v26  ;;  %v8560_v62 = vadd.f32 %v6065_v28, %v8464_v50 }
 0x29b   : > { %v6067_v20 = vpop.f32.mrf.mxu0  ;;  %v6117_v32 = vpop.f32.mrf.mxu1  ;;  %4161 = vmatmul.mubr.bf16.gmra.mxu1 %v6887_v53 }
 0x29c   : > { %v6068_v16 = vadd.f32 %v6067_v20, %v6066_v11  ;;  %4168 = vmatprep.mubr.bf16.mxu1 %v6892_v40  ;;  %v8563_v39 = vadd.f32 %v6116_v1, %v8511_v22  ;;  %v2946_v11 = vadd.f32 %v8473_v47, %v8475_v21 }
 0x29d   : > { %v6069_v43 = vpop.f32.mrf.mxu0  ;;  %v6118_v37 = vpop.f32.mrf.mxu1 }
 0x29e   : > { %v6119_v63 = vadd.f32 %v6118_v37, %v6117_v32  ;;  %v8566_v0 = vadd.f32 %v6068_v16, %v8469_v8 }
 0x29f   : > { %v6070_v13 = vpop.f32.mrf.mxu0  ;;  %v6120_v41 = vpop.f32.mrf.mxu1 }
 0x2a0   : > { %v6071_v6 = vadd.f32 %v6070_v13, %v6069_v43  ;;  %v8569_v50 = vadd.f32 %v6119_v63, %v8514_v48  ;;  %v6893_v43 = vld [vmem:[#allocation2 + $0x180] ss:$12 sps:$4 sm:$0xff]  }
 0x2a1   : > { %v6072_v34 = vpop.f32.mrf.mxu0  ;;  %v6121_v24 = vpop.f32.mrf.mxu1 }
 0x2a2   : > { %v6122_v22 = vadd.f32 %v6121_v24, %v6120_v41  ;;  %v8574_v26 = vadd.f32 %v6071_v6, %v8471_v58 }
 0x2a3   : > { %v6073_v28 = vpop.f32.mrf.mxu0  ;;  %v6123_v8 = vpop.f32.mrf.mxu1  ;;  %4169 = vmatmul.mubr.bf16.gmra.mxu1 %v6890_v18 }
 0x2a4   : > { %v6074_v53 = vadd.f32 %v6073_v28, %v6072_v34  ;;  %4176 = vmatprep.mubr.bf16.mxu1 %v6895_v27  ;;  %v8578_v48 = vadd.f32 %v6122_v22, %v3010_v30 }
 0x2a5   : > { %v6075_v59 = vpop.f32.mrf.mxu0  ;;  %v6124_v1 = vpop.f32.mrf.mxu1 }
 0x2a6   : > { %v6125_v40 = vadd.f32 %v6124_v1, %v6123_v8  ;;  %v8580_v20 = vadd.f32 %v6074_v53, %v2946_v11  ;;  %v3026_v11 = vadd.f32 %v8536_v42, %v8520_v14 }
 0x2a7   : > { %v6076_v33 = vpop.f32.mrf.mxu0  ;;  %v6126_v44 = vpop.f32.mrf.mxu1 }
 0x2a8   : > { %v6077_v32 = vadd.f32 %v6076_v33, %v6075_v59  ;;  %v8583_v58 = vadd.f32 %v6125_v40, %v8523_v10 }
 0x2a9   : > { %v6078_v16 = vpop.f32.mrf.mxu0  ;;  %v6127_v37 = vpop.f32.mrf.mxu1 }
 0x2aa   : > { %v6128_v63 = vadd.f32 %v6127_v37, %v6126_v44  ;;  %v3272_v47 = vadd.f32 %v6077_v32, %v8477_v55 }
 0x2ab   : > { %v6079_v21 = vpop.f32.mrf.mxu0  ;;  %v6129_v13 = vpop.f32.mrf.mxu1  ;;  %4177 = vmatmul.mubr.bf16.gmra.mxu1 %v6893_v43 }
 0x2ac   : > { %v6080_v41 = vadd.f32 %v6079_v21, %v6078_v16  ;;  %4184 = vmatprep.mubr.bf16.mxu1 %v8311_v46  ;;  %v8588_v6 = vadd.f32 %v6128_v63, %v8530_v45 }
 0x2ad   : > { %v6081_v34 = vpop.f32.mrf.mxu0  ;;  %v6130_v18 = vpop.f32.mrf.mxu1 }
 0x2ae   : > { %v6131_v24 = vadd.f32 %v6130_v18, %v6129_v13  ;;  %v3275_v10 = vadd.f32 %v6080_v41, %v8479_v12 }
 0x2af   : > { %v6082_v30 = vpop.f32.mrf.mxu0  ;;  %v6132_v22 = vpop.f32.mrf.mxu1 }
 0x2b0   : > { %v6083_v27 = vadd.f32 %v6082_v30, %v6081_v34  ;;  %v8592_v28 = vadd.f32 %v6131_v24, %v8534_v61 }
 0x2b1   : > { %v6084_v55 = vpop.f32.mrf.mxu0  ;;  %v6133_v8 = vpop.f32.mrf.mxu1 }
 0x2b2   : > { %v6134_v46 = vadd.f32 %v6133_v8, %v6132_v22  ;;  %v3280_v45 = vadd.f32 %v6083_v27, %v8481_v57 }
 0x2b3   : > { %v6085_v53 = vpop.f32.mrf.mxu0  ;;  %v6135_v59 = vpop.f32.mrf.mxu1  ;;  %4185 = vmatmul.mubr.bf16.gmra.mxu1 %v8317_v60 }
 0x2b4   : > { %v8598_v1 = vadd.f32 %v6134_v46, %v3026_v11 }
 0x2b5   : > { %v6087_v12 = vpop.f32.mrf.mxu0  ;;  %v6136_v40 = vpop.f32.mrf.mxu1 }
 0x2b6   : > { %v6137_v33 = vadd.f32 %v6136_v40, %v6135_v59 }
 0x2b7   : > { %v6088_v44 = vpop.f32.mrf.mxu0  ;;  %v6138_v61 = vpop.f32.mrf.mxu1 }
 0x2b8   : > { %v8601_v32 = vadd.f32 %v6137_v33, %v8544_v56 }
 0x2b9   : > { %v6090_v16 = vpop.f32.mrf.mxu0  ;;  %v6139_v43 = vpop.f32.mrf.mxu1 }
 0x2ba   : > { %v6140_v14 = vadd.f32 %v6139_v43, %v6138_v61  ;;  %v6089_v43 = vadd.f32 %v6088_v44, %v6087_v12 }
 0x2bb   : > { %v6091_v42 = vpop.f32.mrf.mxu0  ;;  %v6457_v37 = vpop.f32.mrf.mxu1 }
 0x2bc   : > { %v8604_v57 = vadd.f32 %v6457_v37, %v8539_v17  ;;  %v8607_v60 = vadd.f32 %v6140_v14, %v8552_v25 }
 0x2bd   : > { %v6093_v63 = vpop.f32.mrf.mxu0  ;;  %v3392_v21 = vpop.f32.mrf.mxu1 }
 0x2be   : > { %v8610_v13 = vadd.f32 %v3392_v21, %v8526_v51 }
 0x2bf   : > { %v6094_v41 = vpop.f32.mrf.mxu0  ;;  %v6458_v34 = vpop.f32.mrf.mxu1 }
 0x2c0   : > { %v8613_v56 = vadd.f32 %v6458_v34, %v8542_v7  ;;  %v6092_v34 = vadd.f32 %v6091_v42, %v6090_v16  ;;  %v6095_v42 = vadd.f32 %v6094_v41, %v6093_v63  ;;  %v2978_v63 = vadd.f32 %v8495_v29, %v8493_v2 }
 0x2c1   : > { %v6096_v18 = vpop.f32.mrf.mxu0  ;;  %v3395_v24 = vpop.f32.mrf.mxu1  ;;  %v7073_v29 = vmov 0.0  }
 0x2c2   : > { %v8616_v30 = vadd.f32 %v3395_v24, %v8532_v9  ;;  %6535 = vmatprep.subr.bf16.mxu0 %v7073_v29  ;;  %6555 = vmatprep.subr.bf16.mxu1 %v7073_v29 }
 0x2c3   : > { %v6097_v17 = vpop.f32.mrf.mxu0  ;;  %v6461_v22 = vpop.f32.mrf.mxu1  ;;  %6551 = vmatprep.mubr.msk.bf16.mxu0 %vm7074_vm1, %v7073_v29  ;;  %6571 = vmatprep.mubr.msk.bf16.mxu1 %vm7074_vm1, %v7073_v29 }
 0x2c4   : > { %v8619_v25 = vadd.f32 %v6461_v22, %v8560_v62 }
 0x2c5   : > { %v6099_v27 = vpop.f32.mrf.mxu0  ;;  %v3408_v8 = vpop.f32.mrf.mxu1 }
 0x2c6   : > { %v8622_v51 = vadd.f32 %v3408_v8, %v8547_v36 }
 0x2c7   : > { %v6462_v11 = vpop.f32.mrf.mxu1  ;;  %v6100_v7 = vpop.f32.mrf.mxu0 }
 0x2c8   : > { %v8625_v46 = vadd.f32 %v6462_v11, %v8566_v0  ;;  %v6101_v44 = vadd.f32 %v6100_v7, %v6099_v27 }
 0x2c9   : > { %v3411_v59 = vpop.f32.mrf.mxu1  ;;  %v6102_v61 = vpop.f32.mrf.mxu0 }
 0x2ca   : > { %v8628_v40 = vadd.f32 %v3411_v59, %v8554_v38  ;;  %v3288_v38 = vadd.f32 %v6089_v43, %v8487_v31  ;;  %v3291_v59 = vadd.f32 %v6092_v34, %v8489_v52  ;;  %v3304_v43 = vadd.f32 %v6101_v44, %v8497_v3 }
 0x2cb   : > { %v6465_v9 = vpop.f32.mrf.mxu1  ;;  %v6103_v21 = vpop.f32.mrf.mxu0 }
 0x2cc   : > { %v8630_v33 = vadd.f32 %v6465_v9, %v3272_v47  ;;  %v6086_v47 = vadd.f32 %v6085_v53, %v6084_v55  ;;  %v6104_v55 = vadd.f32 %v6103_v21, %v6102_v61 }
 0x2cd   : > { %v3424_v62 = vpop.f32.mrf.mxu1  ;;  %v6105_v11 = vpop.f32.mrf.mxu0 }
 0x2ce   : > { %v8633_v14 = vadd.f32 %v3424_v62, %v8574_v26  ;;  %v2962_v26 = vadd.f32 %v8483_v4, %v8485_v35  ;;  %v3296_v35 = vadd.f32 %v6095_v42, %v8491_v23  ;;  %v3307_v27 = vadd.f32 %v6104_v55, %v8499_v15 }
 0x2cf   : > { %v6466_v36 = vpop.f32.mrf.mxu1  ;;  %v6106_v31 = vpop.f32.mrf.mxu0 }
 0x2d0   : > { %v8635_v37 = vadd.f32 %v6466_v36, %v3275_v10  ;;  %v3283_v9 = vadd.f32 %v6086_v47, %v2962_v26  ;;  %v6107_v61 = vadd.f32 %v6106_v31, %v6105_v11  ;;  %v2994_v47 = vadd.f32 %v8505_v54, %v8501_v19  ;;  %v6897_v26 = vld [vmem:[%s9397_s9 + $0x38] sm:$0xff]  }
 0x2d1   : > { %v3427_v0 = vpop.f32.mrf.mxu1  ;;  %6536 = vmatpush3.bf16.msra.mxu0 %v6897_v26 }
 0x2d2   : > { %v8638_v24 = vadd.f32 %v3427_v0, %v8580_v20  ;;  %v6098_v0 = vadd.f32 %v6097_v17, %v6096_v18  ;;  %v3312_v2 = vadd.f32 %v6107_v61, %v8503_v49  ;;  %6537 = vmatprep.subr.bf16.mxu0 %v7073_v29 }
 0x2d3   : > { %v6469_v22 = vpop.f32.mrf.mxu1 }
 0x2d4   : > { %v8641_v8 = vadd.f32 %v6469_v22, %v3288_v38  ;;  %v3299_v3 = vadd.f32 %v6098_v0, %v2978_v63 }
 0x2d5   : > { %v3440_v12 = vpop.f32.mrf.mxu1 }
 0x2d6   : > { %v8645_v10 = vadd.f32 %v3440_v12, %v3280_v45  ;;  %v6108_v45 = vpop.f32.mrf.mxu0 }
 0x2d7   : > { %v6470_v16 = vpop.f32.mrf.mxu1 }
 0x2d8   : > { %v8648_v20 = vadd.f32 %v6470_v16, %v3291_v59  ;;  %v6109_v34 = vpop.f32.mrf.mxu0 }
 0x2d9   : > { %v3443_v62 = vpop.f32.mrf.mxu1  ;;  %v6110_v23 = vadd.f32 %v6109_v34, %v6108_v45 }
 0x2da   : > { %v8650_v53 = vadd.f32 %v3443_v62, %v3283_v9  ;;  %v8709_v0 = vpop.f32.mrf.mxu0 }
 0x2db   : > { %v6473_v36 = vpop.f32.mrf.mxu1  ;;  %v3315_v49 = vadd.f32 %v6110_v23, %v2994_v47 }
 0x2dc   : > { %v8653_v4 = vadd.f32 %v6473_v36, %v3304_v43 }
 0x2dd   : > { %v3456_v52 = vpop.f32.mrf.mxu1 }
 0x2de   : > { %v8658_v41 = vadd.f32 %v3456_v52, %v3296_v35  ;;  %v4227_v52 = vpop.f32.mrf.mxu0 }
 0x2df   : > { %v6474_v7 = vpop.f32.mrf.mxu1 }
 0x2e0   : > { %v8661_v21 = vadd.f32 %v6474_v7, %v3307_v27  ;;  %v8718_v7 = vpop.f32.mrf.mxu0 }
 0x2e1   : > { %v3459_v18 = vpop.f32.mrf.mxu1 }
 0x2e2   : > { %9441 = vst [vmem:[#allocation16_spill] sm:$0xff] %v8661_v21  ;;  %v8663_v17 = vadd.f32 %v3459_v18, %v3299_v3  ;;  %v6900_v3 = vld [vmem:[%s9397_s9 + $0x20] sm:$0xff]  }
 0x2e3   : > { %v6477_v38 = vpop.f32.mrf.mxu1 }
 0x2e4   : > { %v8666_v22 = vadd.f32 %v6477_v38, %v8557_v5 }
 0x2e5   : > { %v3472_v15 = vpop.f32.mrf.mxu1 }
 0x2e6   : > { %9442 = vst [vmem:[#allocation17_spill] sm:$0xff] %v8666_v22  ;;  %v8673_v11 = vadd.f32 %v3472_v15, %v3312_v2 }
 0x2e7   : > { %v6478_v12 = vpop.f32.mrf.mxu1 }
 0x2e8   : > { %9443 = vst [vmem:[#allocation18_spill] sm:$0xff] %v8673_v11  ;;  %v8679_v5 = vadd.f32 %v6478_v12, %v8563_v39  ;;  %v6898_v39 = vld [vmem:[%s9397_s9 + $0x30] sm:$0xff]  }
 0x2e9   : > { %v3475_v44 = vpop.f32.mrf.mxu1  ;;  %6538 = vmatpush3.bf16.msra.mxu0 %v6898_v39 }
 0x2ea   : > { %9444 = vst [vmem:[#allocation19_spill] sm:$0xff] %v8679_v5  ;;  %v8681_v59 = vadd.f32 %v3475_v44, %v3315_v49  ;;  %6539 = vmatprep.subr.bf16.mxu0 %v7073_v29 }
 0x2eb   : > { %v6481_v16 = vpop.f32.mrf.mxu1 }
 0x2ec   : > { %9445 = vst [vmem:[#allocation20_spill] sm:$0xff] %v8681_v59  ;;  %v8685_v19 = vadd.f32 %v6481_v16, %v8583_v58 }
 0x2ed   : > { %v3488_v54 = vpop.f32.mrf.mxu1 }
 0x2ee   : > { %9446 = vst [vmem:[#allocation21_spill] sm:$0xff] %v8685_v19  ;;  %v8688_v42 = vadd.f32 %v3488_v54, %v8569_v50  ;;  %v6901_v54 = vld [vmem:[%s9397_s9 + $0x18] sm:$0xff]  }
 0x2ef   : > { %v6482_v9 = vpop.f32.mrf.mxu1 }
 0x2f0   : > { %9447 = vst [vmem:[#allocation22_spill] sm:$0xff] %v8688_v42  ;;  %v8694_v31 = vadd.f32 %v6482_v9, %v8588_v6  ;;  %v6899_v6 = vld [vmem:[%s9397_s9 + $0x28] sm:$0xff]  }
 0x2f1   : > { %v3491_v62 = vpop.f32.mrf.mxu1  ;;  %6540 = vmatpush3.bf16.msra.mxu0 %v6899_v6 }
 0x2f2   : > { %9448 = vst [vmem:[#allocation23_spill] sm:$0xff] %v8694_v31  ;;  %v8697_v55 = vadd.f32 %v3491_v62, %v8578_v48  ;;  %6541 = vmatprep.subr.bf16.mxu0 %v7073_v29  ;;  %v6902_v62 = vld [vmem:[%s9397_s9 + $0x10] sm:$0xff]  }
 0x2f3   : > { %v6485_v58 = vpop.f32.mrf.mxu1 }
 0x2f4   : > { %9449 = vst [vmem:[#allocation24_spill] sm:$0xff] %v8697_v55  ;;  %v8701_v43 = vadd.f32 %v6485_v58, %v8601_v32  ;;  %v6909_v55 = vld [vmem:[%s9399_s11 + $0x18] sm:$0xff]  }
 0x2f5   : > { %v3504_v50 = vpop.f32.mrf.mxu1  ;;  %6542 = vmatpush3.bf16.msra.mxu0 %v6900_v3  ;;  %v6906_v3 = vld [vmem:[%s9399_s11 + $0x30] sm:$0xff]  }
 0x2f6   : > { %9450 = vst [vmem:[#allocation25_spill] sm:$0xff] %v8701_v43  ;;  %v8704_v36 = vadd.f32 %v3504_v50, %v8592_v28  ;;  %6543 = vmatprep.subr.bf16.mxu0 %v7073_v29 }
 0x2f7   : > { %v6486_v35 = vpop.f32.mrf.mxu1 }
 0x2f8   : > { %9451 = vst [vmem:[#allocation26_spill] sm:$0xff] %v8704_v36  ;;  %v8712_v48 = vadd.f32 %v6486_v35, %v8607_v60  ;;  %v6903_v35 = vld [vmem:[%s9397_s9 + $0x8] sm:$0xff]  }
 0x2f9   : > { %v3507_v45 = vpop.f32.mrf.mxu1  ;;  %6544 = vmatpush3.bf16.msra.mxu0 %v6901_v54 }
 0x2fa   : > { %9452 = vst [vmem:[#allocation27_spill] sm:$0xff] %v8712_v48  ;;  %v8716_v32 = vadd.f32 %v3507_v45, %v8598_v1  ;;  %v4230_v1 = vpop.f32.mrf.mxu0  ;;  %6545 = vmatprep.subr.bf16.mxu0 %v7073_v29 }
 0x2fb   : > { %v6181_v28 = vpop.f32.mrf.mxu1 }
 0x2fc   : > { %9453 = vst [vmem:[#allocation28_spill] sm:$0xff] %v8716_v32  ;;  %v8727_v2 = vpop.f32.mrf.mxu0  ;;  %v6908_v32 = vld [vmem:[%s9399_s11 + $0x20] sm:$0xff]  }
 0x2fd   : > { %v6182_v63 = vpop.f32.mrf.mxu1  ;;  %6546 = vmatpush3.bf16.msra.mxu0 %v6902_v62 }
 0x2fe   : > { %v6183_v27 = vadd.f32 %v6182_v63, %v6181_v28  ;;  %v8729_v12 = vpop.f32.mrf.mxu0  ;;  %6547 = vmatprep.subr.bf16.mxu0 %v7073_v29 }
 0x2ff   : > { %v6184_v61 = vpop.f32.mrf.mxu1 }
 0x300   : > { %v4228_v60 = vadd.f32 %v6183_v27, %v4227_v52  ;;  %v8735_v44 = vpop.f32.mrf.mxu0  ;;  %v6905_v52 = vld [vmem:[%s9399_s11 + $0x38] sm:$0xff]   ;;  %v6904_v27 = vld [vmem:[%s9397_s9] sm:$0xff]  }
 0x301   : > { %v6185_v34 = vpop.f32.mrf.mxu1  ;;  %6548 = vmatpush3.bf16.msra.mxu0 %v6903_v35  ;;  %6556 = vmatpush3.bf16.msra.mxu1 %v6905_v52  ;;  %v6907_v35 = vld [vmem:[%s9399_s11 + $0x28] sm:$0xff]  }
 0x302   : > { %v8724_v18 = vadd.f32 %v4228_v60, %v8610_v13  ;;  %v8745_v9 = vpop.f32.mrf.mxu0  ;;  %6549 = vmatprep.subr.bf16.mxu0 %v7073_v29  ;;  %6557 = vmatprep.subr.bf16.mxu1 %v7073_v29 }
 0x303   : > { %v6187_v38 = vpop.f32.mrf.mxu1 }
 0x304   : > { %v8756_v50 = vpop.f32.mrf.mxu0 }
 0x305   : > { %v6188_v23 = vpop.f32.mrf.mxu1  ;;  %6550 = vmatpush3.bf16.msra.mxu0 %v6904_v27  ;;  %6558 = vmatpush3.bf16.msra.mxu1 %v6906_v3  ;;  %v6186_v3 = vadd.f32 %v6185_v34, %v6184_v61 }
 0x306   : > { %v8769_v28 = vpop.f32.mrf.mxu0  ;;  %6559 = vmatprep.subr.bf16.mxu1 %v7073_v29  ;;  %v6189_v31 = vadd.f32 %v6188_v23, %v6187_v38 }
 0x307   : > { %v6190_v15 = vpop.f32.mrf.mxu1  ;;  %v4231_v42 = vadd.f32 %v6186_v3, %v4230_v1  ;;  %v6911_v1 = vld [vmem:[%s9399_s11 + $0x8] sm:$0xff]  }
 0x308   : > { %v8783_v54 = vpop.f32.mrf.mxu0  ;;  %v4236_v22 = vadd.f32 %v8709_v0, %v6189_v31  ;;  %v8830_v31 = vld [vmem:[%s9393_s5] ss:$0 sm:$0xff] }
 0x309   : > { %v6191_v47 = vpop.f32.mrf.mxu1  ;;  %6560 = vmatpush3.bf16.msra.mxu1 %v6907_v35  ;;  %v4355_v23 = vadd.f32 %v4231_v42, %v8616_v30 }
 0x30a   : > { %v8793_v48 = vpop.f32.mrf.mxu0  ;;  %6561 = vmatprep.subr.bf16.mxu1 %v7073_v29  ;;  %v6192_v34 = vadd.f32 %v6191_v47, %v6190_v15 }
 0x30b   : > { %v8731_v26 = vpop.f32.mrf.mxu1 }
 0x30c   : > { %v8803_v36 = vpop.f32.mrf.mxu0  ;;  %v4239_v15 = vadd.f32 %v8718_v7, %v6192_v34  ;;  %v8854_v7 = vld [vmem:[%s9394_s6] ss:$0 sm:$0xff] }
 0x30d   : > { %v8733_v49 = vpop.f32.mrf.mxu1  ;;  %6562 = vmatpush3.bf16.msra.mxu1 %v6908_v32  ;;  %v6910_v32 = vld [vmem:[%s9399_s11 + $0x10] sm:$0xff]  }
 0x30e   : > { %6563 = vmatprep.subr.bf16.mxu1 %v7073_v29  ;;  %v8813_v5 = vpop.f32.mrf.mxu0  ;;  %v6195_v30 = vadd.f32 %v8733_v49, %v8731_v26 }
 0x30f   : > { %v8737_v16 = vpop.f32.mrf.mxu1 }
 0x310   : > { %v8825_v59 = vpop.f32.mrf.mxu0 }
 0x311   : > { %v8739_v13 = vpop.f32.mrf.mxu1  ;;  %6564 = vmatpush3.bf16.msra.mxu1 %v6909_v55  ;;  %v4356_v55 = vadd.f32 %v4236_v22, %v8604_v57  ;;  %v4393_v57 = vmul.f32 %v8830_v31, %v8724_v18  ;;  %v4394_v22 = vmul.f32 %v8830_v31, %v4355_v23  ;;  %v4357_v18 = vadd.f32 %v4239_v15, %v8613_v56 }
 0x312   : > { %6565 = vmatprep.subr.bf16.mxu1 %v7073_v29  ;;  %v6198_v42 = vadd.f32 %v8739_v13, %v8737_v16  ;;  %v8849_v3 = vpop.f32.mrf.mxu0  ;;  %v6912_v16 = vld [vmem:[%s9399_s11] sm:$0xff]   ;;  %v4244_v13 = vadd.f32 %v6195_v30, %v8729_v12 }
 0x313   : > { %v8747_v39 = vpop.f32.mrf.mxu1  ;;  %v4395_v26 = vmul.f32 %v8830_v31, %v4356_v55  ;;  %v4433_v11 = vadd.f32 %v8854_v7, %v4394_v22 }
 0x314   : > { %v4247_v34 = vadd.f32 %v6198_v42, %v8745_v9  ;;  %v8874_v21 = vpop.f32.mrf.mxu0  ;;  %v4358_v9 = vadd.f32 %v4244_v13, %v8622_v51 }
 0x315   : > { %v8754_v58 = vpop.f32.mrf.mxu1  ;;  %6566 = vmatpush3.bf16.msra.mxu1 %v6910_v32  ;;  %v4434_v56 = vadd.f32 %v8854_v7, %v4395_v26  ;;  %v4497_v30 = vmul.f32 0.001, %v4433_v11  ;;  %vm4465_vm6 = vcmp.ge.f32.partialorder %v4433_v11, 0.0 }
 0x316   : > { %6567 = vmatprep.subr.bf16.mxu1 %v7073_v29  ;;  %v6201_v32 = vadd.f32 %v8754_v58, %v8747_v39 }
 0x317   : > { %v8758_v6 = vpop.f32.mrf.mxu1  ;;  %vm4466_vm7 = vcmp.ge.f32.partialorder %v4434_v56, 0.0  ;;  %v4498_v51 = vmul.f32 0.001, %v4434_v56 }
 0x318   : > { %v4252_v39 = vadd.f32 %v8727_v2, %v6201_v32 }
 0x319   : > { %v8764_v45 = vpop.f32.mrf.mxu1  ;;  %6568 = vmatpush3.bf16.msra.mxu1 %v6911_v1  ;;  %v4432_v1 = vadd.f32 %v8854_v7, %v4393_v57  ;;  %v8890_v57 = vpop.f32.mrf.mxu0 }
 0x31a   : > { %6569 = vmatprep.subr.bf16.mxu1 %v7073_v29  ;;  %v6204_v23 = vadd.f32 %v8764_v45, %v8758_v6  ;;  %v4396_v29 = vmul.f32 %v8830_v31, %v4357_v18  ;;  %v4359_v6 = vadd.f32 %v4247_v34, %v8628_v40  ;;  %v4397_v40 = vmul.f32 %v8830_v31, %v4358_v9 }
 0x31b   : > { %v8771_v63 = vpop.f32.mrf.mxu1  ;;  %vm4464_vm3 = vcmp.ge.f32.partialorder %v4432_v1, 0.0  ;;  %v4496_v22 = vmul.f32 0.001, %v4432_v1  ;;  %v8909_v34 = vpop.f32.mrf.mxu0 }
 0x31c   : > { %v4255_v45 = vadd.f32 %v8735_v44, %v6204_v23  ;;  %v4360_v44 = vadd.f32 %v4252_v39, %v8619_v25  ;;  %v4398_v26 = vmul.f32 %v8830_v31, %v4359_v6  ;;  %v4436_v23 = vadd.f32 %v8854_v7, %v4397_v40 }
 0x31d   : > { %v8781_v60 = vpop.f32.mrf.mxu1  ;;  %6570 = vmatpush3.bf16.msra.mxu1 %v6912_v16  ;;  %v8902_v16 = vsel %vm4465_vm6, %v4433_v11, %v4497_v30  ;;  %v8912_v25 = vsel %vm4464_vm3, %v4432_v1, %v4496_v22 }
 0x31e   : > { %v6207_v58 = vadd.f32 %v8781_v60, %v8771_v63  ;;  %v4435_v63 = vadd.f32 %v8854_v7, %v4396_v29  ;;  %vm4468_vm9 = vcmp.ge.f32.partialorder %v4436_v23, 0.0 }
 0x31f   : > { %v8785_v62 = vpop.f32.mrf.mxu1 }
 0x320   : > { %v4260_v60 = vadd.f32 %v6207_v58, %v8769_v28  ;;  %v8915_v28 = vsel %vm4466_vm7, %v4434_v56, %v4498_v51  ;;  %v4499_v11 = vmul.f32 0.001, %v4435_v63  ;;  %vm4467_vm8 = vcmp.ge.f32.partialorder %v4435_v63, 0.0 }
 0x321   : > { %v8791_v52 = vpop.f32.mrf.mxu1 }
 0x322   : > { %v6210_v42 = vadd.f32 %v8791_v52, %v8785_v62  ;;  %v4361_v62 = vadd.f32 %v4255_v45, %v8625_v46  ;;  %v8938_v30 = vsel %vm4467_vm8, %v4435_v63, %v4499_v11 }
 0x323   : > { %v8795_v43 = vpop.f32.mrf.mxu1 }
 0x324   : > { %v4263_v18 = vadd.f32 %v6210_v42, %v8793_v48  ;;  %v4399_v48 = vmul.f32 %v8830_v31, %v4360_v44  ;;  %v4500_v42 = vmul.f32 0.001, %v4436_v23 }
 0x325   : > { %v8801_v27 = vpop.f32.mrf.mxu1 }
 0x326   : > { %v6213_v13 = vadd.f32 %v8801_v27, %v8795_v43  ;;  %v4362_v43 = vadd.f32 %v4260_v60, %v8633_v14  ;;  %v4437_v27 = vadd.f32 %v8854_v7, %v4398_v26  ;;  %v4363_v56 = vadd.f32 %v4263_v18, %v8638_v24  ;;  %v8933_v14 = vpop.f32.mrf.mxu0 }
 0x327   : > { %v8805_v19 = vpop.f32.mrf.mxu1  ;;  %v4438_v24 = vadd.f32 %v8854_v7, %v4399_v48  ;;  %v8951_v26 = vsel %vm4468_vm9, %v4436_v23, %v4500_v42 }
 0x328   : > { %v4268_v29 = vadd.f32 %v8756_v50, %v6213_v13  ;;  %v4401_v50 = vmul.f32 %v8830_v31, %v4362_v43  ;;  %vm4469_vm10 = vcmp.ge.f32.partialorder %v4437_v27, 0.0  ;;  %v4402_v22 = vmul.f32 %v8830_v31, %v4363_v56  ;;  %v8947_v63 = vpop.f32.mrf.mxu0 }
 0x329   : > { %v8811_v35 = vpop.f32.mrf.mxu1  ;;  %vm4470_vm11 = vcmp.ge.f32.partialorder %v4438_v24, 0.0 }
 0x32a   : > { %v6216_v32 = vadd.f32 %v8811_v35, %v8805_v19  ;;  %v4560_v19 = vadd.f32 %v8902_v16, %v8912_v25  ;;  %v4400_v35 = vmul.f32 %v8830_v31, %v4361_v62  ;;  %v4364_v51 = vadd.f32 %v4268_v29, %v8630_v33  ;;  %v8963_v48 = vpop.f32.mrf.mxu0 }
 0x32b   : > { %v8816_v61 = vpop.f32.mrf.mxu1  ;;  %v4502_v62 = vmul.f32 0.001, %v4438_v24  ;;  %v4440_v18 = vadd.f32 %v8854_v7, %v4401_v50 }
 0x32c   : > { %v4271_v9 = vadd.f32 %v8783_v54, %v6216_v32  ;;  %v4561_v58 = vadd.f32 %v4560_v19, %v8915_v28  ;;  %v4501_v54 = vmul.f32 0.001, %v4437_v27  ;;  %v4441_v32 = vadd.f32 %v8854_v7, %v4402_v22  ;;  %v8981_v42 = vpop.f32.mrf.mxu0 }
 0x32d   : > { %v8822_v38 = vpop.f32.mrf.mxu1  ;;  %v8967_v19 = vsel %vm4470_vm11, %v4438_v24, %v4502_v62  ;;  %vm4472_vm13 = vcmp.ge.f32.partialorder %v4440_v18, 0.0 }
 0x32e   : > { %v6219_v39 = vadd.f32 %v8822_v38, %v8816_v61  ;;  %v4439_v61 = vadd.f32 %v8854_v7, %v4400_v35  ;;  %v4562_v40 = vadd.f32 %v4561_v58, %v8938_v30  ;;  %v8957_v33 = vsel %vm4469_vm10, %v4437_v27, %v4501_v54 }
 0x32f   : > { %v8833_v0 = vpop.f32.mrf.mxu1  ;;  %v4504_v27 = vmul.f32 0.001, %v4440_v18  ;;  %vm4473_vm14 = vcmp.ge.f32.partialorder %v4441_v32, 0.0 }
 0x330   : > { %vm4471_vm12 = vcmp.ge.f32.partialorder %v4439_v61, 0.0  ;;  %v4563_v43 = vadd.f32 %v4562_v40, %v8951_v26 }
 0x331   : > { %v8844_v47 = vpop.f32.mrf.mxu1  ;;  %v8985_v50 = vsel %vm4472_vm13, %v4440_v18, %v4504_v27  ;;  %v4310_v18 = vpop.f32.mrf.mxu0 }
 0x332   : > { %v6222_v6 = vadd.f32 %v8844_v47, %v8833_v0  ;;  %v4365_v0 = vadd.f32 %v4271_v9, %v8635_v37  ;;  %v4276_v47 = vadd.f32 %v6219_v39, %v8813_v5  ;;  %v4503_v37 = vmul.f32 0.001, %v4439_v61 }
 0x333   : > { %v8857_v49 = vpop.f32.mrf.mxu1  ;;  %v4564_v29 = vadd.f32 %v4563_v43, %v8957_v33  ;;  %v9008_v27 = vpop.f32.mrf.mxu0 }
 0x334   : > { %v4279_v44 = vadd.f32 %v6222_v6, %v8849_v3  ;;  %v4403_v3 = vmul.f32 %v8830_v31, %v4364_v51  ;;  %v4404_v11 = vmul.f32 %v8830_v31, %v4365_v0  ;;  %v4366_v23 = vadd.f32 %v4276_v47, %v8645_v10 }
 0x335   : > { %v8870_v55 = vpop.f32.mrf.mxu1  ;;  %v8974_v9 = vsel %vm4471_vm12, %v4439_v61, %v4503_v37 }
 0x336   : > { %v6225_v13 = vadd.f32 %v8870_v55, %v8857_v49  ;;  %v4367_v49 = vadd.f32 %v4279_v44, %v8650_v53  ;;  %v4505_v53 = vmul.f32 0.001, %v4441_v32  ;;  %v4442_v58 = vadd.f32 %v8854_v7, %v4403_v3 }
 0x337   : > { %v8877_v12 = vpop.f32.mrf.mxu1  ;;  %v4443_v6 = vadd.f32 %v8854_v7, %v4404_v11 }
 0x338   : > { %v4284_v35 = vadd.f32 %v8803_v36, %v6225_v13  ;;  %v4405_v36 = vmul.f32 %v8830_v31, %v4366_v23  ;;  %v8993_v47 = vsel %vm4473_vm14, %v4441_v32, %v4505_v53  ;;  %v4506_v40 = vmul.f32 0.001, %v4442_v58 }
 0x339   : > { %v8886_v15 = vpop.f32.mrf.mxu1  ;;  %v4507_v44 = vmul.f32 0.001, %v4443_v6  ;;  %vm4474_vm15 = vcmp.ge.f32.partialorder %v4442_v58, 0.0  ;;  %vm4475_vm0 = vcmp.ge.f32.partialorder %v4443_v6, 0.0 }
 0x33a   : > { %v6228_v56 = vadd.f32 %v8886_v15, %v8877_v12  ;;  %v4565_v12 = vadd.f32 %v4564_v29, %v8967_v19  ;;  %v4406_v15 = vmul.f32 %v8830_v31, %v4367_v49  ;;  %v4444_v62 = vadd.f32 %v8854_v7, %v4405_v36 }
 0x33b   : > { %v8892_v2 = vpop.f32.mrf.mxu1  ;;  %v9004_v11 = vsel %vm4474_vm15, %v4442_v58, %v4506_v40  ;;  %v9006_v23 = vsel %vm4475_vm0, %v4443_v6, %v4507_v44  ;;  %v4323_v6 = vpop.f32.mrf.mxu0 }
 0x33c   : > { %v4566_v61 = vadd.f32 %v4565_v12, %v8974_v9  ;;  %v4508_v43 = vmul.f32 0.001, %v4444_v62  ;;  %vm4476_vm2 = vcmp.ge.f32.partialorder %v4444_v62, 0.0 }
 0x33d   : > { %v8900_v52 = vpop.f32.mrf.mxu1 }
 0x33e   : > { %v6231_v10 = vadd.f32 %v8900_v52, %v8892_v2  ;;  %v4368_v2 = vadd.f32 %v4284_v35, %v8641_v8  ;;  %v4287_v52 = vadd.f32 %v8825_v59, %v6228_v56  ;;  %v4567_v8 = vadd.f32 %v4566_v61, %v8985_v50 }
 0x33f   : > { %v8917_v46 = vpop.f32.mrf.mxu1  ;;  %v4445_v59 = vadd.f32 %v8854_v7, %v4406_v15 }
 0x340   : > { %v4292_v22 = vadd.f32 %v6231_v10, %v8890_v57  ;;  %v4369_v57 = vadd.f32 %v4287_v52, %v8648_v20  ;;  %v4568_v13 = vadd.f32 %v4567_v8, %v8993_v47  ;;  %v9454_v52 = vld [vmem:[#allocation16_spill] sm:$0xff] }
 0x341   : > { %v8926_v1 = vpop.f32.mrf.mxu1  ;;  %vm4477_vm4 = vcmp.ge.f32.partialorder %v4445_v59, 0.0  ;;  %v4509_v20 = vmul.f32 0.001, %v4445_v59 }
 0x342   : > { %v6234_v54 = vadd.f32 %v8926_v1, %v8917_v46  ;;  %v4407_v1 = vmul.f32 %v8830_v31, %v4368_v2  ;;  %v4370_v37 = vadd.f32 %v4292_v22, %v8658_v41  ;;  %v4408_v41 = vmul.f32 %v8830_v31, %v4369_v57 }
 0x343   : > { %v6235_v45 = vpop.f32.mrf.mxu1  ;;  %v4569_v56 = vadd.f32 %v4568_v13, %v9004_v11  ;;  %v9022_v12 = vsel %vm4477_vm4, %v4445_v59, %v4509_v20  ;;  %v9456_v59 = vld [vmem:[#allocation20_spill] sm:$0xff]  ;;  %v9457_v20 = vld [vmem:[#allocation17_spill] sm:$0xff] }
 0x344   : > { %v4409_v29 = vmul.f32 %v8830_v31, %v4370_v37  ;;  %v4447_v2 = vadd.f32 %v8854_v7, %v4408_v41 }
 0x345   : > { %v6236_v38 = vpop.f32.mrf.mxu1  ;;  %v4570_v36 = vadd.f32 %v4569_v56, %v9006_v23 }
 0x346   : > { %v6237_v51 = vadd.f32 %v6236_v38, %v6235_v45  ;;  %v4295_v45 = vadd.f32 %v6234_v54, %v8933_v14  ;;  %vm4479_vm1 = vcmp.ge.f32.partialorder %v4447_v2, 0.0 }
 0x347   : > { %v6238_v60 = vpop.f32.mrf.mxu1 }
 0x348   : > { %v4300_v32 = vadd.f32 %v8874_v21, %v6237_v51  ;;  %v4371_v21 = vadd.f32 %v4295_v45, %v8663_v17 }
 0x349   : > { %v6239_v5 = vpop.f32.mrf.mxu1 }
 0x34a   : > { %v6240_v38 = vadd.f32 %v6239_v5, %v6238_v60  ;;  %v4446_v5 = vadd.f32 %v8854_v7, %v4407_v1 }
 0x34b   : > { %v6241_v55 = vpop.f32.mrf.mxu1 }
 0x34c   : > { %v4303_v35 = vadd.f32 %v8909_v34, %v6240_v38  ;;  %vm4478_vm5 = vcmp.ge.f32.partialorder %v4446_v5, 0.0  ;;  %v4511_v38 = vmul.f32 0.001, %v4447_v2 }
 0x34d   : > { %v6242_v39 = vpop.f32.mrf.mxu1 }
 0x34e   : > { %v6243_v49 = vadd.f32 %v6242_v39, %v6241_v55  ;;  %v4372_v55 = vadd.f32 %v4300_v32, %v8653_v4  ;;  %v9017_v39 = vsel %vm4476_vm2, %v4444_v62, %v4508_v43  ;;  %v4410_v4 = vmul.f32 %v8830_v31, %v4371_v21  ;;  %v9458_v21 = vld [vmem:[#allocation19_spill] sm:$0xff] }
 0x34f   : > { %v6244_v24 = vpop.f32.mrf.mxu1  ;;  %v4373_v54 = vadd.f32 %v4303_v35, %v9454_v52  ;;  %v4571_v61 = vadd.f32 %v4570_v36, %v9017_v39  ;;  %v9459_v36 = vld [vmem:[#allocation22_spill] sm:$0xff] }
 0x350   : > { %v4308_v53 = vadd.f32 %v6243_v49, %v8963_v48  ;;  %v4448_v48 = vadd.f32 %v8854_v7, %v4409_v29  ;;  %v4411_v22 = vmul.f32 %v8830_v31, %v4372_v55  ;;  %v4449_v13 = vadd.f32 %v8854_v7, %v4410_v4 }
 0x351   : > { %v6245_v0 = vpop.f32.mrf.mxu1  ;;  %v4572_v8 = vadd.f32 %v4571_v61, %v9022_v12  ;;  %v4412_v37 = vmul.f32 %v8830_v31, %v4373_v54  ;;  %v9047_v29 = vsel %vm4479_vm1, %v4447_v2, %v4511_v38  ;;  %v9461_v38 = vld [vmem:[#allocation21_spill] sm:$0xff] }
 0x352   : > { %v6246_v14 = vadd.f32 %v6245_v0, %v6244_v24  ;;  %v4510_v24 = vmul.f32 0.001, %v4446_v5  ;;  %v9455_v0 = vld [vmem:[#allocation18_spill] sm:$0xff]  ;;  %v4512_v32 = vmul.f32 0.001, %v4448_v48  ;;  %vm4480_vm3 = vcmp.ge.f32.partialorder %v4448_v48, 0.0 }
 0x353   : > { %v6247_v46 = vpop.f32.mrf.mxu1  ;;  %v4374_v40 = vadd.f32 %v4308_v53, %v9455_v0  ;;  %v4513_v55 = vmul.f32 0.001, %v4449_v13  ;;  %vm4481_vm6 = vcmp.ge.f32.partialorder %v4449_v13, 0.0  ;;  %v9460_v0 = vld [vmem:[#allocation24_spill] sm:$0xff] }
 0x354   : > { %v4311_v17 = vadd.f32 %v6246_v14, %v4310_v18  ;;  %v9032_v18 = vpop.f32.mrf.mxu0  ;;  %v9037_v45 = vsel %vm4478_vm5, %v4446_v5, %v4510_v24 }
 0x355   : > { %v6248_v3 = vpop.f32.mrf.mxu1  ;;  %v4413_v49 = vmul.f32 %v8830_v31, %v4374_v40  ;;  %v4573_v5 = vadd.f32 %v4572_v8, %v9037_v45 }
 0x356   : > { %v6249_v58 = vadd.f32 %v6248_v3, %v6247_v46  ;;  %v4375_v46 = vadd.f32 %v4311_v17, %v9456_v59 }
 0x357   : > { %v6250_v60 = vpop.f32.mrf.mxu1  ;;  %v4574_v2 = vadd.f32 %v4573_v5, %v9047_v29 }
 0x358   : > { %v4316_v44 = vadd.f32 %v8947_v63, %v6249_v58  ;;  %v4450_v63 = vadd.f32 %v8854_v7, %v4411_v22  ;;  %v4414_v41 = vmul.f32 %v8830_v31, %v4375_v46  ;;  %v9050_v58 = vsel %vm4480_vm3, %v4448_v48, %v4512_v32 }
 0x359   : > { %v6251_v10 = vpop.f32.mrf.mxu1  ;;  %v9060_v22 = vsel %vm4481_vm6, %v4449_v13, %v4513_v55 }
 0x35a   : > { %v6252_v34 = vadd.f32 %v6251_v10, %v6250_v60  ;;  %v4376_v14 = vadd.f32 %v4316_v44, %v9457_v20  ;;  %v4326_v60 = vpop.f32.mrf.mxu0  ;;  %v4451_v10 = vadd.f32 %v8854_v7, %v4412_v37  ;;  %vm4482_vm7 = vcmp.ge.f32.partialorder %v4450_v63, 0.0 }
 0x35b   : > { %v6253_v15 = vpop.f32.mrf.mxu1  ;;  %v4453_v52 = vadd.f32 %v8854_v7, %v4414_v41 }
 0x35c   : > { %v4319_v1 = vadd.f32 %v8981_v42, %v6252_v34  ;;  %v4415_v24 = vmul.f32 %v8830_v31, %v4376_v14  ;;  %v9058_v48 = vpop.f32.mrf.mxu0  ;;  %vm4483_vm8 = vcmp.ge.f32.partialorder %v4451_v10, 0.0 }
 0x35d   : > { %v6254_v51 = vpop.f32.mrf.mxu1  ;;  %vm4485_vm10 = vcmp.ge.f32.partialorder %v4453_v52, 0.0 }
 0x35e   : > { %v6255_v62 = vadd.f32 %v6254_v51, %v6253_v15  ;;  %v4377_v35 = vadd.f32 %v4319_v1, %v9458_v21  ;;  %v4452_v15 = vadd.f32 %v8854_v7, %v4413_v49  ;;  %v4515_v51 = vmul.f32 0.001, %v4451_v10  ;;  %v4339_v49 = vpop.f32.mrf.mxu0 }
 0x35f   : > { %v6256_v57 = vpop.f32.mrf.mxu1 }
 0x360   : > { %v4324_v3 = vadd.f32 %v6255_v62, %v4323_v6  ;;  %v4514_v6 = vmul.f32 0.001, %v4450_v63  ;;  %v4416_v54 = vmul.f32 %v8830_v31, %v4377_v35  ;;  %v4575_v62 = vadd.f32 %v4574_v2, %v9050_v58 }
 0x361   : > { %v6257_v43 = vpop.f32.mrf.mxu1  ;;  %v4516_v1 = vmul.f32 0.001, %v4452_v15  ;;  %vm4484_vm9 = vcmp.ge.f32.partialorder %v4452_v15, 0.0 }
 0x362   : > { %v6258_v42 = vadd.f32 %v6257_v43, %v6256_v57  ;;  %v4378_v17 = vadd.f32 %v4324_v3, %v9459_v36  ;;  %v9065_v8 = vsel %vm4482_vm7, %v4450_v63, %v4514_v6  ;;  %v4454_v57 = vadd.f32 %v8854_v7, %v4415_v24 }
 0x363   : > { %v6259_v56 = vpop.f32.mrf.mxu1  ;;  %v4576_v32 = vadd.f32 %v4575_v62, %v9060_v22  ;;  %v4517_v3 = vmul.f32 0.001, %v4453_v52  ;;  %v9072_v63 = vsel %vm4483_vm8, %v4451_v10, %v4515_v51  ;;  %v9079_v21 = vsel %vm4484_vm9, %v4452_v15, %v4516_v1 }
 0x364   : > { %v4327_v53 = vadd.f32 %v6258_v42, %v4326_v60  ;;  %v4417_v59 = vmul.f32 %v8830_v31, %v4378_v17  ;;  %v4518_v35 = vmul.f32 0.001, %v4454_v57  ;;  %vm4486_vm11 = vcmp.ge.f32.partialorder %v4454_v57, 0.0  ;;  %v6534_v17 = vpop.f32.mrf.mxu0 }
 0x365   : > { %v6260_v34 = vpop.f32.mrf.mxu1  ;;  %v4577_v42 = vadd.f32 %v4576_v32, %v9065_v8  ;;  %v9083_v6 = vsel %vm4485_vm10, %v4453_v52, %v4517_v3  ;;  %v9463_v52 = vld [vmem:[#allocation26_spill] sm:$0xff] }
 0x366   : > { %v6261_v4 = vadd.f32 %v6260_v34, %v6259_v56  ;;  %v4379_v40 = vadd.f32 %v4327_v53, %v9460_v0  ;;  %v4456_v60 = vadd.f32 %v8854_v7, %v4417_v59  ;;  %v9462_v56 = vld [vmem:[#allocation23_spill] sm:$0xff]  ;;  %v9089_v51 = vsel %vm4486_vm11, %v4454_v57, %v4518_v35  ;;  %v4342_v59 = vpop.f32.mrf.mxu0 }
 0x367   : > { %v6262_v61 = vpop.f32.mrf.mxu1  ;;  %v4578_v10 = vadd.f32 %v4577_v42, %v9072_v63 }
 0x368   : > { %v4332_v44 = vadd.f32 %v9008_v27, %v6261_v4  ;;  %v4455_v27 = vadd.f32 %v8854_v7, %v4416_v54  ;;  %v4418_v20 = vmul.f32 %v8830_v31, %v4379_v40  ;;  %v4520_v2 = vmul.f32 0.001, %v4456_v60 }
 0x369   : > { %v6263_v46 = vpop.f32.mrf.mxu1  ;;  %v4579_v15 = vadd.f32 %v4578_v10, %v9079_v21  ;;  %vm4488_vm13 = vcmp.ge.f32.partialorder %v4456_v60, 0.0 }
 0x36a   : > { %v4380_v37 = vadd.f32 %v4332_v44, %v9461_v38  ;;  %v6264_v13 = vadd.f32 %v6263_v46, %v6262_v61  ;;  %v4519_v36 = vmul.f32 0.001, %v4455_v27  ;;  %vm4487_vm12 = vcmp.ge.f32.partialorder %v4455_v27, 0.0 }
 0x36b   : > { %v6265_v43 = vpop.f32.mrf.mxu1  ;;  %v4457_v34 = vadd.f32 %v8854_v7, %v4418_v20  ;;  %v4580_v44 = vadd.f32 %v4579_v15, %v9083_v6  ;;  %v9098_v57 = vsel %vm4488_vm13, %v4456_v60, %v4520_v2 }
 0x36c   : > { %v4335_v14 = vadd.f32 %v9032_v18, %v6264_v13  ;;  %v4419_v5 = vmul.f32 %v8830_v31, %v4380_v37  ;;  %v9093_v62 = vsel %vm4487_vm12, %v4455_v27, %v4519_v36  ;;  %v9464_v27 = vld [vmem:[#allocation28_spill] sm:$0xff] }
 0x36d   : > { %v6266_v41 = vpop.f32.mrf.mxu1  ;;  %v4521_v1 = vmul.f32 0.001, %v4457_v34  ;;  %v4581_v32 = vadd.f32 %v4580_v44, %v9089_v51  ;;  %vm4489_vm14 = vcmp.ge.f32.partialorder %v4457_v34, 0.0  ;;  %v9466_v44 = vld [vmem:[#allocation27_spill] sm:$0xff] }
 0x36e   : > { %v4381_v55 = vadd.f32 %v4335_v14, %v9462_v56  ;;  %v6267_v53 = vadd.f32 %v6266_v41, %v6265_v43  ;;  %v4458_v54 = vadd.f32 %v8854_v7, %v4419_v5 }
 0x36f   : > { %v6268_v18 = vpop.f32.mrf.mxu1  ;;  %v4582_v42 = vadd.f32 %v4581_v32, %v9093_v62  ;;  %v9103_v41 = vsel %vm4489_vm14, %v4457_v34, %v4521_v1 }
 0x370   : > { %v4420_v24 = vmul.f32 %v8830_v31, %v4381_v55  ;;  %v4340_v4 = vadd.f32 %v6267_v53, %v4339_v49  ;;  %v4522_v3 = vmul.f32 0.001, %v4458_v54  ;;  %vm4490_vm15 = vcmp.ge.f32.partialorder %v4458_v54, 0.0 }
 0x371   : > { %v6269_v61 = vpop.f32.mrf.mxu1  ;;  %v4583_v55 = vadd.f32 %v4582_v42, %v9098_v57 }
 0x372   : > { %v4382_v0 = vadd.f32 %v4340_v4, %v9463_v52  ;;  %v6270_v40 = vadd.f32 %v6269_v61, %v6268_v18  ;;  %v4459_v38 = vadd.f32 %v8854_v7, %v4420_v24  ;;  %v9108_v53 = vsel %vm4490_vm15, %v4458_v54, %v4522_v3  ;;  %v9465_v24 = vld [vmem:[#allocation25_spill] sm:$0xff] }
 0x373   : > { %v6271_v46 = vpop.f32.mrf.mxu1  ;;  %v4584_v34 = vadd.f32 %v4583_v55, %v9103_v41 }
 0x374   : > { %v4421_v37 = vmul.f32 %v8830_v31, %v4382_v0  ;;  %v4343_v13 = vadd.f32 %v6270_v40, %v4342_v59  ;;  %v4523_v35 = vmul.f32 0.001, %v4459_v38  ;;  %vm4491_vm0 = vcmp.ge.f32.partialorder %v4459_v38, 0.0 }
 0x375   : > { %v6272_v43 = vpop.f32.mrf.mxu1  ;;  %v4585_v54 = vadd.f32 %v4584_v34, %v9108_v53 }
 0x376   : > { %v4460_v49 = vadd.f32 %v8854_v7, %v4421_v37  ;;  %v4383_v20 = vadd.f32 %v4343_v13, %v9464_v27  ;;  %v6273_v14 = vadd.f32 %v6272_v43, %v6271_v46  ;;  %v9113_v2 = vsel %vm4491_vm0, %v4459_v38, %v4523_v35 }
 0x377   : > { %v6274_v5 = vpop.f32.mrf.mxu1  ;;  %v4586_v46 = vadd.f32 %v4585_v54, %v9113_v2  ;;  %v6916_v54 = vld [vmem:[%s9401_s13 + $0x20] sm:$0xff]  }
 0x378   : > { %v4422_v56 = vmul.f32 %v8830_v31, %v4383_v20  ;;  %v4348_v60 = vadd.f32 %v9058_v48, %v6273_v14  ;;  %v4524_v36 = vmul.f32 0.001, %v4460_v49  ;;  %vm4492_vm2 = vcmp.ge.f32.partialorder %v4460_v49, 0.0 }
 0x379   : > { %v6275_v10 = vpop.f32.mrf.mxu1 }
 0x37a   : > { %v4461_v18 = vadd.f32 %v8854_v7, %v4422_v56  ;;  %v4384_v4 = vadd.f32 %v4348_v60, %v9465_v24  ;;  %v6276_v15 = vadd.f32 %v6275_v10, %v6274_v5  ;;  %v9117_v0 = vsel %vm4492_vm2, %v4460_v49, %v4524_v36 }
 0x37b   : > { %v4587_v13 = vadd.f32 %v4586_v46, %v9117_v0  ;;  %v6920_v46 = vld [vmem:[%s9401_s13] sm:$0xff]  }
 0x37c   : > { %v4525_v61 = vmul.f32 0.001, %v4461_v18  ;;  %v4423_v48 = vmul.f32 %v8830_v31, %v4384_v4  ;;  %v4351_v52 = vadd.f32 %v6534_v17, %v6276_v15  ;;  %vm4493_vm4 = vcmp.ge.f32.partialorder %v4461_v18, 0.0 }
 0x37e   : > { %v4462_v40 = vadd.f32 %v8854_v7, %v4423_v48  ;;  %v4385_v59 = vadd.f32 %v4351_v52, %v9466_v44  ;;  %v9122_v1 = vsel %vm4493_vm4, %v4461_v18, %v4525_v61  ;;  %v6913_v61 = vld [vmem:[%s9401_s13 + $0x38] sm:$0xff]   ;;  %v6914_v48 = vld [vmem:[%s9401_s13 + $0x30] sm:$0xff]   ;;  %v6915_v52 = vld [vmem:[%s9401_s13 + $0x28] sm:$0xff]  }
 0x37f   : > { %v4588_v3 = vadd.f32 %v4587_v13, %v9122_v1  ;;  %6575 = vmatprep.subr.bf16.mxu0 %v6913_v61  ;;  %v6918_v44 = vld [vmem:[%s9401_s13 + $0x10] sm:$0xff]  }
 0x380   : > { %vm4494_vm5 = vcmp.ge.f32.partialorder %v4462_v40, 0.0  ;;  %v4526_v38 = vmul.f32 0.001, %v4462_v40  ;;  %v4424_v37 = vmul.f32 %v8830_v31, %v4385_v59  ;;  %v6919_v59 = vld [vmem:[%s9401_s13 + $0x8] sm:$0xff]  }
 0x382   : > { %v9126_v17 = vsel %vm4494_vm5, %v4462_v40, %v4526_v38  ;;  %v4463_v32 = vadd.f32 %v8854_v7, %v4424_v37  ;;  %v4615_v7 = vld [vmem:[%s9398_s10] sm:$0x1]  ;;  %v6917_v40 = vld [vmem:[%s9401_s13 + $0x18] sm:$0xff]  }
 0x383   : > { %v4589_v49 = vadd.f32 %v4588_v3, %v9126_v17  ;;  %v4722_v38 = vld [vmem:[%s9400_s12] sm:$0x1] }
 0x384   : > { %vm4495_vm1 = vcmp.ge.f32.partialorder %v4463_v32, 0.0  ;;  %v4527_v43 = vmul.f32 0.001, %v4463_v32 }
 0x386   : > { %v9131_v27 = vsel %vm4495_vm1, %v4463_v32, %v4527_v43 }
 0x387   : > { %v4590_v20 = vadd.f32 %v4589_v49, %v9131_v27 }
 0x389   : > { %v4591_v14 = vrot.slane %v4590_v20, 4 }
 0x38b   : > { %v4592_v42 = vadd.f32 %v4591_v14, %v4590_v20 }
 0x38d   : > { %v4593_v5 = vrot.slane %v4592_v42, 2 }
 0x38f   : > { %v4594_v31 = vadd.f32 %v4593_v5, %v4592_v42  ;;  %v4817_v42 = vlaneseq }
 0x391   : > { %v4595_v35 = vrot.slane %v4594_v31, 1  ;;  %v4818_v5 = vshrl.u32 %v4817_v42, 7 }
 0x393   : > { %v4596_v56 = vadd.f32 %v4595_v35, %v4594_v31  ;;  %v4819_v31 = vsub.s32 0, %v4818_v5 }
 0x395   : > { %v4597_v60 = vmul.f32 0.00390625, %v4596_v56 }
 0x397   : > { %v4598_v55 = vpack.c.bf16 %v4597_v60, %v4597_v60 }
 0x399   : > { %6552 = vmatmul.mubr.bf16.vlgmr.msra.gmra.mxu0 %v4598_v55 }
 0x39a   : > { %6576 = vmatpush3.bf16.msra.mxu0 %v6913_v61 }
 0x39b   : > { %6577 = vmatprep.subr.bf16.mxu0 %v6914_v48 }
 0x39e   : > { %6578 = vmatpush3.bf16.msra.mxu0 %v6914_v48 }
 0x39f   : > { %6579 = vmatprep.subr.bf16.mxu0 %v6915_v52 }
 0x3a2   : > { %6580 = vmatpush3.bf16.msra.mxu0 %v6915_v52 }
 0x3a3   : > { %6581 = vmatprep.subr.bf16.mxu0 %v6916_v54 }
 0x3a6   : > { %6582 = vmatpush3.bf16.msra.mxu0 %v6916_v54 }
 0x3a7   : > { %6583 = vmatprep.subr.bf16.mxu0 %v6917_v40 }
 0x3aa   : > { %6584 = vmatpush3.bf16.msra.mxu0 %v6917_v40 }
 0x3ab   : > { %6585 = vmatprep.subr.bf16.mxu0 %v6918_v44 }
 0x3ae   : > { %6586 = vmatpush3.bf16.msra.mxu0 %v6918_v44 }
 0x3af   : > { %6587 = vmatprep.subr.bf16.mxu0 %v6919_v59 }
 0x3b2   : > { %6588 = vmatpush3.bf16.msra.mxu0 %v6919_v59 }
 0x3b3   : > { %6589 = vmatprep.subr.bf16.mxu0 %v6920_v46 }
 0x3b6   : > { %6590 = vmatpush3.bf16.msra.mxu0 %v6920_v46 }
 0x459   : > { %v4698_v10 = vpop.f32.mrf.mxu0 }
 0x45a   : > { %v4699_v36 = vadd.f32 %v4698_v10, %v4615_v7 }
 0x45b   : > { %v6553_v18 = vpop.f32.mrf.mxu0 }
 0x45c   : > { %v4704_v24 = vmax.f32 %v4699_v36, 0.0 }
 0x45d   : > { %v4701_v4 = vpop.f32.mrf.mxu0 }
 0x45e   : > { %v4705_v15 = vpack.c.bf16 %v4704_v24, %v4704_v24 }
 0x45f   : > { %v6554_v34 = vpop.f32.mrf.mxu0 }
 0x460   : > { %6572 = vmatmul.mubr.bf16.vlgmr.msra.gmra.mxu1 %v4705_v15 }
 0x520   : > { %v4805_v37 = vpop.f32.mrf.mxu1 }
 0x521   : > { %v4806_v13 = vadd.f32 %v4805_v37, %v4722_v38 }
 0x522   : > { %v6573_v32 = vpop.f32.mrf.mxu1 }
 0x523   : > { %v5755_v3 = vmul.f32 -1.442695, %v4806_v13 }
 0x524   : > { %v4808_v43 = vpop.f32.mrf.mxu1 }
 0x525   : > { %6921 = vpow2.f32 %v5755_v3 }
 0x526   : > { %v6574_v49 = vpop.f32.mrf.mxu1 }
 0x527   : > { %v6943_v49 = vld [vmem:[%s7266_s20 + $0x10] sm:$0xff] }
 0x532   : > { %v6922_v20 = vpop.eup %6921 }
 0x533   : > { %v4814_v14 = vadd.f32 1.0, %v6922_v20 }
 0x535   : > { %6923 = vrcp.f32 %v4814_v14 }
 0x542   : > { %v6924_v35 = vpop.eup %6923 }
 0x543   : > { %v4820_v56 = vrot.slane %v6924_v35, %v4819_v31  ;;  %v6944_v35 = vld [vmem:[%s7266_s20] sm:$0xff] }
 0x545   : > { %v4821_v60 = vmul.f32 %v4820_v56, %v8912_v25  ;;  %v4822_v55 = vmul.f32 %v4820_v56, %v8902_v16  ;;  %v4823_v7 = vmul.f32 %v4820_v56, %v8915_v28  ;;  %v4824_v10 = vmul.f32 %v4820_v56, %v8938_v30 }
 0x546   : > { %v4825_v36 = vmul.f32 %v4820_v56, %v8951_v26  ;;  %v4826_v18 = vmul.f32 %v4820_v56, %v8957_v33  ;;  %v4827_v34 = vmul.f32 %v4820_v56, %v8967_v19  ;;  %v4828_v25 = vmul.f32 %v4820_v56, %v8974_v9 }
 0x547   : > { %v4853_v24 = vpack.c.bf16 %v4822_v55, %v4821_v60  ;;  %v4854_v4 = vpack.c.bf16 %v4824_v10, %v4823_v7  ;;  %v4829_v16 = vmul.f32 %v4820_v56, %v8985_v50  ;;  %v4830_v28 = vmul.f32 %v4820_v56, %v8993_v47 }
 0x548   : > { %v4855_v15 = vpack.c.bf16 %v4826_v18, %v4825_v36  ;;  %v4856_v61 = vpack.c.bf16 %v4828_v25, %v4827_v34  ;;  %v4831_v26 = vmul.f32 %v4820_v56, %v9004_v11  ;;  %v4832_v33 = vmul.f32 %v4820_v56, %v9006_v23  ;;  %v6945_v36 = vld [vmem:[%s7266_s20 + $0x18] sm:$0xff]  ;;  %v6946_v25 = vld [vmem:[%s7266_s20 + $0x8] sm:$0xff] }
 0x549   : > { %6591 = vmatprep.mubr.bf16.mxu0 %v4853_v24  ;;  %v4857_v30 = vpack.c.bf16 %v4830_v28, %v4829_v16  ;;  %v4833_v48 = vmul.f32 %v4820_v56, %v9017_v39  ;;  %v4834_v52 = vmul.f32 %v4820_v56, %v9022_v12  ;;  %v4835_v9 = vmul.f32 %v4820_v56, %v9037_v45 }
 0x54a   : > { %6592 = vmatmul.mubr.bf16.vlgmr.msra.gmra.mxu0 %v4854_v4  ;;  %v4858_v54 = vpack.c.bf16 %v4832_v33, %v4831_v26  ;;  %v4836_v50 = vmul.f32 %v4820_v56, %v9047_v29  ;;  %v4837_v47 = vmul.f32 %v4820_v56, %v9050_v58  ;;  %v4838_v40 = vmul.f32 %v4820_v56, %v9060_v22  ;;  %v6947_v33 = vld [vmem:[%s7266_s20 + $0x30] sm:$0xff] }
 0x54b   : > { %6595 = vmatprep.mubr.bf16.mxu0 %v4855_v15  ;;  %v4859_v19 = vpack.c.bf16 %v4834_v52, %v4833_v48  ;;  %v4839_v23 = vmul.f32 %v4820_v56, %v9065_v8  ;;  %v4840_v39 = vmul.f32 %v4820_v56, %v9072_v63  ;;  %v4841_v12 = vmul.f32 %v4820_v56, %v9079_v21 }
 0x54c   : > { %v4860_v44 = vpack.c.bf16 %v4836_v50, %v4835_v9  ;;  %v4861_v11 = vpack.c.bf16 %v4838_v40, %v4837_v47  ;;  %v4842_v59 = vmul.f32 %v4820_v56, %v9083_v6  ;;  %v4843_v29 = vmul.f32 %v4820_v56, %v9089_v51  ;;  %v6948_v50 = vld [vmem:[%s7266_s20 + $0x20] sm:$0xff] }
 0x54d   : > { %v4862_v46 = vpack.c.bf16 %v4840_v39, %v4839_v23  ;;  %v4844_v58 = vmul.f32 %v4820_v56, %v9093_v62  ;;  %v4845_v22 = vmul.f32 %v4820_v56, %v9098_v57  ;;  %v4846_v38 = vmul.f32 %v4820_v56, %v9103_v41  ;;  %v6949_v39 = vld [vmem:[%s7266_s20 + $0x38] sm:$0xff] }
 0x54e   : > { %v4863_v45 = vpack.c.bf16 %v4842_v59, %v4841_v12  ;;  %v4847_v63 = vmul.f32 %v4820_v56, %v9108_v53  ;;  %v4848_v21 = vmul.f32 %v4820_v56, %v9113_v2  ;;  %v4849_v6 = vmul.f32 %v4820_v56, %v9117_v0  ;;  %v9199_v53 = vld [vmem:[%s9402_s14] ss:$0 sm:$0xff] }
 0x54f   : > { %v4864_v37 = vpack.c.bf16 %v4844_v58, %v4843_v29  ;;  %v4865_v8 = vpack.c.bf16 %v4846_v38, %v4845_v22  ;;  %v4850_v13 = vmul.f32 %v4820_v56, %v9122_v1  ;;  %v4851_v62 = vmul.f32 %v4820_v56, %v9126_v17  ;;  %v9204_v0 = vld [vmem:[%s9467_s17] ss:$0 sm:$0xff]  ;;  %v6950_v58 = vld [vmem:[%s7266_s20 + $0x28] sm:$0xff] }
 0x550   : > { %v4866_v32 = vpack.c.bf16 %v4848_v21, %v4847_v63  ;;  %v4852_v57 = vmul.f32 %v4820_v56, %v9131_v27  ;;  %v6951_v21 = vld [vmem:[%s7266_s20 + $0x50] sm:$0xff] }
 0x551   : > { %v4867_v51 = vpack.c.bf16 %v4850_v13, %v4849_v6 }
 0x552   : > { %6596 = vmatmul.mubr.bf16.gmra.mxu0 %v4856_v61  ;;  %v4868_v41 = vpack.c.bf16 %v4852_v57, %v4851_v62  ;;  %v6952_v57 = vld [vmem:[%s7266_s20 + $0x40] sm:$0xff] }
 0x553   : > { %6599 = vmatprep.mubr.bf16.mxu0 %v4857_v30 }
 0x55a   : > { %6600 = vmatmul.mubr.bf16.gmra.mxu0 %v4858_v54 }
 0x55b   : > { %6603 = vmatprep.mubr.bf16.mxu0 %v4859_v19 }
 0x562   : > { %6604 = vmatmul.mubr.bf16.gmra.mxu0 %v4860_v44 }
 0x563   : > { %6607 = vmatprep.mubr.bf16.mxu0 %v4861_v11 }
 0x56a   : > { %6608 = vmatmul.mubr.bf16.gmra.mxu0 %v4862_v46 }
 0x56b   : > { %6611 = vmatprep.mubr.bf16.mxu0 %v4863_v45 }
 0x572   : > { %6612 = vmatmul.mubr.bf16.gmra.mxu0 %v4864_v37 }
 0x573   : > { %6615 = vmatprep.mubr.bf16.mxu0 %v4865_v8 }
 0x57a   : > { %6616 = vmatmul.mubr.bf16.gmra.mxu0 %v4866_v32 }
 0x57b   : > { %6619 = vmatprep.mubr.bf16.mxu0 %v4867_v51 }
 0x582   : > { %6620 = vmatmul.mubr.bf16.gmra.mxu0 %v4868_v41 }
 0x60a   : > { %v6593_v2 = vpop.f32.mrf.mxu0 }
 0x60b   : > { %v5103_v1 = vmul.f32 %v6593_v2, %v9199_v53 }
 0x60c   : > { %v4967_v17 = vpop.f32.mrf.mxu0 }
 0x60d   : > { %v5142_v27 = vadd.f32 %v9204_v0, %v5103_v1  ;;  %v5101_v3 = vmul.f32 %v9199_v53, %v4967_v17 }
 0x60e   : > { %v6594_v43 = vpop.f32.mrf.mxu0 }
 0x60f   : > { %v5174_v20 = vadd.f32 %v6943_v49, %v5142_v27  ;;  %v5140_v14 = vadd.f32 %v9204_v0, %v5101_v3  ;;  %v5104_v42 = vmul.f32 %v6594_v43, %v9199_v53  ;;  %v6953_v3 = vld [vmem:[%s7266_s20 + $0x58] sm:$0xff] }
 0x610   : > { %v4970_v5 = vpop.f32.mrf.mxu0 }
 0x611   : > { %v5206_v31 = vmax.f32 %v5174_v20, 0.0  ;;  %v5172_v56 = vadd.f32 %v6944_v35, %v5140_v14  ;;  %v5143_v60 = vadd.f32 %v9204_v0, %v5104_v42  ;;  %v5102_v55 = vmul.f32 %v9199_v53, %v4970_v5  ;;  %v6954_v5 = vld [vmem:[%s7266_s20 + $0x48] sm:$0xff] }
 0x612   : > { %v6597_v7 = vpop.f32.mrf.mxu0 }
 0x613   : > { %5238 = vst [vmem:[%s9217_s29 + $0x10] sm:$0xff] %v5206_v31  ;;  %v5204_v10 = vmax.f32 %v5172_v56, 0.0  ;;  %v5175_v18 = vadd.f32 %v6945_v36, %v5143_v60  ;;  %v5141_v24 = vadd.f32 %v9204_v0, %v5102_v55  ;;  %v5107_v4 = vmul.f32 %v6597_v7, %v9199_v53  ;;  %v6955_v7 = vld [vmem:[%s7266_s20 + $0x70] sm:$0xff] }
 0x614   : > { %v4983_v15 = vpop.f32.mrf.mxu0 }
 0x615   : > { %5236 = vst [vmem:[%s9217_s29] sm:$0xff] %v5204_v10  ;;  %v5207_v34 = vmax.f32 %v5175_v18, 0.0  ;;  %v5173_v16 = vadd.f32 %v6946_v25, %v5141_v24  ;;  %v5146_v28 = vadd.f32 %v9204_v0, %v5107_v4  ;;  %v5105_v61 = vmul.f32 %v9199_v53, %v4983_v15  ;;  %v6956_v15 = vld [vmem:[%s7266_s20 + $0x60] sm:$0xff] }
 0x616   : > { %v6598_v30 = vpop.f32.mrf.mxu0 }
 0x617   : > { %5239 = vst [vmem:[%s9217_s29 + $0x18] sm:$0xff] %v5207_v34  ;;  %v5205_v26 = vmax.f32 %v5173_v16, 0.0  ;;  %v5178_v48 = vadd.f32 %v6947_v33, %v5146_v28  ;;  %v5144_v52 = vadd.f32 %v9204_v0, %v5105_v61  ;;  %v5108_v54 = vmul.f32 %v6598_v30, %v9199_v53  ;;  %v6957_v30 = vld [vmem:[%s7266_s20 + $0x78] sm:$0xff] }
 0x618   : > { %v4986_v19 = vpop.f32.mrf.mxu0 }
 0x619   : > { %5237 = vst [vmem:[%s9217_s29 + $0x8] sm:$0xff] %v5205_v26  ;;  %v5210_v9 = vmax.f32 %v5178_v48, 0.0  ;;  %v5176_v47 = vadd.f32 %v6948_v50, %v5144_v52  ;;  %v5147_v40 = vadd.f32 %v9204_v0, %v5108_v54  ;;  %v5106_v44 = vmul.f32 %v9199_v53, %v4986_v19  ;;  %v6958_v19 = vld [vmem:[%s7266_s20 + $0x68] sm:$0xff] }
 0x61a   : > { %v6601_v11 = vpop.f32.mrf.mxu0 }
 0x61b   : > { %5242 = vst [vmem:[%s9217_s29 + $0x30] sm:$0xff] %v5210_v9  ;;  %v5208_v23 = vmax.f32 %v5176_v47, 0.0  ;;  %v5179_v12 = vadd.f32 %v6949_v39, %v5147_v40  ;;  %v5145_v59 = vadd.f32 %v9204_v0, %v5106_v44  ;;  %v5111_v46 = vmul.f32 %v6601_v11, %v9199_v53  ;;  %v6959_v11 = vld [vmem:[%s7266_s20 + $0x90] sm:$0xff] }
 0x61c   : > { %v4999_v45 = vpop.f32.mrf.mxu0 }
 0x61d   : > { %5240 = vst [vmem:[%s9217_s29 + $0x20] sm:$0xff] %v5208_v23  ;;  %v5211_v29 = vmax.f32 %v5179_v12, 0.0  ;;  %v5177_v22 = vadd.f32 %v6950_v58, %v5145_v59  ;;  %v5150_v38 = vadd.f32 %v9204_v0, %v5111_v46  ;;  %v5109_v37 = vmul.f32 %v9199_v53, %v4999_v45  ;;  %v6960_v45 = vld [vmem:[%s7266_s20 + $0x80] sm:$0xff] }
 0x61e   : > { %v6602_v8 = vpop.f32.mrf.mxu0 }
 0x61f   : > { %5243 = vst [vmem:[%s9217_s29 + $0x38] sm:$0xff] %v5211_v29  ;;  %v5209_v63 = vmax.f32 %v5177_v22, 0.0  ;;  %v5182_v6 = vadd.f32 %v6951_v21, %v5150_v38  ;;  %v5148_v13 = vadd.f32 %v9204_v0, %v5109_v37  ;;  %v5112_v32 = vmul.f32 %v6602_v8, %v9199_v53  ;;  %v6961_v8 = vld [vmem:[%s7266_s20 + $0x98] sm:$0xff] }
 0x620   : > { %v5002_v51 = vpop.f32.mrf.mxu0 }
 0x621   : > { %5241 = vst [vmem:[%s9217_s29 + $0x28] sm:$0xff] %v5209_v63  ;;  %v5214_v62 = vmax.f32 %v5182_v6, 0.0  ;;  %v5180_v41 = vadd.f32 %v6952_v57, %v5148_v13  ;;  %v5151_v2 = vadd.f32 %v9204_v0, %v5112_v32  ;;  %v5110_v1 = vmul.f32 %v9199_v53, %v5002_v51  ;;  %v6962_v51 = vld [vmem:[%s7266_s20 + $0x88] sm:$0xff] }
 0x622   : > { %v6605_v17 = vpop.f32.mrf.mxu0 }
 0x623   : > { %5246 = vst [vmem:[%s9217_s29 + $0x50] sm:$0xff] %v5214_v62  ;;  %v5212_v27 = vmax.f32 %v5180_v41, 0.0  ;;  %v5183_v43 = vadd.f32 %v6953_v3, %v5151_v2  ;;  %v5149_v49 = vadd.f32 %v9204_v0, %v5110_v1  ;;  %v5115_v20 = vmul.f32 %v6605_v17, %v9199_v53  ;;  %v6963_v17 = vld [vmem:[%s7266_s20 + $0xb0] sm:$0xff] }
 0x624   : > { %v5015_v14 = vpop.f32.mrf.mxu0 }
 0x625   : > { %5244 = vst [vmem:[%s9217_s29 + $0x40] sm:$0xff] %v5212_v27  ;;  %v5215_v42 = vmax.f32 %v5183_v43, 0.0  ;;  %v5181_v31 = vadd.f32 %v6954_v5, %v5149_v49  ;;  %v5154_v35 = vadd.f32 %v9204_v0, %v5115_v20  ;;  %v5113_v56 = vmul.f32 %v9199_v53, %v5015_v14  ;;  %v6964_v14 = vld [vmem:[%s7266_s20 + $0xa0] sm:$0xff] }
 0x626   : > { %v6606_v60 = vpop.f32.mrf.mxu0 }
 0x627   : > { %5247 = vst [vmem:[%s9217_s29 + $0x58] sm:$0xff] %v5215_v42  ;;  %v5213_v55 = vmax.f32 %v5181_v31, 0.0  ;;  %v5186_v10 = vadd.f32 %v6955_v7, %v5154_v35  ;;  %v5152_v36 = vadd.f32 %v9204_v0, %v5113_v56  ;;  %v5116_v18 = vmul.f32 %v6606_v60, %v9199_v53  ;;  %v6965_v60 = vld [vmem:[%s7266_s20 + $0xb8] sm:$0xff] }
 0x628   : > { %v5018_v24 = vpop.f32.mrf.mxu0 }
 0x629   : > { %5245 = vst [vmem:[%s9217_s29 + $0x48] sm:$0xff] %v5213_v55  ;;  %v5218_v4 = vmax.f32 %v5186_v10, 0.0  ;;  %v5184_v34 = vadd.f32 %v6956_v15, %v5152_v36  ;;  %v5155_v25 = vadd.f32 %v9204_v0, %v5116_v18  ;;  %v5114_v16 = vmul.f32 %v9199_v53, %v5018_v24  ;;  %v6966_v24 = vld [vmem:[%s7266_s20 + $0xa8] sm:$0xff] }
 0x62a   : > { %v6609_v28 = vpop.f32.mrf.mxu0 }
 0x62b   : > { %5250 = vst [vmem:[%s9217_s29 + $0x70] sm:$0xff] %v5218_v4  ;;  %v5216_v61 = vmax.f32 %v5184_v34, 0.0  ;;  %v5187_v26 = vadd.f32 %v6957_v30, %v5155_v25  ;;  %v5153_v33 = vadd.f32 %v9204_v0, %v5114_v16  ;;  %v5119_v48 = vmul.f32 %v6609_v28, %v9199_v53  ;;  %v6967_v28 = vld [vmem:[%s7266_s20 + $0xd0] sm:$0xff] }
 0x62c   : > { %v5031_v52 = vpop.f32.mrf.mxu0 }
 0x62d   : > { %5248 = vst [vmem:[%s9217_s29 + $0x60] sm:$0xff] %v5216_v61  ;;  %v5219_v54 = vmax.f32 %v5187_v26, 0.0  ;;  %v5185_v9 = vadd.f32 %v6958_v19, %v5153_v33  ;;  %v5158_v50 = vadd.f32 %v9204_v0, %v5119_v48  ;;  %v5117_v47 = vmul.f32 %v9199_v53, %v5031_v52  ;;  %v6968_v52 = vld [vmem:[%s7266_s20 + $0xc0] sm:$0xff] }
 0x62e   : > { %v6610_v40 = vpop.f32.mrf.mxu0 }
 0x62f   : > { %5251 = vst [vmem:[%s9217_s29 + $0x78] sm:$0xff] %v5219_v54  ;;  %v5217_v44 = vmax.f32 %v5185_v9, 0.0  ;;  %v5190_v23 = vadd.f32 %v6959_v11, %v5158_v50  ;;  %v5156_v39 = vadd.f32 %v9204_v0, %v5117_v47  ;;  %v5120_v12 = vmul.f32 %v6610_v40, %v9199_v53  ;;  %v6969_v40 = vld [vmem:[%s7266_s20 + $0xd8] sm:$0xff] }
 0x630   : > { %v5034_v59 = vpop.f32.mrf.mxu0 }
 0x631   : > { %5249 = vst [vmem:[%s9217_s29 + $0x68] sm:$0xff] %v5217_v44  ;;  %v5222_v46 = vmax.f32 %v5190_v23, 0.0  ;;  %v5188_v29 = vadd.f32 %v6960_v45, %v5156_v39  ;;  %v5159_v58 = vadd.f32 %v9204_v0, %v5120_v12  ;;  %v5118_v22 = vmul.f32 %v9199_v53, %v5034_v59  ;;  %v6970_v59 = vld [vmem:[%s7266_s20 + $0xc8] sm:$0xff] }
 0x632   : > { %v6613_v38 = vpop.f32.mrf.mxu0 }
 0x633   : > { %5254 = vst [vmem:[%s9217_s29 + $0x90] sm:$0xff] %v5222_v46  ;;  %v5220_v37 = vmax.f32 %v5188_v29, 0.0  ;;  %v5191_v63 = vadd.f32 %v6961_v8, %v5159_v58  ;;  %v5157_v21 = vadd.f32 %v9204_v0, %v5118_v22  ;;  %v5123_v6 = vmul.f32 %v6613_v38, %v9199_v53  ;;  %v6971_v38 = vld [vmem:[%s7266_s20 + $0xf0] sm:$0xff] }
 0x634   : > { %v5047_v13 = vpop.f32.mrf.mxu0 }
 0x635   : > { %5252 = vst [vmem:[%s9217_s29 + $0x80] sm:$0xff] %v5220_v37  ;;  %v5223_v32 = vmax.f32 %v5191_v63, 0.0  ;;  %v5189_v62 = vadd.f32 %v6962_v51, %v5157_v21  ;;  %v5162_v57 = vadd.f32 %v9204_v0, %v5123_v6  ;;  %v5121_v41 = vmul.f32 %v9199_v53, %v5047_v13  ;;  %v6972_v13 = vld [vmem:[%s7266_s20 + $0xe0] sm:$0xff] }
 0x636   : > { %v6614_v2 = vpop.f32.mrf.mxu0 }
 0x637   : > { %5255 = vst [vmem:[%s9217_s29 + $0x98] sm:$0xff] %v5223_v32  ;;  %v5221_v1 = vmax.f32 %v5189_v62, 0.0  ;;  %v5194_v27 = vadd.f32 %v6963_v17, %v5162_v57  ;;  %v5160_v3 = vadd.f32 %v9204_v0, %v5121_v41  ;;  %v5124_v43 = vmul.f32 %v6614_v2, %v9199_v53  ;;  %v6973_v41 = vld [vmem:[%s7266_s20 + $0xf8] sm:$0xff] }
 0x638   : > { %v5050_v49 = vpop.f32.mrf.mxu0 }
 0x639   : > { %5253 = vst [vmem:[%s9217_s29 + $0x88] sm:$0xff] %v5221_v1  ;;  %v5226_v20 = vmax.f32 %v5194_v27, 0.0  ;;  %v5192_v42 = vadd.f32 %v6964_v14, %v5160_v3  ;;  %v5163_v5 = vadd.f32 %v9204_v0, %v5124_v43  ;;  %v5122_v31 = vmul.f32 %v9199_v53, %v5050_v49  ;;  %v6974_v27 = vld [vmem:[%s7266_s20 + $0xe8] sm:$0xff]  ;;  %s7075_s20 = smov [#allocation6]  }
 0x63a   : > { %v6617_v35 = vpop.f32.mrf.mxu0  ;;  %s7007_s17 = sshll.u32 %s7075_s20, 4  ;;  %s7008_s17 = int_to_ptr.vmem [resolvable:$false] %s7007_s17 }
 0x63b   : > { %5258 = vst [vmem:[%s9217_s29 + $0xb0] sm:$0xff] %v5226_v20  ;;  %v5224_v56 = vmax.f32 %v5192_v42, 0.0  ;;  %v5195_v55 = vadd.f32 %v6965_v60, %v5163_v5  ;;  %v5161_v7 = vadd.f32 %v9204_v0, %v5122_v31  ;;  %v5127_v10 = vmul.f32 %v6617_v35, %v9199_v53  ;;  %s7009_s0 = scalar_lea.vmem %s7008_s17, 8192  ;;  %p7010_p5 = scmp.lt.s32.totalorder %s9343_s19, %s7008_s17 }
 0x63c   : > { %v5063_v36 = vpop.f32.mrf.mxu0  ;;  %p7011_p7 = scmp.lt.s32.totalorder %s7009_s0, %s7003_s18 }
 0x63d   : > { %5256 = vst [vmem:[%s9217_s29 + $0xa0] sm:$0xff] %v5224_v56  ;;  %v5227_v18 = vmax.f32 %v5195_v55, 0.0  ;;  %v5193_v4 = vadd.f32 %v6966_v24, %v5161_v7  ;;  %v5166_v15 = vadd.f32 %v9204_v0, %v5127_v10  ;;  %v5125_v34 = vmul.f32 %v9199_v53, %v5063_v36 }
 0x63e   : > { %v6618_v25 = vpop.f32.mrf.mxu0  ;;  %p7012_p8 = por %p7011_p7, %p7010_p5 }
 0x63f   : > { %5259 = vst [vmem:[%s9217_s29 + $0xb8] sm:$0xff] %v5227_v18  ;;  %v5225_v16 = vmax.f32 %v5193_v4, 0.0  ;;  %v5198_v61 = vadd.f32 %v6967_v28, %v5166_v15  ;;  %v5164_v30 = vadd.f32 %v9204_v0, %v5125_v34  ;;  %v5128_v26 = vmul.f32 %v6618_v25, %v9199_v53 }
 0x640   : > { %v5066_v33 = vpop.f32.mrf.mxu0  ;;  %p7013_p10 = pnand %p7012_p8, %p7006_p4 }
 0x641   : > { %5257 = vst [vmem:[%s9217_s29 + $0xa8] sm:$0xff] %v5225_v16  ;;  %v5230_v48 = vmax.f32 %v5198_v61, 0.0  ;;  %v5196_v54 = vadd.f32 %v6968_v52, %v5164_v30  ;;  %v5167_v19 = vadd.f32 %v9204_v0, %v5128_v26  ;;  %v5126_v9 = vmul.f32 %v9199_v53, %v5066_v33 }
 0x642   : > { %v6621_v50 = vpop.f32.mrf.mxu0 }
 0x643   : > { %5262 = vst [vmem:[%s9217_s29 + $0xd0] sm:$0xff] %v5230_v48  ;;  %v5228_v47 = vmax.f32 %v5196_v54, 0.0  ;;  %v5199_v44 = vadd.f32 %v6969_v40, %v5167_v19  ;;  %v5165_v11 = vadd.f32 %v9204_v0, %v5126_v9  ;;  %v5131_v23 = vmul.f32 %v6621_v50, %v9199_v53 }
 0x644   : > { %v5079_v39 = vpop.f32.mrf.mxu0 }
 0x645   : > { %5260 = vst [vmem:[%s9217_s29 + $0xc0] sm:$0xff] %v5228_v47  ;;  %v5231_v12 = vmax.f32 %v5199_v44, 0.0  ;;  %v5197_v46 = vadd.f32 %v6970_v59, %v5165_v11  ;;  %v5170_v45 = vadd.f32 %v9204_v0, %v5131_v23  ;;  %v5129_v29 = vmul.f32 %v9199_v53, %v5079_v39 }
 0x646   : > { %v6622_v58 = vpop.f32.mrf.mxu0 }
 0x647   : > { %5263 = vst [vmem:[%s9217_s29 + $0xd8] sm:$0xff] %v5231_v12  ;;  %v5229_v22 = vmax.f32 %v5197_v46, 0.0  ;;  %v5202_v37 = vadd.f32 %v6971_v38, %v5170_v45  ;;  %v5168_v8 = vadd.f32 %v9204_v0, %v5129_v29  ;;  %v5132_v63 = vmul.f32 %v6622_v58, %v9199_v53 }
 0x648   : > { %v5082_v21 = vpop.f32.mrf.mxu0 }
 0x649   : > { %5261 = vst [vmem:[%s9217_s29 + $0xc8] sm:$0xff] %v5229_v22  ;;  %v5234_v6 = vmax.f32 %v5202_v37, 0.0  ;;  %v5200_v32 = vadd.f32 %v6972_v13, %v5168_v8  ;;  %v5171_v51 = vadd.f32 %v9204_v0, %v5132_v63  ;;  %v5130_v62 = vmul.f32 %v9199_v53, %v5082_v21 }
 0x64b   : > { %5266 = vst [vmem:[%s9217_s29 + $0xf0] sm:$0xff] %v5234_v6  ;;  %v5232_v57 = vmax.f32 %v5200_v32, 0.0  ;;  %v5203_v2 = vadd.f32 %v6973_v41, %v5171_v51  ;;  %v5169_v1 = vadd.f32 %v9204_v0, %v5130_v62 }
 0x64d   : > { %5264 = vst [vmem:[%s9217_s29 + $0xe0] sm:$0xff] %v5232_v57  ;;  %v5235_v17 = vmax.f32 %v5203_v2, 0.0  ;;  %v5201_v3 = vadd.f32 %v6974_v27, %v5169_v1 }
 0x64f   : > { %5267 = vst [vmem:[%s9217_s29 + $0xf8] sm:$0xff] %v5235_v17  ;;  %v5233_v53 = vmax.f32 %v5201_v3, 0.0 }
 0x651   : > { %5265 = vst [vmem:[%s9217_s29 + $0xe8] sm:$0xff] %v5233_v53 }
 0x652   : > { %7016 = shalt.err (!%p7013_p10)
}
 0x653   : > { %s7017_s29 = scalar_lea.hbm %s9341_s23, 4096  ;;  %s7021_s28 = scalar_lea.hbm %s9470_s15, 8192 }
 0x654   : > { %p7018_p0 = scmp.ne.s32.totalorder %s9341_s23, %s7017_s29  ;;  %p7022_p1 = scmp.lt.s32.totalorder %s9341_s23, %s9470_s15 }
 0x655   : > { %p7023_p3 = scmp.lt.s32.totalorder %s7021_s28, %s7017_s29 }
 0x656   : > { %p7019_p2 = pnand %p7018_p0, %p9471_p12 }
 0x657   : > { %p7024_p6 = por %p7023_p3, %p7022_p1 }
 0x658   : > { %p7020_p9 = pneg %p7019_p2 }
 0x65a   : > { %p7025_p11 = pnand %p7024_p6, %p7020_p9 }
 0x65c   : > { %7028 = shalt.err (!%p7025_p11)
}
 0x65d   : > { %s7076_s18 = smov 128   ;;  %s7077_s17 = smov 8  }
 0x65e   : > { %s9472_s0 = scalar_lea.sflag [#allocation5], %s7260_s30 }
 0x65f   : > { %6641 = dma.vmem_to_hbm [thread:$0]  (%p9471_p12), %s9343_s19, 4096, %s9341_s23, %s9472_s0, %s7076_s18, %s7076_s18, %s7077_s17  }
 0x660 PF: > { %s9473_s21 = sld [smem:[#allocation9_spill]]  ;;  %p9476_p4 = scmp.ge.s32.totalorder %s7067_s24, 2 }
 0x661   : > { %s9474_s27 = sld [smem:[#allocation15_spill]] }
 0x666   : > { %s5297_s1 = sand.u32 1, %s9473_s21  }
 0x667   : > { %p9475_p13 = scmp.ne.s32.totalorder %s9474_s27, 0  ;;  %s5298_s25 = scalar_lea.sflag [#allocation5], %s5297_s1 }
 0x669   : > { %p6648_p5 = pnand %p9476_p4, %p9475_p13 }
 0x66b   : > { %p6649_p7 = pneg %p6648_p5 }
 0x66d   : > { %7050 = dma.done.wait (%p6649_p7), %s5298_s25, 4096  }
 0x66e   : > { %7052 = vsyncadd (%p6649_p7), %s5298_s25, 4294963200  ;;  %s9477_s24 = sld [smem:[#allocation12_spill]]  ;;  %s9480_s21 = smov %s7059_s22 }
 0x66f   : > { %s9478_s29 = sld [smem:[#allocation10_spill]] }
 0x670   : > { %s9479_s23 = sld [smem:[#allocation13_spill]] }
 0x674   : > { %p29_p8 = scmp.ge.s32.totalorder %s9477_s24, 4  }
 0x675   : > { %s9481_s22 = smov %s9478_s29 }
 0x676   :  { %31 = sbr.rel (!%p29_p8) target bundleno = 10 (0xa), region = 131 }
 0x67b   :  { %5303 = vsyncpa [#allocation4], 1 }
 0x67c   :  { %5305 = vsyncpa [#allocation4 + $0x1], 1 }
 0x67d   :  { %5306 = vsyncpa [#allocation5], 1 }
 0x67e   :  { %5308 = vsyncpa [#allocation5 + $0x1], 1 }

</bundles_post_ra>
